<compile_context>
chip_gen: v6e
topology: v6e:2x2x1
jax: 0.10.0
libtpu: 0.0.40
codegen_flags: <defaults>
</compile_context>

<pallas_src>
import math
from functools import partial

import jax
import jax.numpy as jnp
from jax.experimental import pallas as pl
from jax.experimental.pallas import tpu as pltpu

_OFF = 128  # lane-aligned offset of the image interior inside the flat padded scratch


# ----------------------------------------------------------------------------
# im2col helpers (flat-shift + column-mask formulation, no reshapes in-kernel)
# ----------------------------------------------------------------------------
def _col_masks(H, W, K):
    """(K, H*W) mask[kw, m] = 1 iff output column (m % W) + (kw - K//2) is a
    valid image column (kills the row-wrap terms of the flat shift)."""
    p = K // 2
    j = jnp.arange(H * W, dtype=jnp.int32) % W
    rows = [((j + (kw - p) >= 0) & (j + (kw - p) <= W - 1)).astype(jnp.float32)
            for kw in range(K)]
    return jnp.stack(rows, axis=0)


def _build_col(src_ref, m, *, C, W, HW, K):
    """Build the (K*K*C, HW) bf16 im2col matrix from a flat-padded bf16 scratch.

    Each tap is a contiguous lane-shifted slice of src_ref; boundary-kw taps are
    multiplied by a (C, HW) mask that is broadcast once and reused for all kh."""
    p = K // 2
    bmask = {kw: jnp.broadcast_to(m[kw:kw + 1, :], (C, HW))
             for kw in range(K) if kw != p}
    pieces = []
    for kh in range(K):
        for kw in range(K):
            start = _OFF + (kh - p) * W + (kw - p)
            sl = src_ref[:, start:start + HW]            # (C, HW) bf16, contiguous
            if kw != p:                                  # boundary columns only
                sl = sl * bmask[kw]                      # exact 0/1 in bf16
            pieces.append(sl)
    return jnp.concatenate(pieces, axis=0)               # (K*K*C, HW) bf16


# ----------------------------------------------------------------------------
# Fully fused WDSR forward: head + blocks + tail + skip in one pallas_call
# ----------------------------------------------------------------------------
def wdsr_fused_pallas(x_flat, params, *, H, W):
    """x_flat: (N, Cin, H*W) f32.  Returns (N, num_outputs, H*W) f32."""
    N, Cin, HW = x_flat.shape
    assert HW == H * W
    blocks = params["blocks"]
    n_res = len(blocks)
    nf = params["head"]["w_mat"].shape[0]
    nf4 = blocks[0]["w1"]["w_mat"].shape[0] if n_res else nf
    num_outputs = params["tail"]["w_mat"].shape[0]
    has_skip = params["skip"] is not None
    for K in ((3, 5) if has_skip else (3,)):
        assert (K // 2) * W + K // 2 <= _OFF, "flat-pad offset too small"

    mask3 = _col_masks(H, W, 3).astype(jnp.bfloat16)
    args = [x_flat, mask3]
    in_specs = [pl.BlockSpec((1, Cin, HW), lambda n: (n, 0, 0)),
                pl.BlockSpec((3, HW), lambda n: (0, 0))]
    if has_skip:
        mask5 = _col_masks(H, W, 5).astype(jnp.bfloat16)
        args.append(mask5)
        in_specs.append(pl.BlockSpec((5, HW), lambda n: (0, 0)))

    def add_conv(conv):
        w = conv["w_mat"]                       # (Cout, K*K*Cin) bf16
        b = conv["b"].reshape(-1, 1)            # (Cout, 1) f32
        args.extend([w, b])
        in_specs.append(pl.BlockSpec(w.shape, lambda n: (0, 0)))
        in_specs.append(pl.BlockSpec(b.shape, lambda n: (0, 0)))

    add_conv(params["head"])
    for blk in blocks:
        add_conv(blk["w1"])
        add_conv(blk["w2"])
    add_conv(params["tail"])
    if has_skip:
        add_conv(params["skip"])

    def kernel(*refs):
        i = 0
        x_ref = refs[i]; i += 1
        m3 = refs[i][...]; i += 1
        if has_skip:
            m5 = refs[i][...]; i += 1

        def next_conv():
            nonlocal i
            w, b = refs[i], refs[i + 1]
            i += 2
            return w, b

        head_w, head_b = next_conv()
        blk_refs = []
        for _ in range(n_res):
            blk_refs.append((next_conv(), next_conv()))
        tail_w, tail_b = next_conv()
        if has_skip:
            skip_w, skip_b = next_conv()
        o_ref = refs[i]; i += 1
        pad_x, pad_h, pad_t = refs[i], refs[i + 1], refs[i + 2]

        # Zero ONLY the pad bands (interiors are fully overwritten before use).
        for pr, c in ((pad_x, Cin), (pad_h, nf), (pad_t, nf4)):
            pr[:, :_OFF] = jnp.zeros((c, _OFF), jnp.bfloat16)
            pr[:, _OFF + HW:] = jnp.zeros((c, _OFF), jnp.bfloat16)

        # ---- head conv (x is staged once and reused by the 5x5 skip conv) ----
        x0 = x_ref[0]                                      # (Cin, HW) f32
        pad_x[:, _OFF:_OFF + HW] = x0.astype(jnp.bfloat16)
        col = _build_col(pad_x, m3, C=Cin, W=W, HW=HW, K=3)
        h = jnp.dot(head_w[...], col,
                    preferred_element_type=jnp.float32) + head_b[...]

        # ---- skip branch ----
        if has_skip:
            col = _build_col(pad_x, m5, C=Cin, W=W, HW=HW, K=5)
            skip = jnp.dot(skip_w[...], col,
                           preferred_element_type=jnp.float32) + skip_b[...]
        else:
            skip = x0

        # ---- residual blocks (4x expand + ReLU, reduce, residual add) ----
        for (w1, b1), (w2, b2) in blk_refs:
            pad_h[:, _OFF:_OFF + HW] = h.astype(jnp.bfloat16)
            col = _build_col(pad_h, m3, C=nf, W=W, HW=HW, K=3)
            t = jnp.maximum(
                jnp.dot(w1[...], col, preferred_element_type=jnp.float32)
                + b1[...], 0.0)                            # (nf4, HW) f32
            pad_t[:, _OFF:_OFF + HW] = t.astype(jnp.bfloat16)
            col = _build_col(pad_t, m3, C=nf4, W=W, HW=HW, K=3)
            h = (jnp.dot(w2[...], col, preferred_element_type=jnp.float32)
                 + b2[...] + h)                            # residual add in f32

        # ---- tail conv + skip add ----
        pad_h[:, _OFF:_OFF + HW] = h.astype(jnp.bfloat16)
        col = _build_col(pad_h, m3, C=nf, W=W, HW=HW, K=3)
        y = (jnp.dot(tail_w[...], col, preferred_element_type=jnp.float32)
             + tail_b[...] + skip)
        o_ref[0] = y.astype(o_ref.dtype)

    conv_dims = [(9 * Cin, nf)]
    for _ in range(n_res):
        conv_dims += [(9 * nf, nf4), (9 * nf4, nf)]
    conv_dims += [(9 * nf, num_outputs)]
    if has_skip:
        conv_dims += [(25 * Cin, num_outputs)]
    flops = 2 * N * HW * sum(k * c for k, c in conv_dims)
    bytes_accessed = int(N * num_outputs * HW * 4
                         + sum(int(a.size) * a.dtype.itemsize for a in args))

    return pl.pallas_call(
        kernel,
        out_shape=jax.ShapeDtypeStruct((N, num_outputs, HW), jnp.float32),
        grid=(N,),
        in_specs=in_specs,
        out_specs=pl.BlockSpec((1, num_outputs, HW), lambda n: (n, 0, 0)),
        scratch_shapes=[pltpu.VMEM((Cin, HW + 2 * _OFF), jnp.bfloat16),
                        pltpu.VMEM((nf, HW + 2 * _OFF), jnp.bfloat16),
                        pltpu.VMEM((nf4, HW + 2 * _OFF), jnp.bfloat16)],
        compiler_params=pltpu.CompilerParams(
            dimension_semantics=("parallel",)),
        cost_estimate=pl.CostEstimate(flops=flops, transcendentals=0,
                                      bytes_accessed=bytes_accessed),
    )(*args)


# ----------------------------------------------------------------------------
# Parameter construction (deterministic, weight_norm applied analytically)
# ----------------------------------------------------------------------------
def make_wn_conv_params(key, cin, cout, k, g_val):
    v = jax.random.normal(key, (cout, cin, k, k), jnp.float32)
    norm = jnp.sqrt(jnp.sum(v * v, axis=(1, 2, 3), keepdims=True))
    w_oihw = (g_val * v / norm).astype(jnp.float32)           # weight_norm
    # (Cout, KH, KW, Cin) -> (Cout, KH*KW*Cin); row order matches _build_col
    w_mat = jnp.transpose(w_oihw, (0, 2, 3, 1)).reshape(cout, k * k * cin)
    return dict(w_oihw=w_oihw,
                w_mat=w_mat.astype(jnp.bfloat16),
                b=jnp.zeros((cout,), jnp.float32))


def init_model_params(key, n_colors, n_feats, n_resblocks, scale):
    num_inputs = n_colors
    num_outputs = scale * scale * n_colors
    has_skip = num_inputs != num_outputs
    n_keys = 2 + 2 * n_resblocks + (1 if has_skip else 0)
    ki = iter(jax.random.split(key, n_keys))

    params = {}
    params["head"] = make_wn_conv_params(next(ki), num_inputs, n_feats, 3, 1.0)
    res_scale = 1.0 / math.sqrt(n_resblocks)
    blocks = []
    for _ in range(n_resblocks):
        w1 = make_wn_conv_params(next(ki), n_feats, 4 * n_feats, 3, 2.0)
        w2 = make_wn_conv_params(next(ki), 4 * n_feats, n_feats, 3, res_scale)
        blocks.append(dict(w1=w1, w2=w2))
    params["blocks"] = blocks
    params["tail"] = make_wn_conv_params(next(ki), n_feats, num_outputs, 3, 1.0)
    params["skip"] = (make_wn_conv_params(next(ki), num_inputs, num_outputs, 5, 1.0)
                      if has_skip else None)
    return params


# ----------------------------------------------------------------------------
# Model forward (Pallas path) + PixelShuffle in the wrapper
# ----------------------------------------------------------------------------
def pixel_shuffle_nchw(x, r):
    # Matches torch.nn.PixelShuffle channel ordering.
    N, Cr2, H, W = x.shape
    C = Cr2 // (r * r)
    x = x.reshape(N, C, r, r, H, W)
    x = jnp.transpose(x, (0, 1, 4, 2, 5, 3))
    return x.reshape(N, C, H * r, W * r)


@partial(jax.jit, static_argnums=(2, 3, 4))
def model_forward(x_nchw, params, scale, H, W):
    N, c_in, _, _ = x_nchw.shape
    x_flat = x_nchw.reshape(N, c_in, H * W)
    # prenetwork is empty (identity); body + skip + shuffle below
    y = wdsr_fused_pallas(x_flat, params, H=H, W=W)
    y = y.reshape(N, -1, H, W)
    return pixel_shuffle_nchw(y, scale)


# ----------------------------------------------------------------------------
# Pure-JAX NCHW reference (PyTorch semantics) for verification
# ----------------------------------------------------------------------------
def ref_conv_nchw(x, w_oihw, b, relu=False):
    y = jax.lax.conv_general_dilated(
        x, w_oihw, window_strides=(1, 1), padding="SAME",
        dimension_numbers=("NCHW", "OIHW", "NCHW"),
        precision=jax.lax.Precision.HIGHEST)
    y = y + b[None, :, None, None]
    return jnp.maximum(y, 0.0) if relu else y


def ref_forward_nchw(x_nchw, params, scale):
    h = ref_conv_nchw(x_nchw, params["head"]["w_oihw"], params["head"]["b"])
    for blk in params["blocks"]:
        t = ref_conv_nchw(h, blk["w1"]["w_oihw"], blk["w1"]["b"], relu=True)
        h = ref_conv_nchw(t, blk["w2"]["w_oihw"], blk["w2"]["b"]) + h
    skip = (ref_conv_nchw(x_nchw, params["skip"]["w_oihw"], params["skip"]["b"])
            if params["skip"] is not None else x_nchw)
    y = ref_conv_nchw(h, params["tail"]["w_oihw"], params["tail"]["b"]) + skip
    return pixel_shuffle_nchw(y, scale)


# ----------------------------------------------------------------------------
if __name__ == "__main__":
    key = jax.random.PRNGKey(0)
    # params: n_colors=3, n_feats=8, n_resblocks=2, scale=2  (small, consistent)
    N, n_colors, H, W = 2, 3, 16, 16
    n_feats, n_resblocks, scale = 8, 2, 2

    kx, kp = jax.random.split(key)
    x_nchw = jax.random.normal(kx, (N, n_colors, H, W), jnp.float32)
    params = init_model_params(kp, n_colors, n_feats, n_resblocks, scale)

    out = model_forward(x_nchw, params, scale, H, W)
    out = jax.block_until_ready(out)

    ref = ref_forward_nchw(x_nchw, params, scale)

    assert out.shape == (N, n_colors, H * scale, W * scale), out.shape
    rel_err = float(jnp.max(jnp.abs(out - ref)) /
                    (jnp.max(jnp.abs(ref)) + 1e-6))
    assert rel_err < 5e-2, f"mismatch vs reference: rel_err={rel_err}"
    print("KERNEL_OK")
</pallas_src>

<mosaic_0001>
module attributes {stable_mosaic.version = 11 : i64} {
  func.func @kernel(%arg0: i32, %arg1: memref<1x3x256xf32, #tpu.memory_space<vmem>>, %arg2: memref<3x256xbf16, #tpu.memory_space<vmem>>, %arg3: memref<5x256xbf16, #tpu.memory_space<vmem>>, %arg4: memref<8x27xbf16, #tpu.memory_space<vmem>>, %arg5: memref<8x1xf32, #tpu.memory_space<vmem>>, %arg6: memref<32x72xbf16, #tpu.memory_space<vmem>>, %arg7: memref<32x1xf32, #tpu.memory_space<vmem>>, %arg8: memref<8x288xbf16, #tpu.memory_space<vmem>>, %arg9: memref<8x1xf32, #tpu.memory_space<vmem>>, %arg10: memref<32x72xbf16, #tpu.memory_space<vmem>>, %arg11: memref<32x1xf32, #tpu.memory_space<vmem>>, %arg12: memref<8x288xbf16, #tpu.memory_space<vmem>>, %arg13: memref<8x1xf32, #tpu.memory_space<vmem>>, %arg14: memref<12x72xbf16, #tpu.memory_space<vmem>>, %arg15: memref<12x1xf32, #tpu.memory_space<vmem>>, %arg16: memref<12x75xbf16, #tpu.memory_space<vmem>>, %arg17: memref<12x1xf32, #tpu.memory_space<vmem>>, %arg18: memref<1x12x256xf32, #tpu.memory_space<vmem>>, %arg19: memref<3x512xbf16, #tpu.memory_space<vmem>>, %arg20: memref<8x512xbf16, #tpu.memory_space<vmem>>, %arg21: memref<32x512xbf16, #tpu.memory_space<vmem>>) attributes {dimension_semantics = [#tpu.dimension_semantics<parallel>], iteration_bounds = array<i64: 2>, scalar_prefetch = 0 : i64, scratch_operands = 3 : i64, tpu.core_type = #tpu.core_type<tc>, window_params = [{transform_indices = @transform_0, window_bounds = array<i64: 1, 3, 256>}, {pipeline_mode = #tpu.pipeline_mode<synchronous>, transform_indices = @transform_1, window_bounds = array<i64: 3, 256>}, {pipeline_mode = #tpu.pipeline_mode<synchronous>, transform_indices = @transform_2, window_bounds = array<i64: 5, 256>}, {pipeline_mode = #tpu.pipeline_mode<synchronous>, transform_indices = @transform_3, window_bounds = array<i64: 8, 27>}, {pipeline_mode = #tpu.pipeline_mode<synchronous>, transform_indices = @transform_4, window_bounds = array<i64: 8, 1>}, {pipeline_mode = #tpu.pipeline_mode<synchronous>, transform_indices = @transform_5, window_bounds = array<i64: 32, 72>}, {pipeline_mode = #tpu.pipeline_mode<synchronous>, transform_indices = @transform_6, window_bounds = array<i64: 32, 1>}, {pipeline_mode = #tpu.pipeline_mode<synchronous>, transform_indices = @transform_7, window_bounds = array<i64: 8, 288>}, {pipeline_mode = #tpu.pipeline_mode<synchronous>, transform_indices = @transform_8, window_bounds = array<i64: 8, 1>}, {pipeline_mode = #tpu.pipeline_mode<synchronous>, transform_indices = @transform_9, window_bounds = array<i64: 32, 72>}, {pipeline_mode = #tpu.pipeline_mode<synchronous>, transform_indices = @transform_10, window_bounds = array<i64: 32, 1>}, {pipeline_mode = #tpu.pipeline_mode<synchronous>, transform_indices = @transform_11, window_bounds = array<i64: 8, 288>}, {pipeline_mode = #tpu.pipeline_mode<synchronous>, transform_indices = @transform_12, window_bounds = array<i64: 8, 1>}, {pipeline_mode = #tpu.pipeline_mode<synchronous>, transform_indices = @transform_13, window_bounds = array<i64: 12, 72>}, {pipeline_mode = #tpu.pipeline_mode<synchronous>, transform_indices = @transform_14, window_bounds = array<i64: 12, 1>}, {pipeline_mode = #tpu.pipeline_mode<synchronous>, transform_indices = @transform_15, window_bounds = array<i64: 12, 75>}, {pipeline_mode = #tpu.pipeline_mode<synchronous>, transform_indices = @transform_16, window_bounds = array<i64: 12, 1>}, {transform_indices = @transform_17, window_bounds = array<i64: 1, 12, 256>}]} {
    %c0 = arith.constant 0 : index
    %c0_0 = arith.constant 0 : index
    %0 = vector.load %arg2[%c0, %c0_0] : memref<3x256xbf16, #tpu.memory_space<vmem>>, vector<3x256xbf16>
    %c0_1 = arith.constant 0 : index
    %c0_2 = arith.constant 0 : index
    %1 = vector.load %arg3[%c0_1, %c0_2] : memref<5x256xbf16, #tpu.memory_space<vmem>>, vector<5x256xbf16>
    %cst = arith.constant 0.000000e+00 : bf16
    %2 = vector.broadcast %cst : bf16 to vector<3x128xbf16>
    %c0_3 = arith.constant 0 : index
    %c0_4 = arith.constant 0 : index
    %3 = vector.load %arg19[%c0_3, %c0_4] : memref<3x512xbf16, #tpu.memory_space<vmem>>, vector<3x128xbf16>
    tpu.vector_store %arg19[%c0_3, %c0_4], %2 {strides = array<i32>} : memref<3x512xbf16, #tpu.memory_space<vmem>>, vector<3x128xbf16>,
    %cst_5 = arith.constant 0.000000e+00 : bf16
    %4 = vector.broadcast %cst_5 : bf16 to vector<3x128xbf16>
    %c0_6 = arith.constant 0 : index
    %c384 = arith.constant 384 : index
    %5 = vector.load %arg19[%c0_6, %c384] : memref<3x512xbf16, #tpu.memory_space<vmem>>, vector<3x128xbf16>
    tpu.vector_store %arg19[%c0_6, %c384], %4 {strides = array<i32>} : memref<3x512xbf16, #tpu.memory_space<vmem>>, vector<3x128xbf16>,
    %cst_7 = arith.constant 0.000000e+00 : bf16
    %6 = vector.broadcast %cst_7 : bf16 to vector<8x128xbf16>
    %c0_8 = arith.constant 0 : index
    %c0_9 = arith.constant 0 : index
    %7 = vector.load %arg20[%c0_8, %c0_9] : memref<8x512xbf16, #tpu.memory_space<vmem>>, vector<8x128xbf16>
    tpu.vector_store %arg20[%c0_8, %c0_9], %6 {strides = array<i32>} : memref<8x512xbf16, #tpu.memory_space<vmem>>, vector<8x128xbf16>,
    %cst_10 = arith.constant 0.000000e+00 : bf16
    %8 = vector.broadcast %cst_10 : bf16 to vector<8x128xbf16>
    %c0_11 = arith.constant 0 : index
    %c384_12 = arith.constant 384 : index
    %9 = vector.load %arg20[%c0_11, %c384_12] : memref<8x512xbf16, #tpu.memory_space<vmem>>, vector<8x128xbf16>
    tpu.vector_store %arg20[%c0_11, %c384_12], %8 {strides = array<i32>} : memref<8x512xbf16, #tpu.memory_space<vmem>>, vector<8x128xbf16>,
    %cst_13 = arith.constant 0.000000e+00 : bf16
    %10 = vector.broadcast %cst_13 : bf16 to vector<32x128xbf16>
    %c0_14 = arith.constant 0 : index
    %c0_15 = arith.constant 0 : index
    %11 = vector.load %arg21[%c0_14, %c0_15] : memref<32x512xbf16, #tpu.memory_space<vmem>>, vector<32x128xbf16>
    tpu.vector_store %arg21[%c0_14, %c0_15], %10 {strides = array<i32>} : memref<32x512xbf16, #tpu.memory_space<vmem>>, vector<32x128xbf16>,
    %cst_16 = arith.constant 0.000000e+00 : bf16
    %12 = vector.broadcast %cst_16 : bf16 to vector<32x128xbf16>
    %c0_17 = arith.constant 0 : index
    %c384_18 = arith.constant 384 : index
    %13 = vector.load %arg21[%c0_17, %c384_18] : memref<32x512xbf16, #tpu.memory_space<vmem>>, vector<32x128xbf16>
    tpu.vector_store %arg21[%c0_17, %c384_18], %12 {strides = array<i32>} : memref<32x512xbf16, #tpu.memory_space<vmem>>, vector<32x128xbf16>,
    %c0_19 = arith.constant 0 : index
    %c0_20 = arith.constant 0 : index
    %c0_21 = arith.constant 0 : index
    %14 = vector.load %arg1[%c0_19, %c0_20, %c0_21] : memref<1x3x256xf32, #tpu.memory_space<vmem>>, vector<1x3x256xf32>
    %15 = vector.shape_cast %14 : vector<1x3x256xf32> to vector<3x256xf32>
    %16 = arith.truncf %15 : vector<3x256xf32> to vector<3x256xbf16>
    %c0_22 = arith.constant 0 : index
    %c128 = arith.constant 128 : index
    %17 = vector.load %arg19[%c0_22, %c128] : memref<3x512xbf16, #tpu.memory_space<vmem>>, vector<3x256xbf16>
    tpu.vector_store %arg19[%c0_22, %c128], %16 {strides = array<i32>} : memref<3x512xbf16, #tpu.memory_space<vmem>>, vector<3x256xbf16>,
    %18 = vector.extract_strided_slice %0 {offsets = [0, 0], sizes = [1, 256], strides = [1, 1]} : vector<3x256xbf16> to vector<1x256xbf16>
    %19 = vector.shape_cast %18 : vector<1x256xbf16> to vector<1x256xbf16>
    %20 = vector.broadcast %19 : vector<1x256xbf16> to vector<3x256xbf16>
    %21 = vector.extract_strided_slice %0 {offsets = [2, 0], sizes = [1, 256], strides = [1, 1]} : vector<3x256xbf16> to vector<1x256xbf16>
    %22 = vector.shape_cast %21 : vector<1x256xbf16> to vector<1x256xbf16>
    %23 = vector.broadcast %22 : vector<1x256xbf16> to vector<3x256xbf16>
    %c0_23 = arith.constant 0 : index
    %c111 = arith.constant 111 : index
    %24 = vector.load %arg19[%c0_23, %c111] : memref<3x512xbf16, #tpu.memory_space<vmem>>, vector<3x256xbf16>
    %25 = arith.mulf %24, %20 : vector<3x256xbf16>
    %c0_24 = arith.constant 0 : index
    %c112 = arith.constant 112 : index
    %26 = vector.load %arg19[%c0_24, %c112] : memref<3x512xbf16, #tpu.memory_space<vmem>>, vector<3x256xbf16>
    %c0_25 = arith.constant 0 : index
    %c113 = arith.constant 113 : index
    %27 = vector.load %arg19[%c0_25, %c113] : memref<3x512xbf16, #tpu.memory_space<vmem>>, vector<3x256xbf16>
    %28 = arith.mulf %27, %23 : vector<3x256xbf16>
    %c0_26 = arith.constant 0 : index
    %c127 = arith.constant 127 : index
    %29 = vector.load %arg19[%c0_26, %c127] : memref<3x512xbf16, #tpu.memory_space<vmem>>, vector<3x256xbf16>
    %30 = arith.mulf %29, %20 : vector<3x256xbf16>
    %c0_27 = arith.constant 0 : index
    %c128_28 = arith.constant 128 : index
    %31 = vector.load %arg19[%c0_27, %c128_28] : memref<3x512xbf16, #tpu.memory_space<vmem>>, vector<3x256xbf16>
    %c0_29 = arith.constant 0 : index
    %c129 = arith.constant 129 : index
    %32 = vector.load %arg19[%c0_29, %c129] : memref<3x512xbf16, #tpu.memory_space<vmem>>, vector<3x256xbf16>
    %33 = arith.mulf %32, %23 : vector<3x256xbf16>
    %c0_30 = arith.constant 0 : index
    %c143 = arith.constant 143 : index
    %34 = vector.load %arg19[%c0_30, %c143] : memref<3x512xbf16, #tpu.memory_space<vmem>>, vector<3x256xbf16>
    %35 = arith.mulf %34, %20 : vector<3x256xbf16>
    %c0_31 = arith.constant 0 : index
    %c144 = arith.constant 144 : index
    %36 = vector.load %arg19[%c0_31, %c144] : memref<3x512xbf16, #tpu.memory_space<vmem>>, vector<3x256xbf16>
    %c0_32 = arith.constant 0 : index
    %c145 = arith.constant 145 : index
    %37 = vector.load %arg19[%c0_32, %c145] : memref<3x512xbf16, #tpu.memory_space<vmem>>, vector<3x256xbf16>
    %38 = arith.mulf %37, %23 : vector<3x256xbf16>
    %39 = tpu.concatenate %25, %26, %28, %30, %31, %33, %35, %36, %38 in 0 : vector<3x256xbf16>, vector<3x256xbf16>, vector<3x256xbf16>, vector<3x256xbf16>, vector<3x256xbf16>, vector<3x256xbf16>, vector<3x256xbf16>, vector<3x256xbf16>, vector<3x256xbf16> -> vector<27x256xbf16>
    %c0_33 = arith.constant 0 : index
    %c0_34 = arith.constant 0 : index
    %40 = vector.load %arg4[%c0_33, %c0_34] : memref<8x27xbf16, #tpu.memory_space<vmem>>, vector<8x27xbf16>
    %cst_35 = arith.constant dense<0.000000e+00> : vector<8x256xf32>
    %41 = tpu.matmul %40, %39, %cst_35 {dimension_numbers = #tpu.dot_dimension_numbers<[1], [0], [0], [1], [0, 0, 1, 1], [], []>} : vector<8x27xbf16>, vector<27x256xbf16>, vector<8x256xf32> -> vector<8x256xf32>
    %c0_36 = arith.constant 0 : index
    %c0_37 = arith.constant 0 : index
    %42 = vector.load %arg5[%c0_36, %c0_37] : memref<8x1xf32, #tpu.memory_space<vmem>>, vector<8x1xf32>
    %43 = vector.broadcast %42 : vector<8x1xf32> to vector<8x256xf32>
    %44 = arith.addf %41, %43 : vector<8x256xf32>
    %45 = vector.extract_strided_slice %1 {offsets = [0, 0], sizes = [1, 256], strides = [1, 1]} : vector<5x256xbf16> to vector<1x256xbf16>
    %46 = vector.shape_cast %45 : vector<1x256xbf16> to vector<1x256xbf16>
    %47 = vector.broadcast %46 : vector<1x256xbf16> to vector<3x256xbf16>
    %48 = vector.extract_strided_slice %1 {offsets = [1, 0], sizes = [1, 256], strides = [1, 1]} : vector<5x256xbf16> to vector<1x256xbf16>
    %49 = vector.shape_cast %48 : vector<1x256xbf16> to vector<1x256xbf16>
    %50 = vector.broadcast %49 : vector<1x256xbf16> to vector<3x256xbf16>
    %51 = vector.extract_strided_slice %1 {offsets = [3, 0], sizes = [1, 256], strides = [1, 1]} : vector<5x256xbf16> to vector<1x256xbf16>
    %52 = vector.shape_cast %51 : vector<1x256xbf16> to vector<1x256xbf16>
    %53 = vector.broadcast %52 : vector<1x256xbf16> to vector<3x256xbf16>
    %54 = vector.extract_strided_slice %1 {offsets = [4, 0], sizes = [1, 256], strides = [1, 1]} : vector<5x256xbf16> to vector<1x256xbf16>
    %55 = vector.shape_cast %54 : vector<1x256xbf16> to vector<1x256xbf16>
    %56 = vector.broadcast %55 : vector<1x256xbf16> to vector<3x256xbf16>
    %c0_38 = arith.constant 0 : index
    %c94 = arith.constant 94 : index
    %57 = vector.load %arg19[%c0_38, %c94] : memref<3x512xbf16, #tpu.memory_space<vmem>>, vector<3x256xbf16>
    %58 = arith.mulf %57, %47 : vector<3x256xbf16>
    %c0_39 = arith.constant 0 : index
    %c95 = arith.constant 95 : index
    %59 = vector.load %arg19[%c0_39, %c95] : memref<3x512xbf16, #tpu.memory_space<vmem>>, vector<3x256xbf16>
    %60 = arith.mulf %59, %50 : vector<3x256xbf16>
    %c0_40 = arith.constant 0 : index
    %c96 = arith.constant 96 : index
    %61 = vector.load %arg19[%c0_40, %c96] : memref<3x512xbf16, #tpu.memory_space<vmem>>, vector<3x256xbf16>
    %c0_41 = arith.constant 0 : index
    %c97 = arith.constant 97 : index
    %62 = vector.load %arg19[%c0_41, %c97] : memref<3x512xbf16, #tpu.memory_space<vmem>>, vector<3x256xbf16>
    %63 = arith.mulf %62, %53 : vector<3x256xbf16>
    %c0_42 = arith.constant 0 : index
    %c98 = arith.constant 98 : index
    %64 = vector.load %arg19[%c0_42, %c98] : memref<3x512xbf16, #tpu.memory_space<vmem>>, vector<3x256xbf16>
    %65 = arith.mulf %64, %56 : vector<3x256xbf16>
    %c0_43 = arith.constant 0 : index
    %c110 = arith.constant 110 : index
    %66 = vector.load %arg19[%c0_43, %c110] : memref<3x512xbf16, #tpu.memory_space<vmem>>, vector<3x256xbf16>
    %67 = arith.mulf %66, %47 : vector<3x256xbf16>
    %c0_44 = arith.constant 0 : index
    %c111_45 = arith.constant 111 : index
    %68 = vector.load %arg19[%c0_44, %c111_45] : memref<3x512xbf16, #tpu.memory_space<vmem>>, vector<3x256xbf16>
    %69 = arith.mulf %68, %50 : vector<3x256xbf16>
    %c0_46 = arith.constant 0 : index
    %c112_47 = arith.constant 112 : index
    %70 = vector.load %arg19[%c0_46, %c112_47] : memref<3x512xbf16, #tpu.memory_space<vmem>>, vector<3x256xbf16>
    %c0_48 = arith.constant 0 : index
    %c113_49 = arith.constant 113 : index
    %71 = vector.load %arg19[%c0_48, %c113_49] : memref<3x512xbf16, #tpu.memory_space<vmem>>, vector<3x256xbf16>
    %72 = arith.mulf %71, %53 : vector<3x256xbf16>
    %c0_50 = arith.constant 0 : index
    %c114 = arith.constant 114 : index
    %73 = vector.load %arg19[%c0_50, %c114] : memref<3x512xbf16, #tpu.memory_space<vmem>>, vector<3x256xbf16>
    %74 = arith.mulf %73, %56 : vector<3x256xbf16>
    %c0_51 = arith.constant 0 : index
    %c126 = arith.constant 126 : index
    %75 = vector.load %arg19[%c0_51, %c126] : memref<3x512xbf16, #tpu.memory_space<vmem>>, vector<3x256xbf16>
    %76 = arith.mulf %75, %47 : vector<3x256xbf16>
    %c0_52 = arith.constant 0 : index
    %c127_53 = arith.constant 127 : index
    %77 = vector.load %arg19[%c0_52, %c127_53] : memref<3x512xbf16, #tpu.memory_space<vmem>>, vector<3x256xbf16>
    %78 = arith.mulf %77, %50 : vector<3x256xbf16>
    %c0_54 = arith.constant 0 : index
    %c128_55 = arith.constant 128 : index
    %79 = vector.load %arg19[%c0_54, %c128_55] : memref<3x512xbf16, #tpu.memory_space<vmem>>, vector<3x256xbf16>
    %c0_56 = arith.constant 0 : index
    %c129_57 = arith.constant 129 : index
    %80 = vector.load %arg19[%c0_56, %c129_57] : memref<3x512xbf16, #tpu.memory_space<vmem>>, vector<3x256xbf16>
    %81 = arith.mulf %80, %53 : vector<3x256xbf16>
    %c0_58 = arith.constant 0 : index
    %c130 = arith.constant 130 : index
    %82 = vector.load %arg19[%c0_58, %c130] : memref<3x512xbf16, #tpu.memory_space<vmem>>, vector<3x256xbf16>
    %83 = arith.mulf %82, %56 : vector<3x256xbf16>
    %c0_59 = arith.constant 0 : index
    %c142 = arith.constant 142 : index
    %84 = vector.load %arg19[%c0_59, %c142] : memref<3x512xbf16, #tpu.memory_space<vmem>>, vector<3x256xbf16>
    %85 = arith.mulf %84, %47 : vector<3x256xbf16>
    %c0_60 = arith.constant 0 : index
    %c143_61 = arith.constant 143 : index
    %86 = vector.load %arg19[%c0_60, %c143_61] : memref<3x512xbf16, #tpu.memory_space<vmem>>, vector<3x256xbf16>
    %87 = arith.mulf %86, %50 : vector<3x256xbf16>
    %c0_62 = arith.constant 0 : index
    %c144_63 = arith.constant 144 : index
    %88 = vector.load %arg19[%c0_62, %c144_63] : memref<3x512xbf16, #tpu.memory_space<vmem>>, vector<3x256xbf16>
    %c0_64 = arith.constant 0 : index
    %c145_65 = arith.constant 145 : index
    %89 = vector.load %arg19[%c0_64, %c145_65] : memref<3x512xbf16, #tpu.memory_space<vmem>>, vector<3x256xbf16>
    %90 = arith.mulf %89, %53 : vector<3x256xbf16>
    %c0_66 = arith.constant 0 : index
    %c146 = arith.constant 146 : index
    %91 = vector.load %arg19[%c0_66, %c146] : memref<3x512xbf16, #tpu.memory_space<vmem>>, vector<3x256xbf16>
    %92 = arith.mulf %91, %56 : vector<3x256xbf16>
    %c0_67 = arith.constant 0 : index
    %c158 = arith.constant 158 : index
    %93 = vector.load %arg19[%c0_67, %c158] : memref<3x512xbf16, #tpu.memory_space<vmem>>, vector<3x256xbf16>
    %94 = arith.mulf %93, %47 : vector<3x256xbf16>
    %c0_68 = arith.constant 0 : index
    %c159 = arith.constant 159 : index
    %95 = vector.load %arg19[%c0_68, %c159] : memref<3x512xbf16, #tpu.memory_space<vmem>>, vector<3x256xbf16>
    %96 = arith.mulf %95, %50 : vector<3x256xbf16>
    %c0_69 = arith.constant 0 : index
    %c160 = arith.constant 160 : index
    %97 = vector.load %arg19[%c0_69, %c160] : memref<3x512xbf16, #tpu.memory_space<vmem>>, vector<3x256xbf16>
    %c0_70 = arith.constant 0 : index
    %c161 = arith.constant 161 : index
    %98 = vector.load %arg19[%c0_70, %c161] : memref<3x512xbf16, #tpu.memory_space<vmem>>, vector<3x256xbf16>
    %99 = arith.mulf %98, %53 : vector<3x256xbf16>
    %c0_71 = arith.constant 0 : index
    %c162 = arith.constant 162 : index
    %100 = vector.load %arg19[%c0_71, %c162] : memref<3x512xbf16, #tpu.memory_space<vmem>>, vector<3x256xbf16>
    %101 = arith.mulf %100, %56 : vector<3x256xbf16>
    %102 = tpu.concatenate %58, %60, %61, %63, %65, %67, %69, %70, %72, %74, %76, %78, %79, %81, %83, %85 in 0 : vector<3x256xbf16>, vector<3x256xbf16>, vector<3x256xbf16>, vector<3x256xbf16>, vector<3x256xbf16>, vector<3x256xbf16>, vector<3x256xbf16>, vector<3x256xbf16>, vector<3x256xbf16>, vector<3x256xbf16>, vector<3x256xbf16>, vector<3x256xbf16>, vector<3x256xbf16>, vector<3x256xbf16>, vector<3x256xbf16>, vector<3x256xbf16> -> vector<48x256xbf16>
    %103 = tpu.concatenate %87, %88, %90, %92, %94, %96, %97, %99, %101 in 0 : vector<3x256xbf16>, vector<3x256xbf16>, vector<3x256xbf16>, vector<3x256xbf16>, vector<3x256xbf16>, vector<3x256xbf16>, vector<3x256xbf16>, vector<3x256xbf16>, vector<3x256xbf16> -> vector<27x256xbf16>
    %104 = tpu.concatenate %102, %103 in 0 : vector<48x256xbf16>, vector<27x256xbf16> -> vector<75x256xbf16>
    %c0_72 = arith.constant 0 : index
    %c0_73 = arith.constant 0 : index
    %105 = vector.load %arg16[%c0_72, %c0_73] : memref<12x75xbf16, #tpu.memory_space<vmem>>, vector<12x75xbf16>
    %cst_74 = arith.constant dense<0.000000e+00> : vector<12x256xf32>
    %106 = tpu.matmul %105, %104, %cst_74 {dimension_numbers = #tpu.dot_dimension_numbers<[1], [0], [0], [1], [0, 0, 1, 1], [], []>} : vector<12x75xbf16>, vector<75x256xbf16>, vector<12x256xf32> -> vector<12x256xf32>
    %c0_75 = arith.constant 0 : index
    %c0_76 = arith.constant 0 : index
    %107 = vector.load %arg17[%c0_75, %c0_76] : memref<12x1xf32, #tpu.memory_space<vmem>>, vector<12x1xf32>
    %108 = vector.broadcast %107 : vector<12x1xf32> to vector<12x256xf32>
    %109 = arith.addf %106, %108 : vector<12x256xf32>
    %110 = arith.truncf %44 : vector<8x256xf32> to vector<8x256xbf16>
    %c0_77 = arith.constant 0 : index
    %c128_78 = arith.constant 128 : index
    %111 = vector.load %arg20[%c0_77, %c128_78] : memref<8x512xbf16, #tpu.memory_space<vmem>>, vector<8x256xbf16>
    tpu.vector_store %arg20[%c0_77, %c128_78], %110 {strides = array<i32>} : memref<8x512xbf16, #tpu.memory_space<vmem>>, vector<8x256xbf16>,
    %112 = vector.extract_strided_slice %0 {offsets = [0, 0], sizes = [1, 256], strides = [1, 1]} : vector<3x256xbf16> to vector<1x256xbf16>
    %113 = vector.shape_cast %112 : vector<1x256xbf16> to vector<1x256xbf16>
    %114 = vector.broadcast %113 : vector<1x256xbf16> to vector<8x256xbf16>
    %115 = vector.extract_strided_slice %0 {offsets = [2, 0], sizes = [1, 256], strides = [1, 1]} : vector<3x256xbf16> to vector<1x256xbf16>
    %116 = vector.shape_cast %115 : vector<1x256xbf16> to vector<1x256xbf16>
    %117 = vector.broadcast %116 : vector<1x256xbf16> to vector<8x256xbf16>
    %c0_79 = arith.constant 0 : index
    %c111_80 = arith.constant 111 : index
    %118 = vector.load %arg20[%c0_79, %c111_80] : memref<8x512xbf16, #tpu.memory_space<vmem>>, vector<8x256xbf16>
    %119 = arith.mulf %118, %114 : vector<8x256xbf16>
    %c0_81 = arith.constant 0 : index
    %c112_82 = arith.constant 112 : index
    %120 = vector.load %arg20[%c0_81, %c112_82] : memref<8x512xbf16, #tpu.memory_space<vmem>>, vector<8x256xbf16>
    %c0_83 = arith.constant 0 : index
    %c113_84 = arith.constant 113 : index
    %121 = vector.load %arg20[%c0_83, %c113_84] : memref<8x512xbf16, #tpu.memory_space<vmem>>, vector<8x256xbf16>
    %122 = arith.mulf %121, %117 : vector<8x256xbf16>
    %c0_85 = arith.constant 0 : index
    %c127_86 = arith.constant 127 : index
    %123 = vector.load %arg20[%c0_85, %c127_86] : memref<8x512xbf16, #tpu.memory_space<vmem>>, vector<8x256xbf16>
    %124 = arith.mulf %123, %114 : vector<8x256xbf16>
    %c0_87 = arith.constant 0 : index
    %c128_88 = arith.constant 128 : index
    %125 = vector.load %arg20[%c0_87, %c128_88] : memref<8x512xbf16, #tpu.memory_space<vmem>>, vector<8x256xbf16>
    %c0_89 = arith.constant 0 : index
    %c129_90 = arith.constant 129 : index
    %126 = vector.load %arg20[%c0_89, %c129_90] : memref<8x512xbf16, #tpu.memory_space<vmem>>, vector<8x256xbf16>
    %127 = arith.mulf %126, %117 : vector<8x256xbf16>
    %c0_91 = arith.constant 0 : index
    %c143_92 = arith.constant 143 : index
    %128 = vector.load %arg20[%c0_91, %c143_92] : memref<8x512xbf16, #tpu.memory_space<vmem>>, vector<8x256xbf16>
    %129 = arith.mulf %128, %114 : vector<8x256xbf16>
    %c0_93 = arith.constant 0 : index
    %c144_94 = arith.constant 144 : index
    %130 = vector.load %arg20[%c0_93, %c144_94] : memref<8x512xbf16, #tpu.memory_space<vmem>>, vector<8x256xbf16>
    %c0_95 = arith.constant 0 : index
    %c145_96 = arith.constant 145 : index
    %131 = vector.load %arg20[%c0_95, %c145_96] : memref<8x512xbf16, #tpu.memory_space<vmem>>, vector<8x256xbf16>
    %132 = arith.mulf %131, %117 : vector<8x256xbf16>
    %133 = tpu.concatenate %119, %120, %122, %124, %125, %127, %129, %130, %132 in 0 : vector<8x256xbf16>, vector<8x256xbf16>, vector<8x256xbf16>, vector<8x256xbf16>, vector<8x256xbf16>, vector<8x256xbf16>, vector<8x256xbf16>, vector<8x256xbf16>, vector<8x256xbf16> -> vector<72x256xbf16>
    %c0_97 = arith.constant 0 : index
    %c0_98 = arith.constant 0 : index
    %134 = vector.load %arg6[%c0_97, %c0_98] : memref<32x72xbf16, #tpu.memory_space<vmem>>, vector<32x72xbf16>
    %cst_99 = arith.constant dense<0.000000e+00> : vector<32x256xf32>
    %135 = tpu.matmul %134, %133, %cst_99 {dimension_numbers = #tpu.dot_dimension_numbers<[1], [0], [0], [1], [0, 0, 1, 1], [], []>} : vector<32x72xbf16>, vector<72x256xbf16>, vector<32x256xf32> -> vector<32x256xf32>
    %c0_100 = arith.constant 0 : index
    %c0_101 = arith.constant 0 : index
    %136 = vector.load %arg7[%c0_100, %c0_101] : memref<32x1xf32, #tpu.memory_space<vmem>>, vector<32x1xf32>
    %137 = vector.broadcast %136 : vector<32x1xf32> to vector<32x256xf32>
    %138 = arith.addf %135, %137 : vector<32x256xf32>
    %cst_102 = arith.constant 0.000000e+00 : f32
    %139 = vector.broadcast %cst_102 : f32 to vector<32x256xf32>
    %140 = arith.maximumf %138, %139 : vector<32x256xf32>
    %141 = arith.truncf %140 : vector<32x256xf32> to vector<32x256xbf16>
    %c0_103 = arith.constant 0 : index
    %c128_104 = arith.constant 128 : index
    %142 = vector.load %arg21[%c0_103, %c128_104] : memref<32x512xbf16, #tpu.memory_space<vmem>>, vector<32x256xbf16>
    tpu.vector_store %arg21[%c0_103, %c128_104], %141 {strides = array<i32>} : memref<32x512xbf16, #tpu.memory_space<vmem>>, vector<32x256xbf16>,
    %143 = vector.extract_strided_slice %0 {offsets = [0, 0], sizes = [1, 256], strides = [1, 1]} : vector<3x256xbf16> to vector<1x256xbf16>
    %144 = vector.shape_cast %143 : vector<1x256xbf16> to vector<1x256xbf16>
    %145 = vector.broadcast %144 : vector<1x256xbf16> to vector<32x256xbf16>
    %146 = vector.extract_strided_slice %0 {offsets = [2, 0], sizes = [1, 256], strides = [1, 1]} : vector<3x256xbf16> to vector<1x256xbf16>
    %147 = vector.shape_cast %146 : vector<1x256xbf16> to vector<1x256xbf16>
    %148 = vector.broadcast %147 : vector<1x256xbf16> to vector<32x256xbf16>
    %c0_105 = arith.constant 0 : index
    %c111_106 = arith.constant 111 : index
    %149 = vector.load %arg21[%c0_105, %c111_106] : memref<32x512xbf16, #tpu.memory_space<vmem>>, vector<32x256xbf16>
    %150 = arith.mulf %149, %145 : vector<32x256xbf16>
    %c0_107 = arith.constant 0 : index
    %c112_108 = arith.constant 112 : index
    %151 = vector.load %arg21[%c0_107, %c112_108] : memref<32x512xbf16, #tpu.memory_space<vmem>>, vector<32x256xbf16>
    %c0_109 = arith.constant 0 : index
    %c113_110 = arith.constant 113 : index
    %152 = vector.load %arg21[%c0_109, %c113_110] : memref<32x512xbf16, #tpu.memory_space<vmem>>, vector<32x256xbf16>
    %153 = arith.mulf %152, %148 : vector<32x256xbf16>
    %c0_111 = arith.constant 0 : index
    %c127_112 = arith.constant 127 : index
    %154 = vector.load %arg21[%c0_111, %c127_112] : memref<32x512xbf16, #tpu.memory_space<vmem>>, vector<32x256xbf16>
    %155 = arith.mulf %154, %145 : vector<32x256xbf16>
    %c0_113 = arith.constant 0 : index
    %c128_114 = arith.constant 128 : index
    %156 = vector.load %arg21[%c0_113, %c128_114] : memref<32x512xbf16, #tpu.memory_space<vmem>>, vector<32x256xbf16>
    %c0_115 = arith.constant 0 : index
    %c129_116 = arith.constant 129 : index
    %157 = vector.load %arg21[%c0_115, %c129_116] : memref<32x512xbf16, #tpu.memory_space<vmem>>, vector<32x256xbf16>
    %158 = arith.mulf %157, %148 : vector<32x256xbf16>
    %c0_117 = arith.constant 0 : index
    %c143_118 = arith.constant 143 : index
    %159 = vector.load %arg21[%c0_117, %c143_118] : memref<32x512xbf16, #tpu.memory_space<vmem>>, vector<32x256xbf16>
    %160 = arith.mulf %159, %145 : vector<32x256xbf16>
    %c0_119 = arith.constant 0 : index
    %c144_120 = arith.constant 144 : index
    %161 = vector.load %arg21[%c0_119, %c144_120] : memref<32x512xbf16, #tpu.memory_space<vmem>>, vector<32x256xbf16>
    %c0_121 = arith.constant 0 : index
    %c145_122 = arith.constant 145 : index
    %162 = vector.load %arg21[%c0_121, %c145_122] : memref<32x512xbf16, #tpu.memory_space<vmem>>, vector<32x256xbf16>
    %163 = arith.mulf %162, %148 : vector<32x256xbf16>
    %164 = tpu.concatenate %150, %151, %153, %155, %156, %158, %160, %161, %163 in 0 : vector<32x256xbf16>, vector<32x256xbf16>, vector<32x256xbf16>, vector<32x256xbf16>, vector<32x256xbf16>, vector<32x256xbf16>, vector<32x256xbf16>, vector<32x256xbf16>, vector<32x256xbf16> -> vector<288x256xbf16>
    %c0_123 = arith.constant 0 : index
    %c0_124 = arith.constant 0 : index
    %165 = vector.load %arg8[%c0_123, %c0_124] : memref<8x288xbf16, #tpu.memory_space<vmem>>, vector<8x288xbf16>
    %cst_125 = arith.constant dense<0.000000e+00> : vector<8x256xf32>
    %166 = tpu.matmul %165, %164, %cst_125 {dimension_numbers = #tpu.dot_dimension_numbers<[1], [0], [0], [1], [0, 0, 1, 1], [], []>} : vector<8x288xbf16>, vector<288x256xbf16>, vector<8x256xf32> -> vector<8x256xf32>
    %c0_126 = arith.constant 0 : index
    %c0_127 = arith.constant 0 : index
    %167 = vector.load %arg9[%c0_126, %c0_127] : memref<8x1xf32, #tpu.memory_space<vmem>>, vector<8x1xf32>
    %168 = vector.broadcast %167 : vector<8x1xf32> to vector<8x256xf32>
    %169 = arith.addf %166, %168 : vector<8x256xf32>
    %170 = arith.addf %169, %44 : vector<8x256xf32>
    %171 = arith.truncf %170 : vector<8x256xf32> to vector<8x256xbf16>
    %c0_128 = arith.constant 0 : index
    %c128_129 = arith.constant 128 : index
    %172 = vector.load %arg20[%c0_128, %c128_129] : memref<8x512xbf16, #tpu.memory_space<vmem>>, vector<8x256xbf16>
    tpu.vector_store %arg20[%c0_128, %c128_129], %171 {strides = array<i32>} : memref<8x512xbf16, #tpu.memory_space<vmem>>, vector<8x256xbf16>,
    %173 = vector.extract_strided_slice %0 {offsets = [0, 0], sizes = [1, 256], strides = [1, 1]} : vector<3x256xbf16> to vector<1x256xbf16>
    %174 = vector.shape_cast %173 : vector<1x256xbf16> to vector<1x256xbf16>
    %175 = vector.broadcast %174 : vector<1x256xbf16> to vector<8x256xbf16>
    %176 = vector.extract_strided_slice %0 {offsets = [2, 0], sizes = [1, 256], strides = [1, 1]} : vector<3x256xbf16> to vector<1x256xbf16>
    %177 = vector.shape_cast %176 : vector<1x256xbf16> to vector<1x256xbf16>
    %178 = vector.broadcast %177 : vector<1x256xbf16> to vector<8x256xbf16>
    %c0_130 = arith.constant 0 : index
    %c111_131 = arith.constant 111 : index
    %179 = vector.load %arg20[%c0_130, %c111_131] : memref<8x512xbf16, #tpu.memory_space<vmem>>, vector<8x256xbf16>
    %180 = arith.mulf %179, %175 : vector<8x256xbf16>
    %c0_132 = arith.constant 0 : index
    %c112_133 = arith.constant 112 : index
    %181 = vector.load %arg20[%c0_132, %c112_133] : memref<8x512xbf16, #tpu.memory_space<vmem>>, vector<8x256xbf16>
    %c0_134 = arith.constant 0 : index
    %c113_135 = arith.constant 113 : index
    %182 = vector.load %arg20[%c0_134, %c113_135] : memref<8x512xbf16, #tpu.memory_space<vmem>>, vector<8x256xbf16>
    %183 = arith.mulf %182, %178 : vector<8x256xbf16>
    %c0_136 = arith.constant 0 : index
    %c127_137 = arith.constant 127 : index
    %184 = vector.load %arg20[%c0_136, %c127_137] : memref<8x512xbf16, #tpu.memory_space<vmem>>, vector<8x256xbf16>
    %185 = arith.mulf %184, %175 : vector<8x256xbf16>
    %c0_138 = arith.constant 0 : index
    %c128_139 = arith.constant 128 : index
    %186 = vector.load %arg20[%c0_138, %c128_139] : memref<8x512xbf16, #tpu.memory_space<vmem>>, vector<8x256xbf16>
    %c0_140 = arith.constant 0 : index
    %c129_141 = arith.constant 129 : index
    %187 = vector.load %arg20[%c0_140, %c129_141] : memref<8x512xbf16, #tpu.memory_space<vmem>>, vector<8x256xbf16>
    %188 = arith.mulf %187, %178 : vector<8x256xbf16>
    %c0_142 = arith.constant 0 : index
    %c143_143 = arith.constant 143 : index
    %189 = vector.load %arg20[%c0_142, %c143_143] : memref<8x512xbf16, #tpu.memory_space<vmem>>, vector<8x256xbf16>
    %190 = arith.mulf %189, %175 : vector<8x256xbf16>
    %c0_144 = arith.constant 0 : index
    %c144_145 = arith.constant 144 : index
    %191 = vector.load %arg20[%c0_144, %c144_145] : memref<8x512xbf16, #tpu.memory_space<vmem>>, vector<8x256xbf16>
    %c0_146 = arith.constant 0 : index
    %c145_147 = arith.constant 145 : index
    %192 = vector.load %arg20[%c0_146, %c145_147] : memref<8x512xbf16, #tpu.memory_space<vmem>>, vector<8x256xbf16>
    %193 = arith.mulf %192, %178 : vector<8x256xbf16>
    %194 = tpu.concatenate %180, %181, %183, %185, %186, %188, %190, %191, %193 in 0 : vector<8x256xbf16>, vector<8x256xbf16>, vector<8x256xbf16>, vector<8x256xbf16>, vector<8x256xbf16>, vector<8x256xbf16>, vector<8x256xbf16>, vector<8x256xbf16>, vector<8x256xbf16> -> vector<72x256xbf16>
    %c0_148 = arith.constant 0 : index
    %c0_149 = arith.constant 0 : index
    %195 = vector.load %arg10[%c0_148, %c0_149] : memref<32x72xbf16, #tpu.memory_space<vmem>>, vector<32x72xbf16>
    %cst_150 = arith.constant dense<0.000000e+00> : vector<32x256xf32>
    %196 = tpu.matmul %195, %194, %cst_150 {dimension_numbers = #tpu.dot_dimension_numbers<[1], [0], [0], [1], [0, 0, 1, 1], [], []>} : vector<32x72xbf16>, vector<72x256xbf16>, vector<32x256xf32> -> vector<32x256xf32>
    %c0_151 = arith.constant 0 : index
    %c0_152 = arith.constant 0 : index
    %197 = vector.load %arg11[%c0_151, %c0_152] : memref<32x1xf32, #tpu.memory_space<vmem>>, vector<32x1xf32>
    %198 = vector.broadcast %197 : vector<32x1xf32> to vector<32x256xf32>
    %199 = arith.addf %196, %198 : vector<32x256xf32>
    %cst_153 = arith.constant 0.000000e+00 : f32
    %200 = vector.broadcast %cst_153 : f32 to vector<32x256xf32>
    %201 = arith.maximumf %199, %200 : vector<32x256xf32>
    %202 = arith.truncf %201 : vector<32x256xf32> to vector<32x256xbf16>
    %c0_154 = arith.constant 0 : index
    %c128_155 = arith.constant 128 : index
    %203 = vector.load %arg21[%c0_154, %c128_155] : memref<32x512xbf16, #tpu.memory_space<vmem>>, vector<32x256xbf16>
    tpu.vector_store %arg21[%c0_154, %c128_155], %202 {strides = array<i32>} : memref<32x512xbf16, #tpu.memory_space<vmem>>, vector<32x256xbf16>,
    %204 = vector.extract_strided_slice %0 {offsets = [0, 0], sizes = [1, 256], strides = [1, 1]} : vector<3x256xbf16> to vector<1x256xbf16>
    %205 = vector.shape_cast %204 : vector<1x256xbf16> to vector<1x256xbf16>
    %206 = vector.broadcast %205 : vector<1x256xbf16> to vector<32x256xbf16>
    %207 = vector.extract_strided_slice %0 {offsets = [2, 0], sizes = [1, 256], strides = [1, 1]} : vector<3x256xbf16> to vector<1x256xbf16>
    %208 = vector.shape_cast %207 : vector<1x256xbf16> to vector<1x256xbf16>
    %209 = vector.broadcast %208 : vector<1x256xbf16> to vector<32x256xbf16>
    %c0_156 = arith.constant 0 : index
    %c111_157 = arith.constant 111 : index
    %210 = vector.load %arg21[%c0_156, %c111_157] : memref<32x512xbf16, #tpu.memory_space<vmem>>, vector<32x256xbf16>
    %211 = arith.mulf %210, %206 : vector<32x256xbf16>
    %c0_158 = arith.constant 0 : index
    %c112_159 = arith.constant 112 : index
    %212 = vector.load %arg21[%c0_158, %c112_159] : memref<32x512xbf16, #tpu.memory_space<vmem>>, vector<32x256xbf16>
    %c0_160 = arith.constant 0 : index
    %c113_161 = arith.constant 113 : index
    %213 = vector.load %arg21[%c0_160, %c113_161] : memref<32x512xbf16, #tpu.memory_space<vmem>>, vector<32x256xbf16>
    %214 = arith.mulf %213, %209 : vector<32x256xbf16>
    %c0_162 = arith.constant 0 : index
    %c127_163 = arith.constant 127 : index
    %215 = vector.load %arg21[%c0_162, %c127_163] : memref<32x512xbf16, #tpu.memory_space<vmem>>, vector<32x256xbf16>
    %216 = arith.mulf %215, %206 : vector<32x256xbf16>
    %c0_164 = arith.constant 0 : index
    %c128_165 = arith.constant 128 : index
    %217 = vector.load %arg21[%c0_164, %c128_165] : memref<32x512xbf16, #tpu.memory_space<vmem>>, vector<32x256xbf16>
    %c0_166 = arith.constant 0 : index
    %c129_167 = arith.constant 129 : index
    %218 = vector.load %arg21[%c0_166, %c129_167] : memref<32x512xbf16, #tpu.memory_space<vmem>>, vector<32x256xbf16>
    %219 = arith.mulf %218, %209 : vector<32x256xbf16>
    %c0_168 = arith.constant 0 : index
    %c143_169 = arith.constant 143 : index
    %220 = vector.load %arg21[%c0_168, %c143_169] : memref<32x512xbf16, #tpu.memory_space<vmem>>, vector<32x256xbf16>
    %221 = arith.mulf %220, %206 : vector<32x256xbf16>
    %c0_170 = arith.constant 0 : index
    %c144_171 = arith.constant 144 : index
    %222 = vector.load %arg21[%c0_170, %c144_171] : memref<32x512xbf16, #tpu.memory_space<vmem>>, vector<32x256xbf16>
    %c0_172 = arith.constant 0 : index
    %c145_173 = arith.constant 145 : index
    %223 = vector.load %arg21[%c0_172, %c145_173] : memref<32x512xbf16, #tpu.memory_space<vmem>>, vector<32x256xbf16>
    %224 = arith.mulf %223, %209 : vector<32x256xbf16>
    %225 = tpu.concatenate %211, %212, %214, %216, %217, %219, %221, %222, %224 in 0 : vector<32x256xbf16>, vector<32x256xbf16>, vector<32x256xbf16>, vector<32x256xbf16>, vector<32x256xbf16>, vector<32x256xbf16>, vector<32x256xbf16>, vector<32x256xbf16>, vector<32x256xbf16> -> vector<288x256xbf16>
    %c0_174 = arith.constant 0 : index
    %c0_175 = arith.constant 0 : index
    %226 = vector.load %arg12[%c0_174, %c0_175] : memref<8x288xbf16, #tpu.memory_space<vmem>>, vector<8x288xbf16>
    %cst_176 = arith.constant dense<0.000000e+00> : vector<8x256xf32>
    %227 = tpu.matmul %226, %225, %cst_176 {dimension_numbers = #tpu.dot_dimension_numbers<[1], [0], [0], [1], [0, 0, 1, 1], [], []>} : vector<8x288xbf16>, vector<288x256xbf16>, vector<8x256xf32> -> vector<8x256xf32>
    %c0_177 = arith.constant 0 : index
    %c0_178 = arith.constant 0 : index
    %228 = vector.load %arg13[%c0_177, %c0_178] : memref<8x1xf32, #tpu.memory_space<vmem>>, vector<8x1xf32>
    %229 = vector.broadcast %228 : vector<8x1xf32> to vector<8x256xf32>
    %230 = arith.addf %227, %229 : vector<8x256xf32>
    %231 = arith.addf %230, %170 : vector<8x256xf32>
    %232 = arith.truncf %231 : vector<8x256xf32> to vector<8x256xbf16>
    %c0_179 = arith.constant 0 : index
    %c128_180 = arith.constant 128 : index
    %233 = vector.load %arg20[%c0_179, %c128_180] : memref<8x512xbf16, #tpu.memory_space<vmem>>, vector<8x256xbf16>
    tpu.vector_store %arg20[%c0_179, %c128_180], %232 {strides = array<i32>} : memref<8x512xbf16, #tpu.memory_space<vmem>>, vector<8x256xbf16>,
    %234 = vector.extract_strided_slice %0 {offsets = [0, 0], sizes = [1, 256], strides = [1, 1]} : vector<3x256xbf16> to vector<1x256xbf16>
    %235 = vector.shape_cast %234 : vector<1x256xbf16> to vector<1x256xbf16>
    %236 = vector.broadcast %235 : vector<1x256xbf16> to vector<8x256xbf16>
    %237 = vector.extract_strided_slice %0 {offsets = [2, 0], sizes = [1, 256], strides = [1, 1]} : vector<3x256xbf16> to vector<1x256xbf16>
    %238 = vector.shape_cast %237 : vector<1x256xbf16> to vector<1x256xbf16>
    %239 = vector.broadcast %238 : vector<1x256xbf16> to vector<8x256xbf16>
    %c0_181 = arith.constant 0 : index
    %c111_182 = arith.constant 111 : index
    %240 = vector.load %arg20[%c0_181, %c111_182] : memref<8x512xbf16, #tpu.memory_space<vmem>>, vector<8x256xbf16>
    %241 = arith.mulf %240, %236 : vector<8x256xbf16>
    %c0_183 = arith.constant 0 : index
    %c112_184 = arith.constant 112 : index
    %242 = vector.load %arg20[%c0_183, %c112_184] : memref<8x512xbf16, #tpu.memory_space<vmem>>, vector<8x256xbf16>
    %c0_185 = arith.constant 0 : index
    %c113_186 = arith.constant 113 : index
    %243 = vector.load %arg20[%c0_185, %c113_186] : memref<8x512xbf16, #tpu.memory_space<vmem>>, vector<8x256xbf16>
    %244 = arith.mulf %243, %239 : vector<8x256xbf16>
    %c0_187 = arith.constant 0 : index
    %c127_188 = arith.constant 127 : index
    %245 = vector.load %arg20[%c0_187, %c127_188] : memref<8x512xbf16, #tpu.memory_space<vmem>>, vector<8x256xbf16>
    %246 = arith.mulf %245, %236 : vector<8x256xbf16>
    %c0_189 = arith.constant 0 : index
    %c128_190 = arith.constant 128 : index
    %247 = vector.load %arg20[%c0_189, %c128_190] : memref<8x512xbf16, #tpu.memory_space<vmem>>, vector<8x256xbf16>
    %c0_191 = arith.constant 0 : index
    %c129_192 = arith.constant 129 : index
    %248 = vector.load %arg20[%c0_191, %c129_192] : memref<8x512xbf16, #tpu.memory_space<vmem>>, vector<8x256xbf16>
    %249 = arith.mulf %248, %239 : vector<8x256xbf16>
    %c0_193 = arith.constant 0 : index
    %c143_194 = arith.constant 143 : index
    %250 = vector.load %arg20[%c0_193, %c143_194] : memref<8x512xbf16, #tpu.memory_space<vmem>>, vector<8x256xbf16>
    %251 = arith.mulf %250, %236 : vector<8x256xbf16>
    %c0_195 = arith.constant 0 : index
    %c144_196 = arith.constant 144 : index
    %252 = vector.load %arg20[%c0_195, %c144_196] : memref<8x512xbf16, #tpu.memory_space<vmem>>, vector<8x256xbf16>
    %c0_197 = arith.constant 0 : index
    %c145_198 = arith.constant 145 : index
    %253 = vector.load %arg20[%c0_197, %c145_198] : memref<8x512xbf16, #tpu.memory_space<vmem>>, vector<8x256xbf16>
    %254 = arith.mulf %253, %239 : vector<8x256xbf16>
    %255 = tpu.concatenate %241, %242, %244, %246, %247, %249, %251, %252, %254 in 0 : vector<8x256xbf16>, vector<8x256xbf16>, vector<8x256xbf16>, vector<8x256xbf16>, vector<8x256xbf16>, vector<8x256xbf16>, vector<8x256xbf16>, vector<8x256xbf16>, vector<8x256xbf16> -> vector<72x256xbf16>
    %c0_199 = arith.constant 0 : index
    %c0_200 = arith.constant 0 : index
    %256 = vector.load %arg14[%c0_199, %c0_200] : memref<12x72xbf16, #tpu.memory_space<vmem>>, vector<12x72xbf16>
    %cst_201 = arith.constant dense<0.000000e+00> : vector<12x256xf32>
    %257 = tpu.matmul %256, %255, %cst_201 {dimension_numbers = #tpu.dot_dimension_numbers<[1], [0], [0], [1], [0, 0, 1, 1], [], []>} : vector<12x72xbf16>, vector<72x256xbf16>, vector<12x256xf32> -> vector<12x256xf32>
    %c0_202 = arith.constant 0 : index
    %c0_203 = arith.constant 0 : index
    %258 = vector.load %arg15[%c0_202, %c0_203] : memref<12x1xf32, #tpu.memory_space<vmem>>, vector<12x1xf32>
    %259 = vector.broadcast %258 : vector<12x1xf32> to vector<12x256xf32>
    %260 = arith.addf %257, %259 : vector<12x256xf32>
    %261 = arith.addf %260, %109 : vector<12x256xf32>
    %c0_204 = arith.constant 0 : index
    %c0_205 = arith.constant 0 : index
    %c0_206 = arith.constant 0 : index
    %262 = vector.load %arg18[%c0_204, %c0_205, %c0_206] : memref<1x12x256xf32, #tpu.memory_space<vmem>>, vector<1x12x256xf32>
    %263 = vector.shape_cast %262 : vector<1x12x256xf32> to vector<12x256xf32>
    %264 = vector.shape_cast %261 : vector<12x256xf32> to vector<1x12x256xf32>
    tpu.vector_store %arg18[%c0_204, %c0_205, %c0_206], %264 {strides = array<i32>} : memref<1x12x256xf32, #tpu.memory_space<vmem>>, vector<1x12x256xf32>,
    return
  }
  func.func @transform_0(%arg0: i32) -> (i32, i32, i32) {
    %c0_i32 = arith.constant 0 : i32
    %c0_i32_0 = arith.constant 0 : i32
    %c0_i32_1 = arith.constant 0 : i32
    return %arg0, %c0_i32, %c0_i32_0 : i32, i32, i32
  }
  func.func @transform_1(%arg0: i32) -> (i32, i32) {
    %c0_i32 = arith.constant 0 : i32
    %c0_i32_0 = arith.constant 0 : i32
    %c0_i32_1 = arith.constant 0 : i32
    return %c0_i32, %c0_i32_0 : i32, i32
  }
  func.func @transform_2(%arg0: i32) -> (i32, i32) {
    %c0_i32 = arith.constant 0 : i32
    %c0_i32_0 = arith.constant 0 : i32
    %c0_i32_1 = arith.constant 0 : i32
    return %c0_i32, %c0_i32_0 : i32, i32
  }
  func.func @transform_3(%arg0: i32) -> (i32, i32) {
    %c0_i32 = arith.constant 0 : i32
    %c0_i32_0 = arith.constant 0 : i32
    %c0_i32_1 = arith.constant 0 : i32
    return %c0_i32, %c0_i32_0 : i32, i32
  }
  func.func @transform_4(%arg0: i32) -> (i32, i32) {
    %c0_i32 = arith.constant 0 : i32
    %c0_i32_0 = arith.constant 0 : i32
    %c0_i32_1 = arith.constant 0 : i32
    return %c0_i32, %c0_i32_0 : i32, i32
  }
  func.func @transform_5(%arg0: i32) -> (i32, i32) {
    %c0_i32 = arith.constant 0 : i32
    %c0_i32_0 = arith.constant 0 : i32
    %c0_i32_1 = arith.constant 0 : i32
    return %c0_i32, %c0_i32_0 : i32, i32
  }
  func.func @transform_6(%arg0: i32) -> (i32, i32) {
    %c0_i32 = arith.constant 0 : i32
    %c0_i32_0 = arith.constant 0 : i32
    %c0_i32_1 = arith.constant 0 : i32
    return %c0_i32, %c0_i32_0 : i32, i32
  }
  func.func @transform_7(%arg0: i32) -> (i32, i32) {
    %c0_i32 = arith.constant 0 : i32
    %c0_i32_0 = arith.constant 0 : i32
    %c0_i32_1 = arith.constant 0 : i32
    return %c0_i32, %c0_i32_0 : i32, i32
  }
  func.func @transform_8(%arg0: i32) -> (i32, i32) {
    %c0_i32 = arith.constant 0 : i32
    %c0_i32_0 = arith.constant 0 : i32
    %c0_i32_1 = arith.constant 0 : i32
    return %c0_i32, %c0_i32_0 : i32, i32
  }
  func.func @transform_9(%arg0: i32) -> (i32, i32) {
    %c0_i32 = arith.constant 0 : i32
    %c0_i32_0 = arith.constant 0 : i32
    %c0_i32_1 = arith.constant 0 : i32
    return %c0_i32, %c0_i32_0 : i32, i32
  }
  func.func @transform_10(%arg0: i32) -> (i32, i32) {
    %c0_i32 = arith.constant 0 : i32
    %c0_i32_0 = arith.constant 0 : i32
    %c0_i32_1 = arith.constant 0 : i32
    return %c0_i32, %c0_i32_0 : i32, i32
  }
  func.func @transform_11(%arg0: i32) -> (i32, i32) {
    %c0_i32 = arith.constant 0 : i32
    %c0_i32_0 = arith.constant 0 : i32
    %c0_i32_1 = arith.constant 0 : i32
    return %c0_i32, %c0_i32_0 : i32, i32
  }
  func.func @transform_12(%arg0: i32) -> (i32, i32) {
    %c0_i32 = arith.constant 0 : i32
    %c0_i32_0 = arith.constant 0 : i32
    %c0_i32_1 = arith.constant 0 : i32
    return %c0_i32, %c0_i32_0 : i32, i32
  }
  func.func @transform_13(%arg0: i32) -> (i32, i32) {
    %c0_i32 = arith.constant 0 : i32
    %c0_i32_0 = arith.constant 0 : i32
    %c0_i32_1 = arith.constant 0 : i32
    return %c0_i32, %c0_i32_0 : i32, i32
  }
  func.func @transform_14(%arg0: i32) -> (i32, i32) {
    %c0_i32 = arith.constant 0 : i32
    %c0_i32_0 = arith.constant 0 : i32
    %c0_i32_1 = arith.constant 0 : i32
    return %c0_i32, %c0_i32_0 : i32, i32
  }
  func.func @transform_15(%arg0: i32) -> (i32, i32) {
    %c0_i32 = arith.constant 0 : i32
    %c0_i32_0 = arith.constant 0 : i32
    %c0_i32_1 = arith.constant 0 : i32
    return %c0_i32, %c0_i32_0 : i32, i32
  }
  func.func @transform_16(%arg0: i32) -> (i32, i32) {
    %c0_i32 = arith.constant 0 : i32
    %c0_i32_0 = arith.constant 0 : i32
    %c0_i32_1 = arith.constant 0 : i32
    return %c0_i32, %c0_i32_0 : i32, i32
  }
  func.func @transform_17(%arg0: i32) -> (i32, i32, i32) {
    %c0_i32 = arith.constant 0 : i32
    %c0_i32_0 = arith.constant 0 : i32
    %c0_i32_1 = arith.constant 0 : i32
    return %arg0, %c0_i32, %c0_i32_0 : i32, i32, i32
  }
}

</mosaic_0001>

<bundles_post_ra>
// kernel: model_forward.1
= control target key start
LH: loop header
LB: loop body
LE: loop exit
PB: predicated region body
PF: predicated region fallthrough
CT: control target
= control target key end

     0   :  { %s8563_s0 = inlined_call_operand.vmem [shape: f32[2,3,256], index: 0, kind: input, shape index: {}]   ;;  %s8564_s1 = inlined_call_operand.vmem [shape: bf16[3,256], index: 1, kind: input, shape index: {}]   ;;  %s8565_s2 = inlined_call_operand.vmem [shape: bf16[5,256], index: 2, kind: input, shape index: {}]   ;;  %s8566_s3 = inlined_call_operand.hbm [shape: bf16[8,27], index: 3, kind: input, shape index: {}]   ;;  %s8567_s4 = inlined_call_operand.vmem [shape: f32[8,1], index: 4, kind: input, shape index: {}]   ;;  %s8568_s5 = inlined_call_operand.hbm [shape: bf16[32,72], index: 5, kind: input, shape index: {}]   ;;  %s8569_s6 = inlined_call_operand.vmem [shape: f32[32,1], index: 6, kind: input, shape index: {}]   ;;  %s8570_s7 = inlined_call_operand.hbm [shape: bf16[8,288], index: 7, kind: input, shape index: {}]   ;;  %s8571_s8 = inlined_call_operand.vmem [shape: f32[8,1], index: 8, kind: input, shape index: {}]   ;;  %s8572_s9 = inlined_call_operand.hbm [shape: bf16[32,72], index: 9, kind: input, shape index: {}]   ;;  %s8573_s10 = inlined_call_operand.vmem [shape: f32[32,1], index: 10, kind: input, shape index: {}]   ;;  %s8574_s11 = inlined_call_operand.hbm [shape: bf16[8,288], index: 11, kind: input, shape index: {}]   ;;  %s8575_s12 = inlined_call_operand.vmem [shape: f32[8,1], index: 12, kind: input, shape index: {}]   ;;  %s8576_s13 = inlined_call_operand.hbm [shape: bf16[12,72], index: 13, kind: input, shape index: {}]   ;;  %s8577_s14 = inlined_call_operand.vmem [shape: f32[12,1], index: 14, kind: input, shape index: {}]   ;;  %s8578_s15 = inlined_call_operand.hbm [shape: bf16[12,75], index: 15, kind: input, shape index: {}]   ;;  %s8579_s16 = inlined_call_operand.vmem [shape: f32[12,1], index: 16, kind: input, shape index: {}]   ;;  %s8580_s17 = inlined_call_operand.vmem [shape: f32[2,12,256], index: 17, kind: output, shape index: {}]  }
   0x1   :  { %8673 = sst [smem:[#allocation35_spill]] %s8563_s0 }
   0x2   :  { %8674 = sst [smem:[#allocation36_spill]] %s8564_s1 }
   0x3   :  { %22 = vsyncpa [#allocation6], 0 }
   0x4   :  { %23 = vsyncpa [#allocation8], 0 }
   0x5   :  { %24 = vsyncpa [#allocation11], 0 }
   0x6   :  { %25 = vsyncpa [#allocation14], 0  ;;  %s6197_s24 = smov 0  }
   0x7 LB: > { %s6065_s25 = smov [#allocation7]   ;;  %s6203_s27 = sadd.s32 4294967295, %s6063_s24   ;;  %s6063_s24 = sphi %s6197_s24, %s31_s24  }
   0x8   : > { %s456_s26 = sshll.u32 %s6065_s25, 4  ;;  %p5402_p0 = scmp.ge.s32.totalorder %s6063_s24, 1  ;;  %s457_s26 = int_to_ptr.vmem [resolvable:$true] %s456_s26 }
   0x9   : > { %p424_p1 = scmp.lt.s32.totalorder %s6063_s24, 3  ;;  %p8582_p2 = scmp.eq.s32.totalorder %s6203_s27, 0 }
   0xa   : > { %s6066_s29 = smov [#allocation10]   ;;  %s6067_s18 = smov [#allocation13]  }
   0xb   : > { %p6208_p3 = pnand %p5402_p0, %p424_p1  ;;  %s486_s0 = sshll.u32 %s6066_s29, 4  ;;  %s6214_s0 = int_to_ptr.vmem [resolvable:$true] %s486_s0 }
   0xc   : > { %s516_s19 = sshll.u32 %s6067_s18, 4  ;;  %s6068_s1 = smov [#allocation5]   ;;  %s6222_s19 = int_to_ptr.vmem [resolvable:$true] %s516_s19 }
   0xd   : > { %s8675_s28 = scalar_select %p6208_p3, 1, 0 }
   0xe   : > { %p5689_p4 = pneg %p6208_p3  ;;  %s6224_s20 = sshll.u32 %s6068_s1, 4  ;;  %s444_s20 = int_to_ptr.vmem [resolvable:$true] %s6224_s20 }
   0xf   : > { %s5870_s22 = scalar_lea.vmem %s457_s26, 256  ;;  %p5878_p10 = scmp.lt.s32.totalorder %s457_s26, %s457_s26 }
  0x10   : > { %p6218_p5 = pnand %p8582_p2, %p5689_p4  ;;  %p5871_p7 = scmp.ne.s32.totalorder %s457_s26, %s5870_s22 }
  0x11   : > { %p5879_p11 = scmp.lt.s32.totalorder %s5870_s22, %s5870_s22 }
  0x12   : > { %p6228_p6 = pneg %p6218_p5 }
  0x13   : > { %p5880_p12 = por %p5879_p11, %p5878_p10 }
  0x14   : > { %p5873_p8 = pnand %p5871_p7, %p6228_p6 }
  0x16   : > { %p5874_p9 = pneg %p5873_p8 }
  0x18   : > { %p5881_p13 = pnand %p5880_p12, %p5874_p9 }
  0x1a   : > { %5884 = shalt.err (!%p5881_p13)
}
  0x1b   : > { %s8581_s23 = smov 64   ;;  %s6070_s25 = smov 4  }
  0x1c   : > { %5695 = dma.hbm_to_vmem [thread:$0]  (!%p6218_p5), %s8568_s5, 256, %s457_s26, [#allocation8], %s8581_s23, %s8581_s23, %s6070_s25  }
  0x1d   : > { %s5896_s1 = scalar_lea.vmem %s6214_s0, 256  ;;  %p5904_p7 = scmp.lt.s32.totalorder %s6214_s0, %s6214_s0 }
  0x1e   : > { %p5897_p0 = scmp.ne.s32.totalorder %s6214_s0, %s5896_s1  ;;  %p5905_p8 = scmp.lt.s32.totalorder %s5896_s1, %s5896_s1 }
  0x20   : > { %p5899_p1 = pnand %p5897_p0, %p6228_p6  ;;  %p5906_p9 = por %p5905_p8, %p5904_p7 }
  0x22   : > { %p5900_p4 = pneg %p5899_p1 }
  0x24   : > { %p5907_p10 = pnand %p5906_p9, %p5900_p4 }
  0x26   : > { %5910 = shalt.err (!%p5907_p10)
}
  0x27   : > { %5701 = dma.hbm_to_vmem [thread:$0]  (!%p6218_p5), %s8572_s9, 256, %s6214_s0, [#allocation11], %s8581_s23, %s8581_s23, %s6070_s25  }
  0x28   : > { %s5922_s26 = scalar_lea.vmem %s6222_s19, 128  ;;  %p5930_p0 = scmp.lt.s32.totalorder %s6222_s19, %s6222_s19 }
  0x29   : > { %p5923_p11 = scmp.ne.s32.totalorder %s6222_s19, %s5922_s26  ;;  %p5931_p1 = scmp.lt.s32.totalorder %s5922_s26, %s5922_s26 }
  0x2b   : > { %p5925_p12 = pnand %p5923_p11, %p6228_p6  ;;  %p5932_p4 = por %p5931_p1, %p5930_p0 }
  0x2d   : > { %p5926_p13 = pneg %p5925_p12 }
  0x2f   : > { %p5933_p7 = pnand %p5932_p4, %p5926_p13 }
  0x31   : > { %5936 = shalt.err (!%p5933_p7)
}
  0x32   : > { %5707 = dma.hbm_to_vmem [thread:$0]  (!%p6218_p5), %s8576_s13, 128, %s6222_s19, [#allocation14], %s8581_s23, %s8581_s23, %s6070_s25  }
  0x33   : > { %s5948_s0 = scalar_lea.vmem %s444_s20, 64  ;;  %p5956_p11 = scmp.lt.s32.totalorder %s444_s20, %s444_s20 }
  0x34   : > { %p5949_p8 = scmp.ne.s32.totalorder %s444_s20, %s5948_s0  ;;  %p5957_p12 = scmp.lt.s32.totalorder %s5948_s0, %s5948_s0 }
  0x36   : > { %p5951_p9 = pnand %p5949_p8, %p6228_p6  ;;  %p5958_p13 = por %p5957_p12, %p5956_p11 }
  0x38   : > { %p5952_p10 = pneg %p5951_p9 }
  0x3a   : > { %p5959_p0 = pnand %p5958_p13, %p5952_p10 }
  0x3c   : > { %5962 = shalt.err (!%p5959_p0)
}
  0x3d   : > { %5692 = dma.hbm_to_vmem [thread:$0]  (!%p6218_p5), %s8566_s3, 64, %s444_s20, [#allocation6]  }
  0x3e   : > { %s6071_s26 = smov [#allocation9]   ;;  %s6072_s18 = smov [#allocation12]  }
  0x3f   : > { %s473_s19 = sshll.u32 %s6071_s26, 4  ;;  %s503_s1 = sshll.u32 %s6072_s18, 4  ;;  %s474_s19 = int_to_ptr.vmem [resolvable:$true] %s473_s19  ;;  %s504_s1 = int_to_ptr.vmem [resolvable:$true] %s503_s1 }
  0x40   : > { %s5974_s23 = scalar_lea.vmem %s474_s19, 192  ;;  %p5982_p8 = scmp.lt.s32.totalorder %s474_s19, %s474_s19 }
  0x41   : > { %p5975_p1 = scmp.ne.s32.totalorder %s474_s19, %s5974_s23  ;;  %p5983_p9 = scmp.lt.s32.totalorder %s5974_s23, %s5974_s23 }
  0x43   : > { %p5977_p4 = pnand %p5975_p1, %p6228_p6  ;;  %p5984_p10 = por %p5983_p9, %p5982_p8 }
  0x45   : > { %p5978_p7 = pneg %p5977_p4 }
  0x47   : > { %p5985_p11 = pnand %p5984_p10, %p5978_p7 }
  0x49   : > { %5988 = shalt.err (!%p5985_p11)
}
  0x4a   : > { %5698 = dma.hbm_to_vmem [thread:$0]  (!%p6218_p5), %s8570_s7, 192, %s474_s19, [#allocation8]  }
  0x4b   : > { %s6000_s20 = scalar_lea.vmem %s504_s1, 192  ;;  %p6008_p1 = scmp.lt.s32.totalorder %s504_s1, %s504_s1 }
  0x4c   : > { %p6001_p12 = scmp.ne.s32.totalorder %s504_s1, %s6000_s20  ;;  %p6009_p4 = scmp.lt.s32.totalorder %s6000_s20, %s6000_s20 }
  0x4e   : > { %p6003_p13 = pnand %p6001_p12, %p6228_p6  ;;  %p6010_p2 = por %p6009_p4, %p6008_p1 }
  0x50   : > { %p6004_p0 = pneg %p6003_p13 }
  0x52   : > { %p6011_p3 = pnand %p6010_p2, %p6004_p0 }
  0x54   : > { %6014 = shalt.err (!%p6011_p3)
}
  0x55   : > { %5704 = dma.hbm_to_vmem [thread:$0]  (!%p6218_p5), %s8574_s11, 192, %s504_s1, [#allocation11]  }
  0x56   : > { %s6073_s26 = smov [#allocation15]  }
  0x57   : > { %s532_s19 = sshll.u32 %s6073_s26, 4  ;;  %s533_s19 = int_to_ptr.vmem [resolvable:$true] %s532_s19 }
  0x58   : > { %s6026_s18 = scalar_lea.vmem %s533_s19, 128  ;;  %p6034_p10 = scmp.lt.s32.totalorder %s533_s19, %s533_s19 }
  0x59   : > { %p6027_p7 = scmp.ne.s32.totalorder %s533_s19, %s6026_s18  ;;  %p6035_p11 = scmp.lt.s32.totalorder %s6026_s18, %s6026_s18 }
  0x5b   : > { %p6029_p8 = pnand %p6027_p7, %p6228_p6  ;;  %p6036_p12 = por %p6035_p11, %p6034_p10 }
  0x5d   : > { %p6030_p9 = pneg %p6029_p8 }
  0x5f   : > { %p6037_p2 = pnand %p6036_p12, %p6030_p9 }
  0x61   : > { %6040 = shalt.err (!%p6037_p2)
}
  0x62   : > { %s8678_s0 = smov 64   ;;  %p8679_p3 = scmp.ne.s32.totalorder %s8675_s28, 0 }
  0x63   : > { %5710 = dma.hbm_to_vmem [thread:$0]  (!%p6218_p5), %s8578_s15, 128, %s533_s19, [#allocation14], %s8678_s0, %s8678_s0, %s6070_s25  }
  0x64   : > { %559 = sbr.rel (%p8679_p3) target bundleno = 3483 (0xd9b), region = 88 }
  0x69   : > { %p8680_p6 = scmp.eq.s32.totalorder %s6203_s27, 0 }
  0x6b   : > { %6046 = dma.done.wait (%p8680_p6), [#allocation6], 64   ;;  %p8681_p13 = pmov %p8680_p6 }
  0x6c   : > { %p8682_p0 = pmov %p8680_p6 }
  0x6d   : > { %6048 = vsyncadd (%p8681_p13), [#allocation6], 4294967232 }
  0x6e   : > { %6050 = dma.done.wait (%p8682_p0), [#allocation8], 448   ;;  %p8683_p1 = pmov %p8682_p0 }
  0x6f   : > { %p8684_p4 = pmov %p8682_p0 }
  0x70   : > { %6052 = vsyncadd (%p8683_p1), [#allocation8], 4294966848 }
  0x71   : > { %6054 = dma.done.wait (%p8684_p4), [#allocation11], 448   ;;  %p8685_p5 = pmov %p8682_p0 }
  0x72   : > { %p8686_p7 = pmov %p8682_p0 }
  0x73   : > { %6056 = vsyncadd (%p8685_p5), [#allocation11], 4294966848 }
  0x74   : > { %6058 = dma.done.wait (%p8686_p7), [#allocation14], 256   ;;  %p8687_p8 = pmov %p8682_p0 }
  0x75   : > { %v679_v0 = vlaneseq  ;;  %p635_p9 = scmp.lt.s32.totalorder %s6203_s27, 1  ;;  %v6074_v2 = vmov 1983009808   ;;  %vm8584_vm0 = vcmask 1041408   ;;  %vm649_vm1 = vsmask.f32 1280 }
  0x76   : > { %6060 = vsyncadd (%p8687_p8), [#allocation14], 4294967040  ;;  %v677_v3 = vunpack.c.l.s4 %v6074_v2  ;;  %vm684_vm2 = vcmask 1043458   ;;  %vm8585_vm3 = vsmask.f32 3328  ;;  %s8690_s25 = sld [smem:[#allocation36_spill]] }
  0x77   : > { %v6322_v1 = vshrl.u32 %v679_v0, 7  ;;  %s9029_s27 = smov (!%p635_p9, %s6203_s27), 1  ;;  %vm6336_vm4 = vmand %vm8584_vm0, %vm649_vm1  ;;  %s8691_s29 = sld [smem:[#allocation35_spill]]  ;;  %v654_v13 = vld [vmem:[#allocation2 + $0x6] sm:$0x3]  ;;  %vm8587_vm7 = vcmask 7168  }
  0x78   : > { %s5648_s28 = sshll.u32 %s9029_s27, 3  ;;  %v678_v8 = vunpack.c.0.s8 %v677_v3  ;;  %vm6347_vm5 = vmand %vm684_vm2, %vm8585_vm3  ;;  %v651_v14 = vld [vmem:[#allocation2] sm:$0x3]  ;;  %v655_v16 = vsel %vm6336_vm4, 0, %v654_v13  ;;  %v688_v25 = vld [vmem:[#allocation2 + $0x2] sm:$0xf] }
  0x79   : > { %v6329_v4 = vsub.s32 1, %v6322_v1  ;;  %v6332_v5 = vsub.s32 0, %v6322_v1  ;;  %v652_v17 = vsel %vm6336_vm4, 0, %v651_v14  ;;  %656 = vst [vmem:[#allocation2 + $0x6] sm:$0x3] %v655_v16  ;;  %vm687_vm6 = vmor %vm6347_vm5, %vm6336_vm4  ;;  %s6075_s19 = smov 1  }
  0x7a   : > { %653 = vst [vmem:[#allocation2] sm:$0x3] %v652_v17  ;;  %v6358_v21 = vsub.s32 %v678_v8, %v6322_v1  ;;  %s8669_s18 = smov 127   ;;  %s8618_s0 = smov 17   ;;  %vm8639_vm8 = vcmask 1039360   ;;  %vm8625_vm9 = vcmask 138240  }
  0x7b   : > { %s6078_s22 = smov 15   ;;  %s8599_s1 = smov 113   ;;  %vm8588_vm10 = vcmask 121856   ;;  %vm8586_vm11 = vcmask 924672   ;;  %vm8645_vm12 = vcmask 908288   ;;  %vm8589_vm13 = vcmask 777216  }
  0x7c   : > { %v5424_v7 = vld.sshfl [vmem:[%s8690_s25] sm:$0x33 pattern:$0x76325410]  ;;  %s8601_s30 = smov 95   ;;  %s8597_s21 = smov 94  }
  0x7d   : > { %s639_s26 = scalar_lea.vmem %s8691_s29, %s5648_s28  ;;  %v699_v10 = vcombine.high %v5424_v7, %v5424_v7  ;;  %v701_v11 = vpack.i.b16 %v5424_v7, %v5424_v7  ;;  %s8667_s28 = smov 111   ;;  %vm8592_vm14 = vcmask 785408   ;;  %vm8654_vm15 = vcmask 769024  }
  0x7e   : > { %v667_v12 = vld [vmem:[%s639_s26] sm:$0x77]  ;;  %s8595_s25 = smov 96   ;;  %s8665_s20 = smov 126   ;;  %vm8640_vm1 = vcmask 1042432   ;;  %vm8590_vm2 = vcmask 1040384  }
  0x7f   : > { %v669_v15 = vcombine.high %v667_v12, %v667_v12  ;;  %v708_v18 = vpack.i.b16 %v699_v10, %v699_v10  ;;  %v717_v19 = vrot.slane %v701_v11, %v6329_v4  ;;  %v706_v20 = vrot.slane %v701_v11, %v6332_v5  ;;  %s8671_s23 = smov 110   ;;  %s8593_s29 = smov 112  }
  0x80   : > { %vm8591_vm5 = vcmask 1031168   ;;  %vm8643_vm0 = vcmask 916480   ;;  %vm8617_vm3 = vcmask 1044480   ;;  %s6089_s26 = smov 33  }
  0x81   : > { %v5423_v22 = vpack.c.bf16 %v669_v15, %v667_v12  ;;  %v721_v23 = vrot.slane %v708_v18, %v6329_v4  ;;  %v713_v24 = vrot.slane %v708_v18, %v6332_v5 }
  0x83   : > { %v682_v26 = vrot.slane %v5423_v22, %v6358_v21  ;;  %v6367_v27 = vcombine.low %v717_v19, %v721_v23  ;;  %v6369_v28 = vcombine.low %v706_v20, %v713_v24 }
  0x85   : > { %v689_v29 = vsel %vm687_vm6, %v682_v26, %v688_v25  ;;  %v749_v30 = vrot.slane %v6367_v27, %v6358_v21  ;;  %v732_v31 = vrot.slane %v6369_v28, %v6358_v21  ;;  %vm8644_vm6 = vcmask 900096  }
  0x86   : > { %690 = vst [vmem:[#allocation2 + $0x2] sm:$0xf] %v689_v29 }
  0x87   : > { %766 = vrot.lane.b32.xlu0 %v749_v30, %s6075_s19  ;;  %757 = vrot.lane.b32.xlu1 %v732_v31, %s8669_s18 }
  0x8b   : > { %780 = vrot.lane.b32.xlu1 %v749_v30, %s8618_s0  ;;  %773 = vrot.lane.b32.xlu0 %v732_v31, %s6078_s22 }
  0x8d   : > { %v5798_v32 = vld [vmem:[#allocation2 + $0x2] ss:$0 sps:$4 sm:$0xff]  }
  0x8e   : > { %v6379_v33 = vld [vmem:[#allocation2 + $0x2] sm:$0x3f]  ;;  %v6390_v37 = vrot.slane %v5798_v32, %v6358_v21 }
  0x8f   : > { %v6383_v34 = vrot.slane %v6379_v33, %v6358_v21  ;;  %v6385_v35 = vld [vmem:[#allocation2] sm:$0x3f]  ;;  %v1044_v36 = vcombine.high %v6379_v33, %v6379_v33  ;;  %750 = vrot.lane.b32.xlu0 %v749_v30, %s8599_s1  ;;  %733 = vrot.lane.b32.xlu1 %v732_v31, %s8667_s28 }
  0x90   : > { %v6394_v38 = vrot.slane %v6385_v35, %v6358_v21  ;;  %v950_v45 = vcombine.low %v6390_v37, %v6390_v37  ;;  %v808_v49 = vcombine.high %v6385_v35, %v6385_v35 }
  0x91   : > { %v8614_v39 = vshrl.u32 %v6383_v34, 16  ;;  %v8613_v40 = vshll.u32 %v6383_v34, 16  ;;  %v6401_v41 = vrot.slane %v1044_v36, %v6358_v21  ;;  %v6405_v42 = vcombine.high %v6383_v34, %v6383_v34 }
  0x92   : > { %v8606_v43 = vshrl.u32 %v6394_v38, 16  ;;  %v8605_v44 = vshll.u32 %v6394_v38, 16  ;;  %v6417_v48 = vcombine.high %v6394_v38, %v6394_v38  ;;  %v6437_v59 = vrot.slane %v808_v49, %v6358_v21 }
  0x93   : > { %v1063_v46 = vrot.slane %v8614_v39, 5  ;;  %v1066_v47 = vrot.slane %v8613_v40, 6  ;;  %v8612_v50 = vshrl.u32 %v6401_v41, 16  ;;  %v8611_v51 = vshll.u32 %v6401_v41, 16  ;;  %953 = vrot.lane.b32.xlu0 %v6390_v37, %s8667_s28  ;;  %951 = vrot.lane.b32.xlu1 %v950_v45, %s8667_s28 }
  0x94   : > { %v8616_v52 = vshrl.u32 %v6405_v42, 16  ;;  %v8615_v53 = vshll.u32 %v6405_v42, 16  ;;  %v827_v55 = vrot.slane %v8606_v43, 6  ;;  %v830_v56 = vrot.slane %v8605_v44, 7 }
  0x95   : > { %v1067_v54 = vor.u32 %v1066_v47, %v1063_v46  ;;  %v1079_v60 = vrot.slane %v8612_v50, 5  ;;  %v1082_v61 = vrot.slane %v8611_v51, 6  ;;  %v8608_v63 = vshrl.u32 %v6417_v48, 16 }
  0x96   : > { %v1071_v57 = vrot.slane %v8616_v52, 5  ;;  %v1074_v58 = vrot.slane %v8615_v53, 6  ;;  %v831_v0 = vor.u32 %v830_v56, %v827_v55  ;;  %v8607_v2 = vshll.u32 %v6417_v48, 16 }
  0x97   : > { %1084 = vrot.lane.b32.xlu0 %v1067_v54, %s8601_s30  ;;  %v8604_v3 = vshrl.u32 %v6437_v59, 16  ;;  %v8603_v7 = vshll.u32 %v6437_v59, 16  ;;  %v1083_v10 = vor.u32 %v1082_v61, %v1079_v60  ;;  %v835_v11 = vrot.slane %v8608_v63, 6 }
  0x98   : > { %v1075_v62 = vor.u32 %v1074_v58, %v1071_v57  ;;  %v838_v12 = vrot.slane %v8607_v2, 7 }
  0x99   : > { %v843_v8 = vrot.slane %v8604_v3, 6  ;;  %v846_v9 = vrot.slane %v8603_v7, 7 }
  0x9a   : > { %1086 = vrot.lane.b32.xlu1 %v1075_v62, %s8601_s30  ;;  %v839_v14 = vor.u32 %v838_v12, %v835_v11 }
  0x9b   : > { %848 = vrot.lane.b32.xlu0 %v831_v0, %s8669_s18  ;;  %v847_v13 = vor.u32 %v846_v9, %v843_v8 }
  0x9e   : > { %852 = vrot.lane.b32.xlu1 %v847_v13, %s8669_s18 }
  0x9f   : > { %1088 = vrot.lane.b32.xlu0 %v1083_v10, %s8601_s30 }
  0xa3   : > { %850 = vrot.lane.b32.xlu0 %v839_v14, %s8669_s18 }
  0xf9   : > { %v767_v15 = vpop.permute.xlu0 %766  ;;  %v758_v16 = vpop.permute.xlu1 %757 }
  0xfa   : > { %v768_v17 = vrot.slane %v767_v15, 6  ;;  %v759_v18 = vrot.slane %v758_v16, 6 }
  0xfc   : > { %v770_v19 = vsel %vm8587_vm7, %v768_v17, %v767_v15  ;;  %v761_v26 = vsel %vm8639_vm8, %v759_v18, %v758_v16  ;;  %vm1178_vm7 = vsmask.f32 2304 }
  0xfd   : > { %v781_v20 = vpop.permute.xlu1 %780  ;;  %v774_v22 = vpop.permute.xlu0 %773  ;;  %v772_v25 = vmul.bf16 %v770_v19, %v6379_v33  ;;  %v763_v45 = vmul.bf16 %v761_v26, %v6385_v35 }
  0xfe   : > { %v782_v23 = vrot.slane %v781_v20, 6  ;;  %v775_v24 = vrot.slane %v774_v22, 6 }
  0xff   : > { %v964_v47 = vrot.slane %v772_v25, %v6358_v21  ;;  %v896_v58 = vrot.slane %v763_v45, %v6358_v21  ;;  %v957_v60 = vcombine.high %v772_v25, %v772_v25 }
 0x100   : > { %v784_v29 = vsel %vm8625_vm9, %v782_v23, %v781_v20  ;;  %v777_v30 = vsel %vm8588_vm10, %v775_v24, %v774_v22  ;;  %vm1183_vm10 = vcmask 1043456  }
 0x101   : > { %v786_v31 = vmul.bf16 %v784_v29, %v6379_v33  ;;  %v779_v32 = vmul.bf16 %v777_v30, %v6379_v33  ;;  %v751_v36 = vpop.permute.xlu0 %750  ;;  %v974_v0 = vshll.u32 %v964_v47, 16  ;;  %v906_v12 = vshrl.u32 %v896_v58, 16 }
 0x102   : > { %v752_v46 = vrot.slane %v751_v36, 6  ;;  %v909_v15 = vshll.u32 %v896_v58, 16  ;;  %v971_v16 = vrot.slane %v957_v60, %v6358_v21  ;;  %v985_v19 = vshrl.u32 %v964_v47, 16 }
 0x103   : > { %v1104_v49 = vrot.slane %v786_v31, %v6358_v21  ;;  %v1022_v54 = vrot.slane %v779_v32, %v6358_v21  ;;  %v1015_v11 = vcombine.high %v779_v32, %v779_v32  ;;  %v976_v14 = vrot.slane %v974_v0, 1 }
 0x104   : > { %v754_v55 = vsel %vm8586_vm11, %v752_v46, %v751_v36  ;;  %v1097_v17 = vcombine.high %v786_v31, %v786_v31  ;;  %v908_v22 = vrot.slane %v906_v12, 3  ;;  %v911_v24 = vrot.slane %v909_v15, 4 }
 0x105   : > { %v756_v56 = vmul.bf16 %v754_v55, %v6385_v35  ;;  %1116 = vrot.lane.b32.xlu0 %v1104_v49, %s8597_s21  ;;  %v1031_v57 = vrot.slane %v1022_v54, 7  ;;  %v1030_v33 = vcombine.high %v1022_v54, %v1022_v54  ;;  %v1112_v8 = vcombine.low %v1104_v49, %v1104_v49 }
 0x106   : > { %v1029_v20 = vrot.slane %v1015_v11, %v6358_v21  ;;  %v987_v23 = vor.u32 %v985_v19, %v976_v14  ;;  %v982_v25 = vshll.u32 %v971_v16, 16  ;;  %v904_v26 = vcombine.high %v896_v58, %v896_v58  ;;  %v734_v19 = vpop.permute.xlu1 %733 }
 0x107   : > { %1034 = vrot.lane.b32.xlu1 %v1031_v57, %s8595_s25  ;;  %v1032_v61 = vrot.slane %v1030_v33, 7  ;;  %v860_v62 = vcombine.high %v756_v56, %v756_v56  ;;  %v867_v10 = vrot.slane %v756_v56, %v6358_v21  ;;  %v1111_v29 = vrot.slane %v1097_v17, %v6358_v21  ;;  %v6498_v17 = vpop.permute.xlu0 %953 }
 0x108   : > { %v889_v30 = vcombine.high %v763_v45, %v763_v45  ;;  %v1033_v31 = vrot.slane %v1029_v20, 7  ;;  %v972_v32 = vcombine.high %v964_v47, %v964_v47  ;;  %v912_v36 = vor.u32 %v911_v24, %v908_v22 }
 0x109   : > { %1036 = vrot.lane.b32.xlu0 %v1032_v61, %s8595_s25  ;;  %v874_v9 = vrot.slane %v860_v62, %v6358_v21  ;;  %v876_v18 = vrot.slane %v867_v10, 5  ;;  %v984_v46 = vrot.slane %v982_v25, 1  ;;  %v914_v49 = vshrl.u32 %v904_v26, 16 }
 0x10a   : > { %v917_v54 = vshll.u32 %v904_v26, 16  ;;  %v1113_v55 = vcombine.low %v1111_v29, %v1111_v29  ;;  %v991_v56 = vshrl.u32 %v971_v16, 16  ;;  %v875_v57 = vcombine.high %v867_v10, %v867_v10  ;;  %v6502_v22 = vpop.permute.xlu1 %951 }
 0x10b   : > { %1114 = vrot.lane.b32.xlu1 %v1112_v8, %s8597_s21  ;;  %v878_v13 = vrot.slane %v874_v9, 5  ;;  %v978_v33 = vshll.u32 %v972_v32, 16  ;;  %v903_v45 = vrot.slane %v889_v30, %v6358_v21  ;;  %v916_v60 = vrot.slane %v914_v49, 3 }
 0x10c   : > { %v993_v58 = vor.u32 %v991_v56, %v984_v46  ;;  %v919_v47 = vrot.slane %v917_v54, 4  ;;  %v877_v61 = vrot.slane %v875_v57, 5  ;;  %v988_v11 = vshrl.u32 %v972_v32, 16 }
 0x10d   : > { %883 = vrot.lane.b32.xlu0 %v878_v13, %s8665_s20  ;;  %v980_v62 = vrot.slane %v978_v33, 1  ;;  %v922_v0 = vshrl.u32 %v903_v45, 16  ;;  %v925_v8 = vshll.u32 %v903_v45, 16  ;;  %vm1140_vm11 = vsmask.f32 4352 }
 0x10e   : > { %v920_v9 = vor.u32 %v919_v47, %v916_v60  ;;  %v1087_v24 = vpop.permute.xlu1 %1086 }
 0x10f   : > { %879 = vrot.lane.b32.xlu1 %v876_v18, %s8665_s20  ;;  %v990_v10 = vor.u32 %v988_v11, %v980_v62  ;;  %v924_v12 = vrot.slane %v922_v0, 3  ;;  %v927_v13 = vrot.slane %v925_v8, 4  ;;  %v5775_v16 = vpack.i.bf16 %v980_v62, %v976_v14  ;;  %v6500_v18 = vpop.permute.xlu0 %1084 }
 0x110   : > { %v1091_v47 = vsel %vm8589_vm13, %v6500_v18, %v1087_v24 }
 0x111   : > { %1000 = vrot.lane.b32.xlu0 %v987_v23, %s8671_s23  ;;  %v928_v15 = vor.u32 %v927_v13, %v924_v12 }
 0x112   : > { %v6504_v26 = vpop.permute.xlu1 %852 }
 0x113   : > { %1038 = vrot.lane.b32.xlu1 %v1033_v31, %s8595_s25  ;;  %v849_v20 = vpop.permute.xlu0 %848 }
 0x115   : > { %929 = vrot.lane.b32.xlu0 %v912_v36, %s8593_s29 }
 0x117   : > { %1118 = vrot.lane.b32.xlu1 %v1113_v55, %s8597_s21  ;;  %v1089_v23 = vpop.permute.xlu0 %1088 }
 0x118   : > { %v1092_v62 = vsel %vm8589_vm13, %v1087_v24, %v1089_v23  ;;  %vm6533_vm13 = vmand %vm8640_vm1, %vm1178_vm7  ;;  %vm1158_vm7 = vcmask 1047552  }
 0x119   : > { %1004 = vrot.lane.b32.xlu0 %v993_v58, %s8671_s23 }
 0x11b   : > { %881 = vrot.lane.b32.xlu1 %v877_v61, %s8665_s20  ;;  %v851_v25 = vpop.permute.xlu0 %850 }
 0x11c   : > { %v855_v13 = vsel %vm8639_vm8, %v851_v25, %v6504_v26 }
 0x11d   : > { %931 = vrot.lane.b32.xlu0 %v920_v9, %s8593_s29 }
 0x11f   : > { %1002 = vrot.lane.b32.xlu1 %v990_v10, %s8671_s23 }
 0x121   : > { %998 = vrot.lane.b32.xlu0 %v984_v46, %s8671_s23  ;;  %v735_v46 = vrot.slane %v734_v19, 6 }
 0x123   : > { %933 = vrot.lane.b32.xlu1 %v928_v15, %s8593_s29  ;;  %v737_v55 = vsel %vm8645_vm12, %v735_v46, %v734_v19  ;;  %s8712_s29 = smov 112  }
 0x124   : > { %v739_v56 = vmul.bf16 %v737_v55, %v6385_v35 }
 0x126   : > { %v788_v45 = vcombine.high %v739_v56, %v739_v56  ;;  %v6515_v58 = vrot.slane %v739_v56, %v6358_v21 }
 0x127   : > { %5776 = vrot.lane.b32.xlu1 %v5775_v16, %s8671_s23 }
 0x128   : > { %v803_v35 = vcombine.high %v6515_v58, %v6515_v58  ;;  %v802_v0 = vrot.slane %v788_v45, %v6358_v21 }
 0x177   : > { %v1117_v29 = vpop.permute.xlu0 %1116 }
 0x179   : > { %v1035_v30 = vpop.permute.xlu1 %1034 }
 0x17b   : > { %v1037_v31 = vpop.permute.xlu0 %1036 }
 0x17c   : > { %v1041_v9 = vsel %vm8592_vm14, %v1035_v30, %v1037_v31 }
 0x17d   : > { %v6506_v32 = vpop.permute.xlu1 %1114 }
 0x17e   : > { %v1121_v24 = vsel %vm8654_vm15, %v6506_v32, %v1117_v29 }
 0x17f   : > { %v6508_v14 = vpop.permute.xlu0 %883 }
 0x181   : > { %v880_v36 = vpop.permute.xlu1 %879 }
 0x183   : > { %v1001_v49 = vpop.permute.xlu0 %1000 }
 0x184   : > { %v1167_v15 = vsel %vm8590_vm2, %v1001_v49, %v1035_v30 }
 0x185   : > { %v1039_v54 = vpop.permute.xlu1 %1038 }
 0x186   : > { %v1042_v11 = vsel %vm8592_vm14, %v1037_v31, %v1039_v54  ;;  %vm8642_vm14 = vcmask 1045504  }
 0x187   : > { %v6512_v57 = vpop.permute.xlu0 %929 }
 0x189   : > { %v1119_v33 = vpop.permute.xlu1 %1118 }
 0x18a   : > { %v1122_v31 = vsel %vm8654_vm15, %v1117_v29, %v1119_v33  ;;  %v854_v29 = vsel %vm8639_vm8, %v849_v20, %v851_v25 }
 0x18b   : > { %v1005_v61 = vpop.permute.xlu0 %1004 }
 0x18d   : > { %v882_v60 = vpop.permute.xlu1 %881 }
 0x18e   : > { %v887_v54 = vsel %vm8591_vm5, %v882_v60, %v6508_v14 }
 0x18f   : > { %v932_v55 = vpop.permute.xlu0 %931 }
 0x191   : > { %v1003_v8 = vpop.permute.xlu1 %1002 }
 0x192   : > { %v1009_v10 = vsel %vm8644_vm6, %v1001_v49, %v1003_v8  ;;  %v1010_v12 = vsel %vm8644_vm6, %v1003_v8, %v1005_v61  ;;  %v1125_v49 = vsel %vm6336_vm4, %v802_v0, %v6504_v26  ;;  %v1180_v26 = vsel %vm6533_vm13, %v1167_v15, %v6500_v18 }
 0x193   : > { %v1171_v16 = vsel %vm8590_vm2, %v1009_v10, %v1041_v9  ;;  %v1175_v19 = vsel %vm8590_vm2, %v1010_v12, %v1042_v11  ;;  %vm1159_vm2 = vsmask.f32 7424  ;;  %v8609_v0 = vmov 0  }
 0x194   : > { %v1181_v46 = vsel %vm6533_vm13, %v1171_v16, %v1091_v47  ;;  %v1182_v30 = vsel %vm6533_vm13, %v1175_v19, %v1092_v62  ;;  %v1124_v47 = vsel %vm6336_vm4, %v803_v35, %v855_v13  ;;  %v886_v62 = vsel %vm8591_vm5, %v880_v36, %v882_v60  ;;  %1269 = vmatprep.mubr.bf16.mxu1 %v8609_v0  ;;  %vm6578_vm5 = vmand %vm8617_vm3, %vm1140_vm11 }
 0x195   : > { %v934_v56 = vpop.permute.xlu1 %933  ;;  %v1189_v45 = vsel %vm1183_vm10, %v1181_v46, %v1121_v24  ;;  %v1192_v61 = vsel %vm1183_vm10, %v1182_v30, %v1122_v31  ;;  %657 = vst [vmem:[#allocation3] sm:$0xf] %v8609_v0  ;;  %658 = vst [vmem:[#allocation3 + $0xc] sm:$0xf] %v8609_v0  ;;  %5780 = vset.pattern.permute.xlu1 %v8609_v0  ;;  %v1137_v18 = vsel %vm8640_vm1, %v1125_v49, %v6508_v14  ;;  %v1194_v30 = vld [vmem:[%s8567_s4] sm:$0xff] }
 0x196   : > { %v937_v33 = vsel %vm8643_vm0, %v932_v55, %v934_v56  ;;  %1214 = vrot.lane.b32.xlu1 %v1189_v45, %s8618_s0  ;;  %1216 = vrot.lane.b32.xlu0 %v1192_v61, %s8618_s0  ;;  %659 = vst [vmem:[#allocation4] sm:$0xf] %v8609_v0  ;;  %660 = vst [vmem:[#allocation4 + $0x10] sm:$0xf] %v8609_v0  ;;  %v1133_v20 = vsel %vm8640_vm1, %v1124_v47, %v887_v54 }
 0x197   : > { %661 = vst [vmem:[#allocation4 + $0x20] sm:$0xf] %v8609_v0  ;;  %662 = vst [vmem:[#allocation4 + $0x30] sm:$0xf] %v8609_v0  ;;  %5781 = vset.pattern.permute.xlu0 %v8609_v0  ;;  %3098 = vmatprep.mubr.bf16.mxu0 %v8609_v0  ;;  %v1123_v36 = vsel %vm6336_vm4, %v6515_v58, %v854_v29  ;;  %v1143_v60 = vsel %vm6578_vm5, %v1133_v20, %v937_v33 }
 0x198   : > { %663 = vst [vmem:[#allocation4 + $0xc] sm:$0xf] %v8609_v0  ;;  %664 = vst [vmem:[#allocation4 + $0x1c] sm:$0xf] %v8609_v0  ;;  %v1144_v14 = vsel %vm6578_vm5, %v1137_v18, %v934_v56  ;;  %v1186_v8 = vsel %vm1183_vm10, %v1180_v26, %v6506_v32  ;;  %v1129_v9 = vsel %vm8640_vm1, %v1123_v36, %v886_v62  ;;  %v999_v32 = vpop.permute.xlu0 %998 }
 0x199   : > { %665 = vst [vmem:[#allocation4 + $0x2c] sm:$0xf] %v8609_v0  ;;  %666 = vst [vmem:[#allocation4 + $0x3c] sm:$0xf] %v8609_v0  ;;  %v5777_v35 = vpop.permute.xlu1 %5776  ;;  %v936_v11 = vsel %vm8643_vm0, %v6512_v57, %v932_v55  ;;  %v955_v13 = vsel %vm8645_vm12, %v6502_v22, %v6498_v17  ;;  %v1156_v19 = vsel %vm8642_vm14, %v1144_v14, %v6498_v17 }
 0x19a   : > { %v5779_v10 = vunpack.i.h.bf16 %v5777_v35  ;;  %v5778_v12 = vunpack.i.l.bf16 %v5777_v35  ;;  %1212 = vrot.lane.b32.xlu1 %v1186_v8, %s8618_s0  ;;  %vm6599_vm11 = vmand %vm1158_vm7, %vm1159_vm2  ;;  %v1152_v57 = vsel %vm8642_vm14, %v1143_v60, %v955_v13  ;;  %v1142_v24 = vsel %vm6578_vm5, %v1129_v9, %v936_v11  ;;  %v1193_v60 = vld [vmem:[#allocation5] sm:$0xf] }
 0x19b   : > { %v1148_v17 = vsel %vm8642_vm14, %v1142_v24, %v6502_v22  ;;  %v6088_v22 = vmov 65535   ;;  %vm1224_vm2 = vcmask 220160   ;;  %vm8704_vm7 = vcmask 121856  }
 0x19c   : > { %v1007_v15 = vsel %vm8644_vm6, %v5778_v12, %v5779_v10  ;;  %v1008_v16 = vsel %vm8644_vm6, %v5779_v10, %v999_v32  ;;  %v1161_v49 = vsel %vm6599_vm11, %v1148_v17, %v5778_v12  ;;  %v1229_v54 = vsel %vm8617_vm3, 4294967295, %v6088_v22  ;;  %v2764_v35 = vld [vmem:[#allocation3 + $0xc] sm:$0xf] }
 0x19d   : > { %v1162_v31 = vsel %vm6599_vm11, %v1152_v57, %v1007_v15  ;;  %v1163_v46 = vsel %vm6599_vm11, %v1156_v19, %v1008_v16  ;;  %v6639_v55 = vsel %vm8642_vm14, %v1229_v54, 0  ;;  %v5455_v10 = vcombine.low %v2764_v35, %v2764_v35 }
 0x19e   : > { %1208 = vrot.lane.b32.xlu0 %v1162_v31, %s8618_s0  ;;  %1210 = vrot.lane.b32.xlu1 %v1163_v46, %s8618_s0  ;;  %vm8716_vm3 = vcmask 777216  }
 0x1a2   : > { %1206 = vrot.lane.b32.xlu0 %v1161_v49, %s8618_s0  ;;  %1197 = vperm.xlu1 %5780, %v1194_v30  }
 0x1a6   : > { %2781 = vrot.lane.b32.xlu0 %v6367_v27, %s8618_s0  ;;  %2773 = vrot.lane.b32.xlu1 %v6369_v28, %s6078_s22 }
 0x1aa   : > { %2746 = vrot.lane.b32.xlu1 %v6367_v27, %s8599_s1  ;;  %2765 = vrot.lane.b32.xlu0 %v6367_v27, %s6075_s19  ;;  %s6092_s1 = smov 18  }
 0x1ae   : > { %2754 = vrot.lane.b32.xlu0 %v6369_v28, %s8669_s18 }
 0x208   : > { %v1215_v56 = vpop.permute.xlu1 %1214  ;;  %v1217_v45 = vpop.permute.xlu0 %1216 }
 0x209   : > { %v1221_v61 = vsel %vm8625_vm9, %v1215_v56, %v1217_v45 }
 0x20a   : > { %v1235_v29 = vand.u32 %v6639_v55, %v1221_v61 }
 0x20c   : > { %v1213_v33 = vpop.permute.xlu1 %1212  ;;  %1249 = vmatprep.subr.bf16.mxu1 %v1235_v29 }
 0x20d   : > { %v1220_v26 = vsel %vm8625_vm9, %v1213_v33, %v1215_v56 }
 0x20e   : > { %v1232_v27 = vand.u32 %v6639_v55, %v1220_v26 }
 0x210   : > { %v1211_v47 = vpop.permute.xlu1 %1210  ;;  %1250 = vmatpush1.bf16.msra.mxu1 %v1232_v27  ;;  %v1209_v62 = vpop.permute.xlu0 %1208 }
 0x211   : > { %v1219_v18 = vsel %vm8625_vm9, %v1209_v62, %v1211_v47 }
 0x212   : > { %1251 = vmatprep.subr.bf16.mxu1 %v1219_v18 }
 0x214   : > { %v1207_v20 = vpop.permute.xlu0 %1206 }
 0x215   : > { %v1218_v36 = vsel %vm8625_vm9, %v1207_v20, %v1209_v62 }
 0x216   : > { %1252 = vmatpush1.bf16.msra.mxu1 %v1218_v36 }
 0x218   : > { %v2782_v14 = vpop.permute.xlu0 %2781 }
 0x219   : > { %5425 = vmatmul.mubr.msk.bf16.vlgmr.msra.gmra.mxu1 %vm1224_vm2, %v1193_v60  ;;  %v6647_v8 = vrot.slane %v2782_v14, 4  ;;  %vm8706_vm2 = vcmask 7168  }
 0x21a   : > { %2710 = vmatprep.mubr.bf16.mxu1 %v8609_v0 }
 0x21b   : > { %v2788_v9 = vmul.bf16 %v6647_v8, %v2764_v35  ;;  %v6677_v61 = vsel %vm8625_vm9, %v6647_v8, %v2782_v14 }
 0x21c   : > { %v2766_v15 = vpop.permute.xlu0 %2765  ;;  %8703 = vst [vmem:[#allocation23_spill] sm:$0xff] %v6677_v61 }
 0x21d   : > { %v5458_v11 = vcombine.low %v2788_v9, %v2788_v9  ;;  %v1198_v12 = vpop.permute.xlu1 %1197  ;;  %v6657_v57 = vrot.slane %v2766_v15, 4  ;;  %v647_v9 = vld [vmem:[%s8565_s2] sm:$0x77] }
 0x21f   : > { %2915 = vrot.lane.b32.xlu1 %v5458_v11, %s8597_s21  ;;  %v2772_v24 = vmul.bf16 %v6657_v57, %v2764_v35  ;;  %v6695_v20 = vsel %vm8706_vm2, %v6657_v57, %v2766_v15  ;;  %vm1481_vm2 = vcmask 252928  }
 0x220   : > { %8707 = vst [vmem:[#allocation25_spill] sm:$0xff] %v6695_v20  ;;  %v2755_v11 = vpop.permute.xlu0 %2754 }
 0x221   : > { %v2774_v13 = vpop.permute.xlu1 %2773  ;;  %v5449_v31 = vcombine.low %v2772_v24, %v2772_v24  ;;  %v6707_v15 = vrot.slane %v2755_v11, 4 }
 0x222   : > { %v6655_v32 = vrot.slane %v2774_v13, 4 }
 0x223   : > { %2899 = vrot.lane.b32.xlu1 %v5455_v10, %s8601_s30 }
 0x224   : > { %8700 = vst [vmem:[#allocation20_spill] sm:$0xff] %v6655_v32  ;;  %v2780_v16 = vmul.bf16 %v6655_v32, %v2764_v35  ;;  %v6684_v33 = vsel %vm8704_vm7, %v6655_v32, %v2774_v13  ;;  %v5427_v13 = vcombine.high %v647_v9, %v647_v9  ;;  %vm8709_vm7 = vcmask 924672  }
 0x225   : > { %8705 = vst [vmem:[#allocation24_spill] sm:$0xff] %v6684_v33  ;;  %v2747_v18 = vpop.permute.xlu1 %2746 }
 0x226   : > { %v5452_v19 = vcombine.low %v2780_v16, %v2780_v16  ;;  %v6697_v36 = vrot.slane %v2747_v18, 4 }
 0x227   : > { %2735 = vrot.lane.b32.xlu1 %v6369_v28, %s8667_s28 }
 0x228   : > { %2883 = vrot.lane.b32.xlu0 %v5452_v19, %s8595_s25  ;;  %8708 = vst [vmem:[#allocation26_spill] sm:$0xff] %v6697_v36 }
 0x22c   : > { %2867 = vrot.lane.b32.xlu0 %v5449_v31, %s8671_s23  ;;  %v6713_v31 = vsel %vm8709_vm7, %v6697_v36, %v2747_v18  ;;  %vm8715_vm7 = vcmask 785408  }
 0x22d   : > { %8710 = vst [vmem:[#allocation27_spill] sm:$0xff] %v6713_v31 }
 0x2d9   : > { %v1271_v46 = vpop.f32.mrf.mxu1 }
 0x2da   : > { %v6663_v28 = vadd.f32 %v1271_v46, %v1198_v12 }
 0x2db   : > { %v1273_v30 = vpop.f32.mrf.mxu1 }
 0x2dc   : > { %8701 = vst [vmem:[#allocation21_spill] sm:$0xff] %v6663_v28  ;;  %v6665_v17 = vadd.f32 %v1273_v30, %v1198_v12  ;;  %v5845_v56 = vpack.c.bf16 %v6663_v28, %v6663_v28  ;;  %v5426_v12 = vcombine.low %v647_v9, %v647_v9  ;;  %v1304_v30 = vshrl.u32 %v5427_v13, 16 }
 0x2dd   : > { %v1275_v49 = vpop.f32.mrf.mxu1 }
 0x2de   : > { %8702 = vst [vmem:[#allocation22_spill] sm:$0xff] %v6665_v17  ;;  %v5650_v22 = vpack.c.bf16 %v6665_v17, %v6663_v28  ;;  %v5846_v45 = vpack.c.bf16 %v6665_v17, %v6665_v17  ;;  %2895 = vrot.lane.b32.xlu1 %v5845_v56, %s8601_s30  ;;  %v1297_v46 = vshrl.u32 %v5426_v12, 16  ;;  %v1305_v18 = vpack.i.b16 %v1304_v30, %v1304_v30 }
 0x2df   : > { %v1276_v54 = vpop.f32.mrf.mxu1 }
 0x2e0   : > { %2729 = vst [vmem:[#allocation3 + $0x4] sm:$0xff] %v5650_v22  ;;  %2897 = vrot.lane.b32.xlu0 %v5846_v45, %s8601_s30  ;;  %v2787_v29 = vmul.bf16 %v5650_v22, %v6677_v61  ;;  %v2779_v62 = vmul.bf16 %v5650_v22, %v6684_v33  ;;  %v2771_v35 = vmul.bf16 %v5650_v22, %v6695_v20  ;;  %s6093_s30 = smov 30  }
 0x2e2   : > { %2852 = vrot.lane.b32.xlu1 %v5846_v45, %s8667_s28  ;;  %v5456_v27 = vcombine.low %v2787_v29, %v2787_v29  ;;  %v5451_v60 = vcombine.high %v2779_v62, %v2779_v62  ;;  %v5457_v14 = vcombine.high %v2787_v29, %v2787_v29  ;;  %v5450_v16 = vcombine.low %v2779_v62, %v2779_v62 }
 0x2e3   : > { %v5448_v19 = vcombine.high %v2771_v35, %v2771_v35  ;;  %v5447_v22 = vcombine.low %v2771_v35, %v2771_v35  ;;  %v6723_v45 = vsel %vm8639_vm8, %v6707_v15, %v2755_v11  ;;  %v1298_v29 = vpack.i.b16 %v1297_v46, %v1297_v46 }
 0x2e4   : > { %2850 = vrot.lane.b32.xlu0 %v5845_v56, %s8667_s28  ;;  %8711 = vst [vmem:[#allocation28_spill] sm:$0xff] %v6723_v45  ;;  %v1321_v35 = vsub.s32 2, %v6322_v1  ;;  %v1318_v11 = vrot.slane %v1305_v18, %v6329_v4  ;;  %v1310_v46 = vrot.slane %v1305_v18, %v6332_v5 }
 0x2e5   : > { %v1314_v9 = vrot.slane %v1298_v29, %v6329_v4 }
 0x2e6   : > { %2911 = vrot.lane.b32.xlu1 %v5456_v27, %s8597_s21 }
 0x2e7   : > { %v6686_v26 = vld [vmem:[#allocation3] sm:$0xff]  ;;  %v6703_v10 = vld [vmem:[#allocation3 + $0x8] sm:$0xf]  ;;  %v1362_v1 = vcombine.low %v1314_v9, %v1318_v11 }
 0x2e8   : > { %v5437_v47 = vcombine.high %v6686_v26, %v6686_v26  ;;  %v2753_v24 = vmul.bf16 %v6697_v36, %v6703_v10  ;;  %v2752_v54 = vmul.bf16 %v6713_v31, %v6686_v26  ;;  %v2761_v56 = vmul.bf16 %v6707_v15, %v6703_v10 }
 0x2e9   : > { %v2760_v62 = vmul.bf16 %v6723_v45, %v6686_v26  ;;  %v6743_v4 = vrot.slane %v1362_v1, %v6358_v21 }
 0x2ea   : > { %2807 = vrot.lane.b32.xlu0 %v5437_v47, %s8669_s18  ;;  %2881 = vrot.lane.b32.xlu1 %v5451_v60, %s8595_s25  ;;  %v5441_v49 = vcombine.low %v2753_v24, %v2753_v24  ;;  %v5440_v27 = vcombine.high %v2752_v54, %v2752_v54  ;;  %v5444_v47 = vcombine.low %v2761_v56, %v2761_v56 }
 0x2eb   : > { %v1284_v60 = vpack.i.b16 %v5426_v12, %v5426_v12  ;;  %v1303_v24 = vrot.slane %v1298_v29, %v6332_v5  ;;  %v5439_v12 = vcombine.low %v2752_v54, %v2752_v54 }
 0x2ed   : > { %v1289_v29 = vrot.slane %v1284_v60, %v6332_v5 }
 0x2ee   : > { %2913 = vrot.lane.b32.xlu0 %v5457_v14, %s8597_s21  ;;  %2865 = vrot.lane.b32.xlu1 %v5448_v19, %s8671_s23  ;;  %v1291_v14 = vpack.i.b16 %v5427_v13, %v5427_v13  ;;  %v5442_v19 = vcombine.low %v2760_v62, %v2760_v62  ;;  %v5438_v13 = vcombine.low %v6703_v10, %v6703_v10  ;;  %s8620_s21 = smov 34  }
 0x2f0   : > { %v1326_v30 = vrot.slane %v1291_v14, %v1321_v35 }
 0x2f2   : > { %2879 = vrot.lane.b32.xlu0 %v5450_v16, %s8595_s25  ;;  %2825 = vrot.lane.b32.xlu1 %v5441_v49, %s8665_s20  ;;  %v5443_v16 = vcombine.high %v2760_v62, %v2760_v62  ;;  %v1322_v49 = vrot.slane %v1284_v60, %v1321_v35  ;;  %s6090_s25 = smov 31   ;;  %v2916_v60 = vpop.permute.xlu1 %2915 }
 0x2f4   : > { %v1379_v56 = vcombine.low %v1322_v49, %v1326_v30 }
 0x2f6   : > { %2863 = vrot.lane.b32.xlu0 %v5447_v22, %s8671_s23  ;;  %2841 = vrot.lane.b32.xlu1 %v5444_v47, %s8712_s29  ;;  %v1346_v22 = vcombine.low %v1303_v24, %v1310_v46  ;;  %v5436_v47 = vcombine.low %v6686_v26, %v6686_v26  ;;  %v6755_v62 = vrot.slane %v1379_v56, %v6358_v21  ;;  %v6769_v35 = vpop.permute.xlu1 %2899 }
 0x2f8   : > { %v6751_v54 = vrot.slane %v1346_v22, %v6358_v21 }
 0x2fa   : > { %2823 = vrot.lane.b32.xlu0 %v5440_v27, %s8665_s20  ;;  %2837 = vrot.lane.b32.xlu1 %v5442_v19, %s8712_s29  ;;  %v1296_v27 = vrot.slane %v1291_v14, %v6332_v5  ;;  %v2884_v14 = vpop.permute.xlu0 %2883  ;;  %v2736_v11 = vpop.permute.xlu1 %2735 }
 0x2fc   : > { %v1330_v18 = vcombine.low %v1289_v29, %v1296_v27  ;;  %v6780_v27 = vrot.slane %v2736_v11, 4 }
 0x2fe   : > { %2839 = vrot.lane.b32.xlu0 %v5443_v16, %s8712_s29  ;;  %2809 = vrot.lane.b32.xlu1 %v5438_v13, %s8669_s18  ;;  %v6761_v5 = vrot.slane %v1330_v18, %v6358_v21  ;;  %v2868_v9 = vpop.permute.xlu0 %2867  ;;  %8713 = vst [vmem:[#allocation29_spill] sm:$0xff] %v6780_v27  ;;  %v6784_v7 = vsel %vm8645_vm12, %v6780_v27, %v2736_v11 }
 0x2ff   : > { %8714 = vst [vmem:[#allocation30_spill] sm:$0xff] %v6784_v7  ;;  %v2742_v3 = vmul.bf16 %v6780_v27, %v6703_v10  ;;  %v2741_v2 = vmul.bf16 %v6784_v7, %v6686_v26 }
 0x301   : > { %v5435_v63 = vcombine.low %v2742_v3, %v2742_v3  ;;  %v5434_v50 = vcombine.high %v2741_v2, %v2741_v2  ;;  %v5433_v53 = vcombine.low %v2741_v2, %v2741_v2 }
 0x302   : > { %2821 = vrot.lane.b32.xlu0 %v5439_v12, %s8665_s20  ;;  %1485 = vrot.lane.b32.xlu1 %v6743_v4, %s6089_s26  ;;  %s8723_s26 = smov 113  }
 0x306   : > { %2805 = vrot.lane.b32.xlu0 %v5436_v47, %s8669_s18  ;;  %1492 = vrot.lane.b32.xlu1 %v6755_v62, %s8620_s21  ;;  %s8732_s21 = smov 94  }
 0x30a   : > { %1478 = vrot.lane.b32.xlu0 %v6751_v54, %s6090_s25  ;;  %1471 = vrot.lane.b32.xlu1 %v6761_v5, %s6093_s30  ;;  %s8720_s30 = smov 95   ;;  %s6097_s25 = smov 109  }
 0x30e   : > { %1464 = vrot.lane.b32.xlu0 %v6755_v62, %s6092_s1  ;;  %s6096_s1 = smov 2  }
 0x312   : > { %1458 = vrot.lane.b32.xlu0 %v6743_v4, %s8618_s0 }
 0x316   : > { %1425 = vrot.lane.b32.xlu0 %v6751_v54, %s8669_s18 }
 0x350   : > { %v2896_v16 = vpop.permute.xlu1 %2895 }
 0x352   : > { %v6771_v19 = vpop.permute.xlu0 %2897 }
 0x354   : > { %v6773_v24 = vpop.permute.xlu1 %2852 }
 0x356   : > { %v6775_v46 = vpop.permute.xlu0 %2850 }
 0x358   : > { %v2912_v49 = vpop.permute.xlu1 %2911 }
 0x359   : > { %3029 = vrot.lane.b32.xlu1 %v2912_v49, %s8618_s0 }
 0x35c   : > { %v2808_v30 = vpop.permute.xlu0 %2807  ;;  %v2882_v1 = vpop.permute.xlu1 %2881 }
 0x360   : > { %v2914_v12 = vpop.permute.xlu0 %2913  ;;  %v6778_v13 = vpop.permute.xlu1 %2865 }
 0x361   : > { %v2917_v26 = vsel %vm8654_vm15, %v2912_v49, %v2914_v12  ;;  %v2918_v2 = vsel %vm8654_vm15, %v2914_v12, %v2916_v60 }
 0x364   : > { %v2880_v22 = vpop.permute.xlu0 %2879  ;;  %v2826_v56 = vpop.permute.xlu1 %2825 }
 0x368   : > { %v2864_v29 = vpop.permute.xlu0 %2863  ;;  %v2842_v47 = vpop.permute.xlu1 %2841 }
 0x36c   : > { %v2824_v18 = vpop.permute.xlu0 %2823  ;;  %v2838_v44 = vpop.permute.xlu1 %2837 }
 0x370   : > { %v2840_v43 = vpop.permute.xlu0 %2839  ;;  %v2810_v0 = vpop.permute.xlu1 %2809 }
 0x371   : > { %v2812_v40 = vsel %vm8639_vm8, %v2808_v30, %v2810_v0  ;;  %v2927_v39 = vsel %vm1183_vm10, %v5435_v63, %v2810_v0  ;;  %v6801_v0 = vld [vmem:[#allocation2 + $0x2] sm:$0x3f] }
 0x372   : > { %3009 = vrot.lane.b32.xlu0 %v2927_v39, %s8618_s0  ;;  %v2924_v11 = vsel %vm1183_vm10, %v5434_v50, %v2812_v40  ;;  %v2948_v39 = vsel %vm1183_vm10, %v2880_v22, %v2896_v16  ;;  %v2885_v50 = vsel %vm8715_vm7, %v2880_v22, %v2882_v1  ;;  %v2939_v22 = vsel %vm1183_vm10, %v6775_v46, %v2864_v29 }
 0x373   : > { %3007 = vrot.lane.b32.xlu1 %v2924_v11, %s8618_s0  ;;  %v2870_v11 = vsel %vm8644_vm6, %v6778_v13, %v2868_v9  ;;  %v2936_v9 = vsel %vm1183_vm10, %v2826_v56, %v2842_v47 }
 0x374   : > { %v2822_v51 = vpop.permute.xlu0 %2821 }
 0x376   : > { %3031 = vrot.lane.b32.xlu0 %v2917_v26, %s8618_s0  ;;  %v2844_v26 = vsel %vm8643_vm0, %v2840_v43, %v2842_v47 }
 0x378   : > { %v2806_v10 = vpop.permute.xlu0 %2805 }
 0x379   : > { %v2811_v52 = vsel %vm8639_vm8, %v2806_v10, %v2808_v30 }
 0x37a   : > { %v2921_v3 = vsel %vm1183_vm10, %v5433_v53, %v2811_v52  ;;  %3023 = vrot.lane.b32.xlu0 %v2948_v39, %s8618_s0  ;;  %v2901_v52 = vsel %vm8716_vm3, %v2896_v16, %v6771_v19  ;;  %v2945_v16 = vsel %vm1183_vm10, %v6773_v24, %v2870_v11  ;;  %v2902_v39 = vsel %vm8716_vm3, %v6771_v19, %v6769_v35  ;;  %v1486_v19 = vpop.permute.xlu1 %1485 }
 0x37b   : > { %3005 = vrot.lane.b32.xlu1 %v2921_v3, %s8618_s0  ;;  %v2951_v30 = vsel %vm1183_vm10, %v2885_v50, %v2901_v52  ;;  %v2869_v52 = vsel %vm8644_vm6, %v2864_v29, %v6778_v13  ;;  %v2843_v35 = vsel %vm8643_vm0, %v2838_v44, %v2840_v43  ;;  %v1487_v29 = vrot.slane %v1486_v19, 6 }
 0x37c   : > { %v1479_v63 = vpop.permute.xlu0 %1478  ;;  %vm1488_vm3 = vcmask 269312  }
 0x37d   : > { %v1480_v40 = vrot.slane %v1479_v63, 6 }
 0x37e   : > { %3025 = vrot.lane.b32.xlu0 %v2951_v30, %s8618_s0 }
 0x37f   : > { %3033 = vrot.lane.b32.xlu1 %v2918_v2, %s8618_s0  ;;  %v1482_v49 = vsel %vm1481_vm2, %v1480_v40, %v1479_v63  ;;  %vm8717_vm2 = vmmov %vm8715_vm7  ;;  %vm8718_vm7 = vcmask 1031168  }
 0x380   : > { %v1484_v53 = vmul.bf16 %v1482_v49, %v6801_v0  ;;  %v2886_v10 = vsel %vm8717_vm2, %v2882_v1, %v2884_v14  ;;  %v2828_v40 = vsel %vm8718_vm7, %v2824_v18, %v2826_v56  ;;  %vm8719_vm2 = vmmov %vm8718_vm7  ;;  %vm8627_vm7 = vcmask 277504  }
 0x381   : > { %v2933_v14 = vsel %vm1183_vm10, %v2828_v40, %v2844_v26  ;;  %v2954_v1 = vsel %vm1183_vm10, %v2886_v10, %v2902_v39  ;;  %v2827_v50 = vsel %vm8719_vm2, %v2822_v51, %v2824_v18  ;;  %v2854_v51 = vsel %vm8645_vm12, %v6775_v46, %v6773_v24 }
 0x382   : > { %v2357_v60 = vrot.slane %v1484_v53, %v6358_v21  ;;  %3021 = vrot.lane.b32.xlu0 %v2945_v16, %s8618_s0  ;;  %v2350_v2 = vcombine.high %v1484_v53, %v1484_v53  ;;  %v2930_v18 = vsel %vm1183_vm10, %v2827_v50, %v2843_v35  ;;  %v2942_v53 = vsel %vm1183_vm10, %v2854_v51, %v2869_v52  ;;  %v1493_v35 = vpop.permute.xlu1 %1492 }
 0x383   : > { %3017 = vrot.lane.b32.xlu1 %v2939_v22, %s8618_s0  ;;  %v1489_v24 = vsel %vm1488_vm3, %v1487_v29, %v1486_v19  ;;  %v2414_v46 = vrot.slane %v6801_v0, %v6358_v21  ;;  %v2407_v39 = vcombine.high %v6801_v0, %v6801_v0  ;;  %vm1467_vm2 = vcmask 146432  }
 0x384   : > { %v2365_v12 = vcombine.high %v2357_v60, %v2357_v60  ;;  %v2367_v3 = vshll.u32 %v2357_v60, 16  ;;  %v2364_v13 = vrot.slane %v2350_v2, %v6358_v21  ;;  %v2378_v43 = vshrl.u32 %v2357_v60, 16 }
 0x385   : > { %v1491_v11 = vmul.bf16 %v1489_v24, %v6801_v0  ;;  %v2423_v2 = vrot.slane %v2414_v46, 7  ;;  %v2421_v52 = vrot.slane %v2407_v39, %v6358_v21  ;;  %vm1474_vm3 = vcmask 244736  }
 0x386   : > { %v2371_v63 = vshll.u32 %v2365_v12, 16  ;;  %3013 = vrot.lane.b32.xlu0 %v2933_v14, %s8618_s0  ;;  %v6833_v47 = vrot.slane %v2367_v3, 1  ;;  %v2375_v44 = vshll.u32 %v2364_v13, 16  ;;  %v2384_v10 = vshrl.u32 %v2364_v13, 16 }
 0x387   : > { %3015 = vrot.lane.b32.xlu1 %v2936_v9, %s8618_s0  ;;  %v2381_v60 = vshrl.u32 %v2365_v12, 16  ;;  %v2435_v16 = vcombine.high %v1491_v11, %v1491_v11  ;;  %v2442_v26 = vrot.slane %v1491_v11, %v6358_v21  ;;  %v2422_v3 = vcombine.high %v2414_v46, %v2414_v46 }
 0x388   : > { %v6835_v49 = vrot.slane %v2371_v63, 1  ;;  %v2380_v30 = vor.u32 %v2378_v43, %v6833_v47  ;;  %v6861_v22 = vrot.slane %v2375_v44, 1  ;;  %v2425_v13 = vrot.slane %v2421_v52, 7 }
 0x389   : > { %v2449_v40 = vrot.slane %v2435_v16, %v6358_v21  ;;  %v2424_v12 = vrot.slane %v2422_v3, 7  ;;  %v2452_v14 = vshrl.u32 %v2442_v26, 16  ;;  %v2450_v50 = vcombine.high %v2442_v26, %v2442_v26  ;;  %v1465_v3 = vpop.permute.xlu0 %1464 }
 0x38a   : > { %v5782_v56 = vpack.i.bf16 %v6835_v49, %v6833_v47  ;;  %3011 = vrot.lane.b32.xlu0 %v2930_v18, %s8618_s0  ;;  %v2386_v9 = vor.u32 %v2384_v10, %v6861_v22  ;;  %v2383_v63 = vor.u32 %v2381_v60, %v6835_v49  ;;  %v1494_v44 = vrot.slane %v1493_v35, 6 }
 0x38b   : > { %3027 = vrot.lane.b32.xlu1 %v2954_v1, %s8618_s0  ;;  %v2455_v1 = vshll.u32 %v2442_v26, 16  ;;  %v2454_v19 = vrot.slane %v2452_v14, 5  ;;  %v2468_v18 = vshrl.u32 %v2449_v40, 16  ;;  %v2460_v29 = vshrl.u32 %v2450_v50, 16 }
 0x38c   : > { %v2463_v43 = vshll.u32 %v2450_v50, 16  ;;  %v1496_v60 = vsel %vm8627_vm7, %v1494_v44, %v1493_v35  ;;  %v2961_v35 = vld [vmem:[%s8569_s6 + $0x10] sm:$0xff]  ;;  %v2962_v44 = vld [vmem:[%s8569_s6 + $0x18] sm:$0xff]  ;;  %vm8735_vm7 = vcmask 1031168  }
 0x38d   : > { %v2457_v51 = vrot.slane %v2455_v1, 6  ;;  %v2470_v46 = vrot.slane %v2468_v18, 5  ;;  %v2462_v11 = vrot.slane %v2460_v29, 5  ;;  %v1498_v26 = vmul.bf16 %v1496_v60, %v6801_v0 }
 0x38e   : > { %1452 = vrot.lane.b32.xlu0 %v6751_v54, %s6078_s22  ;;  %s6095_s22 = smov 114   ;;  %v2465_v10 = vrot.slane %v2463_v43, 6  ;;  %v8722_v29 = vshll.u32 %v6405_v42, 16 }
 0x38f   : > { %3019 = vrot.lane.b32.xlu1 %v2942_v53, %s8618_s0  ;;  %v2471_v53 = vshll.u32 %v2449_v40, 16  ;;  %v2458_v24 = vor.u32 %v2457_v51, %v2454_v19  ;;  %v2494_v39 = vrot.slane %v1498_v26, %v6358_v21  ;;  %v1466_v40 = vrot.slane %v1465_v3, 6  ;;  %s6101_s0 = smov 79  }
 0x390   : > { %v2227_v43 = vrot.slane %v8722_v29, 7 }
 0x391   : > { %v2502_v14 = vcombine.low %v2494_v39, %v2494_v39  ;;  %v1468_v50 = vsel %vm1467_vm2, %v1466_v40, %v1465_v3  ;;  %vm8624_vm2 = vcmask 588800  }
 0x392   : > { %1419 = vrot.lane.b32.xlu0 %v6761_v5, %s8665_s20  ;;  %v1470_v19 = vmul.bf16 %v1468_v50, %v6801_v0 }
 0x393   : > { %1431 = vrot.lane.b32.xlu1 %v6743_v4, %s6075_s19  ;;  %s6094_s19 = smov 14  }
 0x396   : > { %2393 = vrot.lane.b32.xlu0 %v2380_v30, %s8712_s29  ;;  %v2473_v30 = vrot.slane %v2471_v53, 6  ;;  %v8721_v53 = vshrl.u32 %v6405_v42, 16 }
 0x397   : > { %1394 = vrot.lane.b32.xlu1 %v6761_v5, %s8671_s23 }
 0x398   : > { %v2474_v16 = vor.u32 %v2473_v30, %v2470_v46  ;;  %v6908_v46 = vld [vmem:[#allocation2 + $0x2] sm:$0x3f] }
 0x39a   : > { %2397 = vrot.lane.b32.xlu0 %v2386_v9, %s8712_s29  ;;  %v2466_v9 = vor.u32 %v2465_v10, %v2462_v11 }
 0x39b   : > { %1445 = vrot.lane.b32.xlu1 %v6761_v5, %s6094_s19  ;;  %s6098_s19 = smov 97  }
 0x39e   : > { %2428 = vrot.lane.b32.xlu0 %v2424_v12, %s8667_s28  ;;  %v1459_v12 = vpop.permute.xlu0 %1458 }
 0x39f   : > { %2395 = vrot.lane.b32.xlu1 %v2383_v63, %s8712_s29  ;;  %v2487_v63 = vcombine.high %v1498_v26, %v1498_v26 }
 0x3a1   : > { %v2501_v1 = vrot.slane %v2487_v63, %v6358_v21 }
 0x3a2   : > { %1412 = vrot.lane.b32.xlu0 %v6755_v62, %s6095_s22  ;;  %s8622_s22 = smov 125  }
 0x3a3   : > { %2426 = vrot.lane.b32.xlu1 %v2423_v2, %s8667_s28  ;;  %v1460_v2 = vrot.slane %v1459_v12, 6  ;;  %v2503_v52 = vcombine.low %v2501_v1, %v2501_v1 }
 0x3a5   : > { %v1461_v51 = vsel %vm8625_vm9, %v1460_v2, %v1459_v12 }
 0x3a6   : > { %2475 = vrot.lane.b32.xlu0 %v2458_v24, %s8671_s23  ;;  %v2279_v24 = vrot.slane %v1470_v19, %v6358_v21  ;;  %v1463_v30 = vmul.bf16 %v6908_v46, %v1461_v51 }
 0x3a7   : > { %2430 = vrot.lane.b32.xlu1 %v2425_v13, %s8667_s28  ;;  %v2226_v13 = vrot.slane %v8721_v53, 6 }
 0x3a8   : > { %v2287_v11 = vcombine.high %v2279_v24, %v2279_v24  ;;  %v2244_v10 = vcombine.high %v1463_v30, %v1463_v30  ;;  %v2251_v63 = vrot.slane %v1463_v30, %v6358_v21 }
 0x3a9   : > { %v2228_v60 = vor.u32 %v2227_v43, %v2226_v13 }
 0x3aa   : > { %2479 = vrot.lane.b32.xlu0 %v2474_v16, %s8671_s23  ;;  %v8724_v16 = vshrl.u32 %v6383_v34, 16  ;;  %v2260_v12 = vrot.slane %v2251_v63, 5  ;;  %v2297_v1 = vshrl.u32 %v2287_v11, 16  ;;  %v2300_v50 = vshll.u32 %v2287_v11, 16 }
 0x3ab   : > { %1438 = vrot.lane.b32.xlu1 %v6755_v62, %s6096_s1  ;;  %v2259_v43 = vcombine.high %v2251_v63, %v2251_v63  ;;  %s6103_s1 = smov 92  }
 0x3ac   : > { %v2223_v26 = vrot.slane %v8724_v16, 6  ;;  %v2299_v53 = vrot.slane %v2297_v1, 3  ;;  %v2302_v13 = vrot.slane %v2300_v50, 4  ;;  %v6946_v1 = vpop.permute.xlu0 %1425 }
 0x3ae   : > { %1400 = vrot.lane.b32.xlu0 %v6751_v54, %s8667_s28  ;;  %v2303_v11 = vor.u32 %v2302_v13, %v2299_v53 }
 0x3af   : > { %2477 = vrot.lane.b32.xlu1 %v2466_v9, %s8671_s23  ;;  %v8725_v9 = vshll.u32 %v6383_v34, 16 }
 0x3b1   : > { %v2224_v3 = vrot.slane %v8725_v9, 7 }
 0x3b2   : > { %2506 = vrot.lane.b32.xlu0 %v2494_v39, %s6097_s25  ;;  %v2272_v39 = vcombine.high %v1470_v19, %v1470_v19 }
 0x3b3   : > { %1354 = vrot.lane.b32.xlu1 %v6751_v54, %s8720_s30  ;;  %v1472_v54 = vpop.permute.xlu1 %1471  ;;  %v2225_v2 = vor.u32 %v2224_v3, %v2223_v26 }
 0x3b4   : > { %v1473_v18 = vrot.slane %v1472_v54, 6 }
 0x3b6   : > { %2975 = vperm.xlu0 %5781, %v2961_v35   ;;  %v1475_v42 = vsel %vm1474_vm3, %v1473_v18, %v1472_v54  ;;  %v8727_v35 = vshll.u32 %v6401_v41, 16  ;;  %v2286_v54 = vrot.slane %v2272_v39, %v6358_v21  ;;  %vm8729_vm3 = vcmask 1031168  }
 0x3b7   : > { %2504 = vrot.lane.b32.xlu1 %v2502_v14, %s6097_s25  ;;  %v1477_v40 = vmul.bf16 %v1475_v42, %v6801_v0  ;;  %v2258_v14 = vrot.slane %v2244_v10, %v6358_v21  ;;  %v2261_v10 = vrot.slane %v2259_v43, 5 }
 0x3b8   : > { %v2230_v51 = vrot.slane %v8727_v35, 7  ;;  %v2305_v30 = vshrl.u32 %v2286_v54, 16  ;;  %v2308_v16 = vshll.u32 %v2286_v54, 16 }
 0x3b9   : > { %v2324_v19 = vcombine.low %v1477_v40, %v1477_v40  ;;  %v2262_v18 = vrot.slane %v2258_v14, 5  ;;  %v2338_v26 = vrot.slane %v1477_v40, %v6358_v21  ;;  %v2960_v40 = vld [vmem:[%s8569_s6 + $0x8] sm:$0xff]  ;;  %v2959_v14 = vld [vmem:[%s8569_s6] sm:$0xff] }
 0x3ba   : > { %1406 = vrot.lane.b32.xlu0 %v6743_v4, %s8723_s26  ;;  %v2307_v3 = vrot.slane %v2305_v30, 3  ;;  %v2310_v63 = vrot.slane %v2308_v16, 4 }
 0x3bb   : > { %2508 = vrot.lane.b32.xlu1 %v2503_v52, %s6097_s25  ;;  %v8726_v52 = vshrl.u32 %v6401_v41, 16  ;;  %v2331_v41 = vrot.slane %v2324_v19, %v6358_v21  ;;  %v2340_v39 = vcombine.low %v2338_v26, %v2338_v26 }
 0x3bd   : > { %v2229_v34 = vrot.slane %v8726_v52, 6  ;;  %v2339_v9 = vcombine.low %v2331_v41, %v2331_v41 }
 0x3be   : > { %2234 = vrot.lane.b32.xlu0 %v2228_v60, %s8669_s18 }
 0x3bf   : > { %2980 = vperm.xlu1 %5780, %v2962_v44   ;;  %v2231_v29 = vor.u32 %v2230_v51, %v2229_v34  ;;  %v2292_v44 = vshll.u32 %v2279_v24, 16 }
 0x3c1   : > { %v2294_v60 = vrot.slane %v2292_v44, 4 }
 0x3c2   : > { %2263 = vrot.lane.b32.xlu0 %v2260_v12, %s8665_s20  ;;  %v2311_v12 = vor.u32 %v2310_v63, %v2307_v3  ;;  %v6968_v3 = vld [vmem:[#allocation2] sm:$0x3f] }
 0x3c3   : > { %1370 = vrot.lane.b32.xlu1 %v6743_v4, %s6098_s19  ;;  %v2289_v4 = vshrl.u32 %v2279_v24, 16  ;;  %s6104_s19 = smov 80  }
 0x3c5   : > { %v2291_v42 = vrot.slane %v2289_v4, 3 }
 0x3c6   : > { %2267 = vrot.lane.b32.xlu0 %v2262_v18, %s8665_s20 }
 0x3c7   : > { %2232 = vrot.lane.b32.xlu1 %v2225_v2, %s8669_s18  ;;  %v2295_v24 = vor.u32 %v2294_v60, %v2291_v42 }
 0x3ca   : > { %2314 = vrot.lane.b32.xlu0 %v2303_v11, %s8622_s22 }
 0x3cb   : > { %2236 = vrot.lane.b32.xlu1 %v2231_v29, %s8669_s18  ;;  %v3030_v50 = vpop.permute.xlu1 %3029 }
 0x3ce   : > { %2341 = vrot.lane.b32.xlu0 %v2339_v9, %s8723_s26 }
 0x3cf   : > { %2265 = vrot.lane.b32.xlu1 %v2261_v10, %s8665_s20 }
 0x3d2   : > { %2345 = vrot.lane.b32.xlu0 %v2340_v39, %s8723_s26 }
 0x3d3   : > { %2312 = vrot.lane.b32.xlu1 %v2295_v24, %s8622_s22 }
 0x3d6   : > { %2970 = vperm.xlu0 %5781, %v2960_v40  }
 0x3d7   : > { %2316 = vrot.lane.b32.xlu1 %v2311_v12, %s8622_s22  ;;  %s6100_s22 = smov 98   ;;  %v5807_v12 = vld [vmem:[#allocation7] sm:$0xff]  }
 0x3db   : > { %2343 = vrot.lane.b32.xlu1 %v2331_v41, %s8723_s26  ;;  %s8733_s26 = smov 96  }
 0x3df   : > { %2965 = vperm.xlu1 %5780, %v2959_v14  }
 0x3e3   : > { %5783 = vrot.lane.b32.xlu1 %v5782_v56, %s8712_s29 }
 0x3e4   : > { %v3010_v2 = vpop.permute.xlu0 %3009 }
 0x3e5   : > { %v3008_v52 = vpop.permute.xlu1 %3007 }
 0x3e6   : > { %v3036_v26 = vsel %vm8625_vm9, %v3008_v52, %v3010_v2 }
 0x3e7   : > { %1387 = vrot.lane.b32.xlu1 %v6755_v62, %s6100_s22  ;;  %s6102_s22 = smov 93  }
 0x3e8   : > { %v3032_v34 = vpop.permute.xlu0 %3031 }
 0x3e9   : > { %v3043_v19 = vsel %vm8625_vm9, %v3030_v50, %v3032_v34 }
 0x3ea   : > { %v3061_v53 = vsel %vm1183_vm10, %v3043_v19, 0  ;;  %v8728_v19 = vmov 0  }
 0x3ec   : > { %v3024_v51 = vpop.permute.xlu0 %3023 }
 0x3ed   : > { %v3006_v35 = vpop.permute.xlu1 %3005 }
 0x3ee   : > { %v3035_v39 = vsel %vm8625_vm9, %v3006_v35, %v3008_v52 }
 0x3f0   : > { %v3026_v47 = vpop.permute.xlu0 %3025 }
 0x3f1   : > { %v3034_v54 = vpop.permute.xlu1 %3033  ;;  %v3041_v4 = vsel %vm8625_vm9, %v3024_v51, %v3026_v47 }
 0x3f2   : > { %v3044_v18 = vsel %vm8625_vm9, %v3032_v34, %v3034_v54  ;;  %v5808_v54 = vld [vmem:[#allocation7 + $0x8] sm:$0xff]  }
 0x3f3   : > { %5461 = vmatprep.subr.msk.bf16.mxu0 %vm1183_vm10, %v3044_v18 }
 0x3f4   : > { %3073 = vmatpush1.bf16.msra.mxu0 %v3061_v53  ;;  %v3022_v56 = vpop.permute.xlu0 %3021 }
 0x3f5   : > { %v3018_v49 = vpop.permute.xlu1 %3017 }
 0x3f8   : > { %v3014_v62 = vpop.permute.xlu0 %3013 }
 0x3f9   : > { %v3016_v13 = vpop.permute.xlu1 %3015 }
 0x3fa   : > { %v3038_v10 = vsel %vm8625_vm9, %v3014_v62, %v3016_v13 }
 0x3fc   : > { %v3012_v44 = vpop.permute.xlu0 %3011 }
 0x3fd   : > { %v3028_v29 = vpop.permute.xlu1 %3027  ;;  %v3037_v16 = vsel %vm8625_vm9, %v3012_v44, %v3014_v62  ;;  %v1427_v44 = vrot.slane %v6946_v1, 6 }
 0x3fe   : > { %v3042_v43 = vsel %vm8625_vm9, %v3026_v47, %v3028_v29 }
 0x3ff   : > { %3074 = vmatprep.subr.bf16.mxu0 %v3042_v43 }
 0x400   : > { %3075 = vmatpush1.bf16.msra.mxu0 %v3041_v4  ;;  %v6962_v42 = vpop.permute.xlu0 %1452 }
 0x401   : > { %v3020_v30 = vpop.permute.xlu1 %3019 }
 0x402   : > { %v3040_v11 = vsel %vm8625_vm9, %v3020_v30, %v3022_v56  ;;  %v3039_v41 = vsel %vm8625_vm9, %v3018_v49, %v3020_v30 }
 0x403   : > { %3076 = vmatprep.subr.bf16.mxu0 %v3040_v11 }
 0x404   : > { %3077 = vmatpush1.bf16.msra.mxu0 %v3039_v41  ;;  %v1420_v9 = vpop.permute.xlu0 %1419 }
 0x405   : > { %v6964_v60 = vpop.permute.xlu1 %1431  ;;  %3078 = vmatprep.subr.bf16.mxu0 %v3038_v10  ;;  %v1421_v41 = vrot.slane %v1420_v9, 6 }
 0x408   : > { %3079 = vmatpush1.bf16.msra.mxu0 %v3037_v16  ;;  %v2394_v14 = vpop.permute.xlu0 %2393 }
 0x409   : > { %v1395_v24 = vpop.permute.xlu1 %1394  ;;  %3080 = vmatprep.subr.bf16.mxu0 %v3036_v26  ;;  %v1422_v26 = vsel %vm8729_vm3, %v1421_v41, %v1420_v9  ;;  %vm8634_vm3 = vcmask 891904  }
 0x40a   : > { %v1396_v63 = vrot.slane %v1395_v24, 6 }
 0x40c   : > { %v1397_v40 = vsel %vm8644_vm6, %v1396_v63, %v1395_v24  ;;  %3081 = vmatpush1.bf16.msra.mxu0 %v3035_v39  ;;  %v2398_v51 = vpop.permute.xlu0 %2397  ;;  %v7000_v39 = vld [vmem:[#allocation2] sm:$0x3f] }
 0x40d   : > { %v1399_v50 = vmul.bf16 %v1397_v40, %v6968_v3  ;;  %v6973_v34 = vpop.permute.xlu1 %1445 }
 0x40f   : > { %v6976_v2 = vrot.slane %v1399_v50, %v6358_v21  ;;  %5462 = vmatmul.mubr.msk.bf16.vlgmr.msra.gmra.mxu0 %vm8624_vm2, %v5807_v12  ;;  %v1680_v29 = vcombine.high %v1399_v50, %v1399_v50 }
 0x410   : > { %3108 = vmatprep.mubr.bf16.mxu0 %v8728_v19  ;;  %v2429_v53 = vpop.permute.xlu0 %2428 }
 0x411   : > { %v1695_v52 = vcombine.high %v6976_v2, %v6976_v2  ;;  %v2396_v35 = vpop.permute.xlu1 %2395  ;;  %v6992_v11 = vrot.slane %v1680_v29, %v6358_v21 }
 0x412   : > { %v2401_v40 = vsel %vm8643_vm0, %v2394_v14, %v2396_v35  ;;  %v2402_v14 = vsel %vm8643_vm0, %v2396_v35, %v2398_v51 }
 0x413   : > { %v1701_v18 = vshll.u32 %v1695_v52, 16  ;;  %v1711_v62 = vshrl.u32 %v1695_v52, 16  ;;  %v1705_v63 = vshll.u32 %v6992_v11, 16  ;;  %v1697_v52 = vshll.u32 %v6976_v2, 16 }
 0x414   : > { %v6984_v13 = vpop.permute.xlu0 %1412 }
 0x415   : > { %v2427_v47 = vpop.permute.xlu1 %2426  ;;  %v1703_v49 = vrot.slane %v1701_v18, 1  ;;  %v7018_v29 = vrot.slane %v1697_v52, 1 }
 0x416   : > { %v2432_v50 = vsel %vm8645_vm12, %v2427_v47, %v2429_v53 }
 0x417   : > { %5463 = vmatmul.mubr.msk.bf16.gmra.mxu0 %vm8624_vm2, %v5808_v54  ;;  %v5787_v56 = vpack.i.bf16 %v1703_v49, %v6861_v22  ;;  %v6988_v4 = vor.u32 %v1711_v62, %v1703_v49  ;;  %v1428_v22 = vsel %vm8639_vm8, %v1427_v44, %v6946_v1  ;;  %v1424_v54 = vmul.bf16 %v1422_v26, %v6968_v3 }
 0x418   : > { %3844 = vmatprep.mubr.bf16.mxu0 %v8728_v19  ;;  %v2476_v30 = vpop.permute.xlu0 %2475  ;;  %v1430_v12 = vmul.bf16 %v7000_v39, %v1428_v22  ;;  %vm8730_vm2 = vcmask 1040384  }
 0x419   : > { %v2431_v43 = vpop.permute.xlu1 %2430  ;;  %5788 = vrot.lane.b32.xlu0 %v5787_v56, %s8712_s29  ;;  %v2547_v1 = vsel %vm8730_vm2, %v2401_v40, %v2432_v50  ;;  %v7013_v56 = vrot.slane %v1705_v63, 1  ;;  %v1872_v44 = vrot.slane %v1424_v54, %v6358_v21  ;;  %vm8731_vm9 = vmmov %vm8730_vm2 }
 0x41a   : > { %v1903_v62 = vrot.slane %v1430_v12, %v6358_v21  ;;  %v2433_v47 = vsel %vm8645_vm12, %v2429_v53, %v2431_v43  ;;  %v2555_v41 = vsel %vm8731_vm9, %v2398_v51, %v2431_v43  ;;  %v1896_v53 = vcombine.high %v1430_v12, %v1430_v12 }
 0x41b   : > { %v2551_v26 = vsel %vm8730_vm2, %v2402_v14, %v2433_v47  ;;  %v1865_v43 = vcombine.high %v1424_v54, %v1424_v54  ;;  %vm8734_vm9 = vcmask 121856   ;;  %vm8641_vm2 = vcmask 1022976  }
 0x41c   : > { %v2480_v16 = vpop.permute.xlu0 %2479  ;;  %v1911_v50 = vcombine.high %v1903_v62, %v1903_v62  ;;  %v1910_v14 = vrot.slane %v1896_v53, %v6358_v21 }
 0x41d   : > { %v6994_v10 = vpop.permute.xlu1 %1438  ;;  %v2559_v17 = vsel %vm6533_vm13, %v2555_v41, %v2480_v16  ;;  %v1879_v41 = vrot.slane %v1865_v43, %v6358_v21 }
 0x420   : > { %v7007_v18 = vpop.permute.xlu0 %1400 }
 0x421   : > { %v2478_v24 = vpop.permute.xlu1 %2477 }
 0x422   : > { %v2481_v9 = vsel %vm8644_vm6, %v2476_v30, %v2478_v24  ;;  %v2482_v63 = vsel %vm8644_vm6, %v2478_v24, %v2480_v16  ;;  %vm2198_vm6 = vsmask.f32 6400 }
 0x423   : > { %v2557_v30 = vsel %vm6533_vm13, %v2547_v1, %v2481_v9  ;;  %v2558_v24 = vsel %vm6533_vm13, %v2551_v26, %v2482_v63  ;;  %v1880_v1 = vcombine.high %v1872_v44, %v1872_v44  ;;  %v1923_v26 = vshll.u32 %v1911_v50, 16 }
 0x424   : > { %v2507_v22 = vpop.permute.xlu0 %2506  ;;  %v1927_v63 = vshrl.u32 %v1910_v14, 16 }
 0x425   : > { %v7011_v49 = vpop.permute.xlu1 %1354  ;;  %v1882_v54 = vrot.slane %v1880_v1, 1 }
 0x426   : > { %v1929_v53 = vrot.slane %v1927_v63, 7 }
 0x429   : > { %v2505_v40 = vpop.permute.xlu1 %2504 }
 0x42a   : > { %v2510_v52 = vsel %vm8634_vm3, %v2505_v40, %v2507_v22  ;;  %v1920_v40 = vshrl.u32 %v1911_v50, 16 }
 0x42b   : > { %v2562_v51 = vsel %vm1183_vm10, %v2557_v30, %v2510_v52  ;;  %v1930_v52 = vshll.u32 %v1910_v14, 16 }
 0x42c   : > { %2581 = vrot.lane.b32.xlu0 %v2562_v51, %s6101_s0  ;;  %v1922_v30 = vrot.slane %v1920_v40, 7  ;;  %v1913_v51 = vshrl.u32 %v1903_v62, 16 }
 0x42d   : > { %v2509_v9 = vpop.permute.xlu1 %2508  ;;  %v1932_v50 = vor.u32 %v1930_v52, %v1929_v53 }
 0x42e   : > { %v2511_v12 = vsel %vm8634_vm3, %v2507_v22, %v2509_v9  ;;  %v2568_v47 = vsel %vm1183_vm10, %v2559_v17, %v2509_v9  ;;  %v1883_v22 = vrot.slane %v1879_v41, 1  ;;  %v1925_v17 = vor.u32 %v1923_v26, %v1922_v30 }
 0x42f   : > { %v2565_v16 = vsel %vm1183_vm10, %v2558_v24, %v2511_v12  ;;  %v1881_v24 = vrot.slane %v1872_v44, 1  ;;  %v1915_v9 = vrot.slane %v1913_v51, 7  ;;  %v1916_v12 = vshll.u32 %v1903_v62, 16 }
 0x430   : > { %2583 = vrot.lane.b32.xlu1 %v2565_v16, %s6101_s0  ;;  %2585 = vrot.lane.b32.xlu0 %v2568_v47, %s6101_s0  ;;  %v1944_v44 = vcombine.high %v6390_v37, %v6390_v37  ;;  %v1454_v26 = vrot.slane %v6962_v42, 6  ;;  %vm8738_vm3 = vcmask 1031168  }
 0x431   : > { %v7047_v1 = vpop.permute.xlu0 %2975  ;;  %v1918_v14 = vor.u32 %v1916_v12, %v1915_v9 }
 0x434   : > { %1338 = vrot.lane.b32.xlu1 %v6761_v5, %s8732_s21  ;;  %1886 = vrot.lane.b32.xlu0 %v1882_v54, %s8733_s26 }
 0x435   : > { %v7055_v47 = vpop.permute.xlu0 %1406 }
 0x438   : > { %1888 = vrot.lane.b32.xlu1 %v1883_v22, %s8733_s26  ;;  %1935 = vrot.lane.b32.xlu0 %v1925_v17, %s8720_s30  ;;  %v1455_v17 = vsel %vm8734_vm9, %v1454_v26, %v6962_v42  ;;  %vm8736_vm9 = vcmask 924672  }
 0x439   : > { %v2235_v62 = vpop.permute.xlu0 %2234 }
 0x43a   : > { %v7049_v43 = vpop.permute.xlu1 %2980 }
 0x43c   : > { %1937 = vrot.lane.b32.xlu1 %v1932_v50, %s8720_s30  ;;  %1884 = vrot.lane.b32.xlu0 %v1881_v24, %s8733_s26 }
 0x43d   : > { %v2264_v41 = vpop.permute.xlu0 %2263 }
 0x43e   : > { %v7053_v5 = vpop.permute.xlu1 %1370 }
 0x440   : > { %1933 = vrot.lane.b32.xlu1 %v1918_v14, %s8720_s30  ;;  %1945 = vrot.lane.b32.xlu0 %v6390_v37, %s8732_s21  ;;  %v1457_v37 = vmul.bf16 %v6908_v46, %v1455_v17 }
 0x441   : > { %v2268_v63 = vpop.permute.xlu0 %2267 }
 0x442   : > { %v2233_v40 = vpop.permute.xlu1 %2232  ;;  %v2211_v50 = vrot.slane %v1457_v37, %v6358_v21 }
 0x443   : > { %v2238_v24 = vsel %vm8639_vm8, %v2233_v40, %v2235_v62 }
 0x444   : > { %1947 = vrot.lane.b32.xlu1 %v1944_v44, %s8732_s21  ;;  %v2512_v44 = vsel %vm6336_vm4, %v2211_v50, %v2238_v24  ;;  %v1433_v24 = vrot.slane %v6964_v60, 6 }
 0x445   : > { %v2315_v52 = vpop.permute.xlu0 %2314 }
 0x446   : > { %v2237_v16 = vpop.permute.xlu1 %2236 }
 0x449   : > { %v2342_v14 = vpop.permute.xlu0 %2341 }
 0x44a   : > { %v2266_v54 = vpop.permute.xlu1 %2265 }
 0x44b   : > { %v2269_v9 = vsel %vm8735_vm7, %v2264_v41, %v2266_v54  ;;  %vm8737_vm7 = vcmask 7168   ;;  %v2270_v36 = vsel %vm8738_vm3, %v2266_v54, %v2268_v63  ;;  %vm8740_vm3 = vcmask 777216  }
 0x44c   : > { %v2517_v17 = vsel %vm8640_vm1, %v2512_v44, %v2269_v9 }
 0x44e   : > { %v2313_v30 = vpop.permute.xlu1 %2312 }
 0x44f   : > { %v2318_v12 = vsel %vm8641_vm2, %v2313_v30, %v2315_v52 }
 0x450   : > { %v2527_v40 = vsel %vm6578_vm5, %v2517_v17, %v2318_v12  ;;  %v2346_v17 = vpop.permute.xlu0 %2345 }
 0x452   : > { %v7064_v22 = vpop.permute.xlu1 %2316 }
 0x453   : > { %v2319_v45 = vsel %vm8641_vm2, %v2315_v52, %v7064_v22  ;;  %vm8759_vm2 = vcmask 777216  }
 0x456   : > { %v2344_v53 = vpop.permute.xlu1 %2343 }
 0x457   : > { %v2347_v42 = vsel %vm8736_vm9, %v2342_v14, %v2344_v53  ;;  %v1434_v14 = vsel %vm8737_vm7, %v1433_v24, %v6964_v60  ;;  %vm1448_vm9 = vcmask 113664   ;;  %vm1441_vm7 = vcmask 15360   ;;  %v7096_v60 = vpop.permute.xlu0 %2970 }
 0x458   : > { %v2532_v41 = vsel %vm8642_vm14, %v2527_v40, %v2347_v42  ;;  %v1436_v9 = vmul.bf16 %v6908_v46, %v1434_v14  ;;  %v1447_v40 = vrot.slane %v6973_v34, 6  ;;  %v2239_v14 = vsel %vm8639_vm8, %v2235_v62, %v2237_v16 }
 0x459   : > { %vm8739_vm8 = vcmask 924672  }
 0x45a   : > { %v7069_v51 = vpop.permute.xlu1 %2965  ;;  %v1958_v44 = vrot.slane %v1436_v9, %v6358_v21  ;;  %v1449_v27 = vsel %vm1448_vm9, %v1447_v40, %v6973_v34  ;;  %vm8741_vm9 = vcmask 924672  }
 0x45c   : > { %v1966_v12 = vcombine.high %v1958_v44, %v1958_v44  ;;  %v1968_v24 = vshrl.u32 %v1958_v44, 16 }
 0x45e   : > { %v5784_v26 = vpop.permute.xlu1 %5783  ;;  %v1979_v46 = vshll.u32 %v1966_v12, 16 }
 0x45f   : > { %v5786_v35 = vunpack.i.h.bf16 %v5784_v26  ;;  %v5785_v28 = vunpack.i.l.bf16 %v5784_v26  ;;  %v2204_v26 = vcombine.high %v1457_v37, %v1457_v37 }
 0x461   : > { %v2399_v19 = vsel %vm8643_vm0, %v5785_v28, %v5786_v35  ;;  %v1951_v28 = vcombine.high %v1436_v9, %v1436_v9  ;;  %v2218_v42 = vrot.slane %v2204_v26, %v6358_v21  ;;  %v1971_v9 = vshll.u32 %v1958_v44, 16 }
 0x462   : > { %v2542_v30 = vsel %vm6599_vm11, %v2532_v41, %v2399_v19  ;;  %v1440_v19 = vrot.slane %v6994_v10, 6  ;;  %v2219_v26 = vcombine.high %v2211_v50, %v2211_v50  ;;  %v1981_v50 = vrot.slane %v1979_v46, 5 }
 0x463   : > { %2575 = vrot.lane.b32.xlu0 %v2542_v30, %s6101_s0  ;;  %v2514_v41 = vsel %vm6336_vm4, %v2218_v42, %v2237_v16  ;;  %v1976_v30 = vshrl.u32 %v1966_v12, 16  ;;  %v1965_v37 = vrot.slane %v1951_v28, %v6358_v21  ;;  %v2348_v16 = vsel %vm8739_vm8, %v2344_v53, %v2346_v17 }
 0x464   : > { %v2525_v31 = vsel %vm8640_vm1, %v2514_v41, %v2268_v63  ;;  %v1442_v42 = vsel %vm1441_vm7, %v1440_v19, %v6994_v10  ;;  %v2513_v62 = vsel %vm6336_vm4, %v2219_v26, %v2239_v14  ;;  %v1970_v44 = vrot.slane %v1968_v24, 4 }
 0x465   : > { %v2529_v12 = vsel %vm6578_vm5, %v2525_v31, %v7064_v22  ;;  %v1978_v28 = vrot.slane %v1976_v30, 4  ;;  %v2521_v54 = vsel %vm8640_vm1, %v2513_v62, %v2270_v36  ;;  %v1973_v63 = vrot.slane %v1971_v9, 5 }
 0x466   : > { %v1984_v52 = vshrl.u32 %v1965_v37, 16  ;;  %v1444_v40 = vmul.bf16 %v1442_v42, %v6801_v0  ;;  %v2528_v31 = vsel %vm6578_vm5, %v2521_v54, %v2319_v45  ;;  %v2540_v22 = vsel %vm8642_vm14, %v2529_v12, %v2346_v17 }
 0x467   : > { %v1987_v19 = vshll.u32 %v1965_v37, 16  ;;  %v1402_v53 = vrot.slane %v7007_v18, 6  ;;  %v2536_v36 = vsel %vm8642_vm14, %v2528_v31, %v2348_v16  ;;  %v1451_v24 = vmul.bf16 %v1449_v27, %v6801_v0 }
 0x468   : > { %v2004_v45 = vcombine.high %v1444_v40, %v1444_v40  ;;  %v2011_v17 = vrot.slane %v1444_v40, %v6358_v21  ;;  %v1982_v37 = vor.u32 %v1981_v50, %v1978_v28  ;;  %v1974_v9 = vor.u32 %v1973_v63, %v1970_v44 }
 0x469   : > { %v1403_v14 = vsel %vm8645_vm12, %v1402_v53, %v7007_v18  ;;  %v1989_v26 = vrot.slane %v1987_v19, 5  ;;  %v2040_v42 = vrot.slane %v1451_v24, %v6358_v21  ;;  %v2033_v28 = vcombine.high %v1451_v24, %v1451_v24 }
 0x46a   : > { %v1405_v12 = vmul.bf16 %v7000_v39, %v1403_v14  ;;  %v2020_v27 = vrot.slane %v2011_v17, 3  ;;  %v2018_v0 = vrot.slane %v2004_v45, %v6358_v21  ;;  %v2019_v16 = vcombine.high %v2011_v17, %v2011_v17 }
 0x46b   : > { %v2048_v50 = vcombine.high %v2040_v42, %v2040_v42  ;;  %vm1415_vm8 = vcmask 932864   ;;  %v1714_v63 = vshrl.u32 %v6992_v11, 16  ;;  %v1414_v40 = vrot.slane %v6984_v13, 6 }
 0x46c   : > { %v1737_v18 = vcombine.high %v1405_v12, %v1405_v12  ;;  %v2022_v44 = vrot.slane %v2018_v0, 3  ;;  %v7137_v54 = vrot.slane %v1405_v12, %v6358_v21  ;;  %vm1373_vm7 = vcmask 793600  }
 0x46d   : > { %v2058_v31 = vshrl.u32 %v2048_v50, 16  ;;  %v1716_v19 = vor.u32 %v1714_v63, %v7013_v56  ;;  %v1416_v11 = vsel %vm1415_vm8, %v1414_v40, %v6984_v13  ;;  %vm1390_vm8 = vcmask 801792  }
 0x46e   : > { %v1751_v53 = vrot.slane %v1737_v18, %v6358_v21  ;;  %v1418_v12 = vmul.bf16 %v1416_v11, %v6968_v3  ;;  %vm2029_vm14 = vcmask 752640  }
 0x470   : > { %v1755_v45 = vrot.slane %v1751_v53, 7  ;;  %v7165_v63 = vrot.slane %v1418_v12, %v6358_v21  ;;  %v1812_v53 = vcombine.high %v1418_v12, %v1418_v12 }
 0x48b   : > { %v7112_v34 = vpop.permute.xlu0 %5788 }
 0x48c   : > { %v5790_v10 = vunpack.i.l.bf16 %v7112_v34 }
 0x48e   : > { %v2544_v41 = vsel %vm6599_vm11, %v2540_v22, %v5790_v10  ;;  %v2400_v30 = vsel %vm8643_vm0, %v5786_v35, %v5790_v10  ;;  %v1986_v35 = vrot.slane %v1984_v52, 4  ;;  %v2021_v10 = vrot.slane %v2019_v16, 3 }
 0x48f   : > { %2579 = vrot.lane.b32.xlu0 %v2544_v41, %s6101_s0  ;;  %v2543_v46 = vsel %vm6599_vm11, %v2536_v36, %v2400_v30  ;;  %v2047_v52 = vrot.slane %v2033_v28, %v6358_v21  ;;  %v2061_v22 = vshll.u32 %v2048_v50, 16  ;;  %v2050_v41 = vshrl.u32 %v2040_v42, 16 }
 0x490   : > { %2577 = vrot.lane.b32.xlu1 %v2543_v46, %s6101_s0  ;;  %v1990_v62 = vor.u32 %v1989_v26, %v1986_v35  ;;  %v2053_v30 = vshll.u32 %v2040_v42, 16  ;;  %v1752_v36 = vcombine.high %v7137_v54, %v7137_v54  ;;  %v2060_v46 = vrot.slane %v2058_v31, 1  ;;  %s6105_s0 = smov 108  }
 0x491   : > { %v2063_v24 = vrot.slane %v2061_v22, 2  ;;  %v2052_v17 = vrot.slane %v2050_v41, 1  ;;  %v2066_v14 = vshrl.u32 %v2047_v52, 16  ;;  %v1408_v35 = vrot.slane %v7055_v47, 6 }
 0x492   : > { %v1754_v26 = vrot.slane %v1752_v36, 7  ;;  %v2069_v42 = vshll.u32 %v2047_v52, 16  ;;  %v1708_v28 = vshrl.u32 %v6976_v2, 16  ;;  %v8742_v50 = vshrl.u32 %v6417_v48, 16 }
 0x493   : > { %1993 = vrot.lane.b32.xlu0 %v1982_v37, %s6102_s22  ;;  %v2055_v37 = vrot.slane %v2053_v30, 2  ;;  %v2064_v13 = vor.u32 %v2063_v24, %v2060_v46  ;;  %v1409_v0 = vsel %vm8741_vm9, %v1408_v35, %v7055_v47  ;;  %v8744_v31 = vshrl.u32 %v6394_v38, 16 }
 0x494   : > { %1991 = vrot.lane.b32.xlu1 %v1974_v9, %s6102_s22  ;;  %v1356_v9 = vrot.slane %v7011_v49, 6  ;;  %v2071_v16 = vrot.slane %v2069_v42, 2  ;;  %v1767_v18 = vrot.slane %v8742_v50, 5  ;;  %v1411_v47 = vmul.bf16 %v7000_v39, %v1409_v0 }
 0x495   : > { %v1710_v52 = vor.u32 %v1708_v28, %v7018_v29  ;;  %v1764_v22 = vrot.slane %v8744_v31, 5  ;;  %v1827_v41 = vcombine.high %v7165_v63, %v7165_v63  ;;  %v8746_v30 = vshrl.u32 %v6437_v59, 16 }
 0x496   : > { %v8747_v36 = vshll.u32 %v6437_v59, 16  ;;  %v1785_v24 = vcombine.high %v1411_v47, %v1411_v47  ;;  %v1372_v42 = vrot.slane %v7053_v5, 6  ;;  %v1792_v28 = vrot.slane %v1411_v47, %v6358_v21 }
 0x497   : > { %2023 = vrot.lane.b32.xlu0 %v2020_v27, %s6103_s1  ;;  %v1357_v27 = vsel %vm8740_vm3, %v1356_v9, %v7011_v49  ;;  %v1770_v39 = vrot.slane %v8746_v30, 5  ;;  %v1840_v9 = vshll.u32 %v1827_v41, 16  ;;  %v1832_v31 = vshll.u32 %v7165_v63, 16 }
 0x498   : > { %1995 = vrot.lane.b32.xlu1 %v1990_v62, %s6102_s22  ;;  %v2068_v62 = vrot.slane %v2066_v14, 1  ;;  %v1359_v49 = vmul.bf16 %v1357_v27, %v6968_v3  ;;  %v1771_v11 = vrot.slane %v8747_v36, 6  ;;  %v1837_v14 = vshrl.u32 %v1827_v41, 16  ;;  %s6106_s22 = smov 124  }
 0x499   : > { %v1799_v35 = vrot.slane %v1785_v24, %v6358_v21  ;;  %v1842_v12 = vrot.slane %v1840_v9, 3  ;;  %v1374_v50 = vsel %vm1373_vm7, %v1372_v42, %v7053_v5  ;;  %v1579_v5 = vrot.slane %v6968_v3, %v6358_v21  ;;  %vm8761_vm7 = vmmov %vm8759_vm2 }
 0x49a   : > { %v2072_v40 = vor.u32 %v2071_v16, %v2068_v62  ;;  %v7182_v46 = vrot.slane %v1359_v49, %v6358_v21  ;;  %vm2587_vm3 = vcmask 646144   ;;  %vm2162_vm9 = vsmask.f32 256 }
 0x49b   : > { %2027 = vrot.lane.b32.xlu0 %v2022_v44, %s6103_s1  ;;  %v8743_v44 = vshll.u32 %v6417_v48, 16  ;;  %v8745_v48 = vshll.u32 %v6394_v38, 16  ;;  %v1801_v27 = vcombine.low %v1799_v35, %v1799_v35  ;;  %vm2151_vm0 = vcmask 1046528  }
 0x49c   : > { %2025 = vrot.lane.b32.xlu1 %v2021_v10, %s6103_s1  ;;  %v1535_v59 = vcombine.high %v7182_v46, %v7182_v46  ;;  %v1537_v36 = vshrl.u32 %v7182_v46, 16  ;;  %s8750_s1 = smov 34  }
 0x49d   : > { %v1768_v10 = vrot.slane %v8743_v44, 6 }
 0x49e   : > { %v1545_v0 = vshrl.u32 %v1535_v59, 16  ;;  %v1548_v62 = vshll.u32 %v1535_v59, 16  ;;  %v1539_v42 = vrot.slane %v1537_v36, 6 }
 0x49f   : > { %1727 = vrot.lane.b32.xlu0 %v1716_v19, %s8712_s29  ;;  %v1769_v2 = vor.u32 %v1768_v10, %v1767_v18  ;;  %v1765_v19 = vrot.slane %v8745_v48, 6 }
 0x4a0   : > { %1725 = vrot.lane.b32.xlu1 %v6988_v4, %s8712_s29  ;;  %v2056_v4 = vor.u32 %v2055_v37, %v2052_v17  ;;  %v1826_v17 = vrot.slane %v1812_v53, %v6358_v21  ;;  %v1772_v37 = vor.u32 %v1771_v11, %v1770_v39  ;;  %v1834_v39 = vrot.slane %v1832_v31, 3 }
 0x4a1   : > { %v1766_v38 = vor.u32 %v1765_v19, %v1764_v22  ;;  %v1800_v22 = vcombine.low %v1792_v28, %v1792_v28 }
 0x4a3   : > { %1760 = vrot.lane.b32.xlu0 %v1755_v45, %s8667_s28  ;;  %v1753_v45 = vrot.slane %v7137_v54, 7  ;;  %v1839_v54 = vrot.slane %v1837_v14, 2  ;;  %v1572_v14 = vcombine.high %v6968_v3, %v6968_v3 }
 0x4a4   : > { %1758 = vrot.lane.b32.xlu1 %v1754_v26, %s8667_s28  ;;  %v1520_v26 = vcombine.high %v1359_v49, %v1359_v49  ;;  %v1829_v49 = vshrl.u32 %v7165_v63, 16 }
 0x4a5   : > { %v1843_v18 = vor.u32 %v1842_v12, %v1839_v54 }
 0x4a6   : > { %v1534_v16 = vrot.slane %v1520_v26, %v6358_v21  ;;  %v1831_v53 = vrot.slane %v1829_v49, 2 }
 0x4a7   : > { %2075 = vrot.lane.b32.xlu0 %v2064_v13, %s6104_s19  ;;  %v1845_v13 = vshrl.u32 %v1826_v17, 16 }
 0x4a8   : > { %2073 = vrot.lane.b32.xlu1 %v2056_v4, %s6104_s19  ;;  %v1848_v4 = vshll.u32 %v1826_v17, 16  ;;  %v1553_v48 = vshrl.u32 %v1534_v16, 16  ;;  %v1556_v47 = vshll.u32 %v1534_v16, 16  ;;  %v1587_v17 = vcombine.high %v1579_v5, %v1579_v5 }
 0x4a9   : > { %v1847_v44 = vrot.slane %v1845_v13, 2  ;;  %v1835_v59 = vor.u32 %v1834_v39, %v1831_v53  ;;  %v1586_v13 = vrot.slane %v1572_v14, %v6358_v21 }
 0x4aa   : > { %v1850_v10 = vrot.slane %v1848_v4, 3  ;;  %v1555_v63 = vrot.slane %v1553_v48, 6  ;;  %v1558_v24 = vrot.slane %v1556_v47, 7  ;;  %v1589_v12 = vrot.slane %v1587_v17, 5 }
 0x4ab   : > { %1723 = vrot.lane.b32.xlu0 %v1710_v52, %s8712_s29  ;;  %v1376_v52 = vmul.bf16 %v1374_v50, %v6968_v3  ;;  %v1588_v50 = vrot.slane %v1579_v5, 5 }
 0x4ac   : > { %2077 = vrot.lane.b32.xlu1 %v2072_v40, %s6104_s19  ;;  %v1547_v40 = vrot.slane %v1545_v0, 6  ;;  %v1851_v19 = vor.u32 %v1850_v10, %v1847_v44  ;;  %v1559_v26 = vor.u32 %v1558_v24, %v1555_v63  ;;  %s8815_s19 = smov 17  }
 0x4ad   : > { %v1600_v41 = vcombine.high %v1376_v52, %v1376_v52  ;;  %v1607_v11 = vrot.slane %v1376_v52, %v6358_v21 }
 0x4af   : > { %1775 = vrot.lane.b32.xlu0 %v1769_v2, %s8671_s23  ;;  %v1550_v2 = vrot.slane %v1548_v62, 7  ;;  %v1614_v9 = vrot.slane %v1600_v41, %v6358_v21  ;;  %v1615_v35 = vcombine.high %v1607_v11, %v1607_v11 }
 0x4b0   : > { %1756 = vrot.lane.b32.xlu1 %v1753_v45, %s8667_s28  ;;  %v1540_v45 = vshll.u32 %v7182_v46, 16 }
 0x4b1   : > { %v1551_v30 = vor.u32 %v1550_v2, %v1547_v40  ;;  %v1633_v4 = vshrl.u32 %v1614_v9, 16  ;;  %v1625_v62 = vshrl.u32 %v1615_v35, 16  ;;  %v1628_v16 = vshll.u32 %v1615_v35, 16  ;;  %v7230_v35 = vld [vmem:[#allocation4 + $0x3c] sm:$0xf] }
 0x4b2   : > { %v1542_v54 = vrot.slane %v1540_v45, 7  ;;  %v1617_v40 = vshrl.u32 %v1607_v11, 16  ;;  %v1620_v2 = vshll.u32 %v1607_v11, 16 }
 0x4b3   : > { %1773 = vrot.lane.b32.xlu0 %v1766_v38, %s8671_s23  ;;  %v1388_v38 = vpop.permute.xlu1 %1387  ;;  %v1635_v44 = vrot.slane %v1633_v4, 3  ;;  %v1627_v49 = vrot.slane %v1625_v62, 3  ;;  %v1630_v52 = vrot.slane %v1628_v16, 4  ;;  %v7236_v4 = vld [vmem:[#allocation4 + $0xc] sm:$0xf] }
 0x4b4   : > { %1777 = vrot.lane.b32.xlu1 %v1772_v37, %s8671_s23  ;;  %v1389_v37 = vrot.slane %v1388_v38, 6  ;;  %v1543_v0 = vor.u32 %v1542_v54, %v1539_v42  ;;  %v1622_v47 = vrot.slane %v1620_v2, 4 }
 0x4b5   : > { %v1631_v48 = vor.u32 %v1630_v52, %v1627_v49 }
 0x4b6   : > { %v1391_v46 = vsel %vm1390_vm8, %v1389_v37, %v1388_v38  ;;  %vm8755_vm8 = vcmask 785408  }
 0x4b7   : > { %1806 = vrot.lane.b32.xlu0 %v1801_v27, %s6097_s25  ;;  %v1636_v27 = vshll.u32 %v1614_v9, 16  ;;  %vm8760_vm12 = vmmov %vm8755_vm8 }
 0x4b8   : > { %1804 = vrot.lane.b32.xlu1 %v1792_v28, %s6097_s25  ;;  %v1393_v28 = vmul.bf16 %v1391_v46, %v6968_v3  ;;  %v1619_v3 = vrot.slane %v1617_v40, 3  ;;  %v2584_v40 = vpop.permute.xlu1 %2583 }
 0x4b9   : > { %v1638_v10 = vrot.slane %v1636_v27, 4  ;;  %v7238_v27 = vld [vmem:[#allocation4 + $0x1c] sm:$0xf] }
 0x4ba   : > { %v1653_v31 = vcombine.low %v1393_v28, %v1393_v28  ;;  %v1623_v36 = vor.u32 %v1622_v47, %v1619_v3  ;;  %v5510_v16 = vcombine.low %v7236_v4, %v7238_v27 }
 0x4bb   : > { %1854 = vrot.lane.b32.xlu0 %v1843_v18, %s6105_s0  ;;  %v1590_v18 = vrot.slane %v1586_v13, 5 }
 0x4bc   : > { %1802 = vrot.lane.b32.xlu1 %v1800_v22, %s6097_s25  ;;  %v1639_v22 = vor.u32 %v1638_v10, %v1635_v44  ;;  %s8748_s25 = smov 125   ;;  %v1660_v5 = vrot.slane %v1653_v31, %v6358_v21  ;;  %v8749_v10 = vpack.i.bf16 %v7018_v29, %v7013_v56 }
 0x4be   : > { %v1668_v63 = vcombine.low %v1660_v5, %v1660_v5 }
 0x4bf   : > { %1562 = vrot.lane.b32.xlu0 %v1551_v30, %s8669_s18  ;;  %v1667_v30 = vrot.slane %v1393_v28, %v6358_v21 }
 0x4c0   : > { %1856 = vrot.lane.b32.xlu1 %v1851_v19, %s6105_s0 }
 0x4c1   : > { %v1669_v37 = vcombine.low %v1667_v30, %v1667_v30 }
 0x4c3   : > { %1852 = vrot.lane.b32.xlu0 %v1835_v59, %s6105_s0  ;;  %v7228_v59 = vld [vmem:[#allocation4 + $0x2c] sm:$0xf] }
 0x4c4   : > { %1564 = vrot.lane.b32.xlu1 %v1559_v26, %s8669_s18  ;;  %v5513_v26 = vcombine.low %v7228_v59, %v7230_v35 }
 0x4c7   : > { %1593 = vrot.lane.b32.xlu0 %v1589_v12, %s8665_s20 }
 0x4c8   : > { %1560 = vrot.lane.b32.xlu1 %v1543_v0, %s8669_s18 }
 0x4cb   : > { %1591 = vrot.lane.b32.xlu0 %v1588_v50, %s8665_s20 }
 0x4cc   : > { %1595 = vrot.lane.b32.xlu1 %v1590_v18, %s8665_s20  ;;  %v2582_v18 = vpop.permute.xlu0 %2581 }
 0x4cd   : > { %v2590_v47 = vsel %vm2587_vm3, %v2582_v18, %v2584_v40 }
 0x4cf   : > { %v3100_v19 = vpop.f32.mrf.mxu0  ;;  %1644 = vrot.lane.b32.xlu0 %v1639_v22, %s8748_s25 }
 0x4d0   : > { %v3101_v53 = vadd.f32 %v3100_v19, %v7069_v51  ;;  %1642 = vrot.lane.b32.xlu1 %v1631_v48, %s8748_s25 }
 0x4d1   : > { %v3102_v41 = vpop.f32.mrf.mxu0 }
 0x4d2   : > { %v3103_v39 = vadd.f32 %v3102_v41, %v7069_v51  ;;  %v3119_v24 = vmax.f32 %v3101_v53, 0.0 }
 0x4d3   : > { %v3104_v11 = vpop.f32.mrf.mxu0  ;;  %1672 = vrot.lane.b32.xlu0 %v1660_v5, %s6106_s22 }
 0x4d4   : > { %v3120_v45 = vmax.f32 %v3103_v39, 0.0  ;;  %v3105_v38 = vadd.f32 %v3104_v11, %v7096_v60  ;;  %1640 = vrot.lane.b32.xlu1 %v1623_v36, %s8748_s25  ;;  %v2586_v11 = vpop.permute.xlu0 %2585 }
 0x4d5   : > { %v3106_v17 = vpop.f32.mrf.mxu0 }
 0x4d6   : > { %v5651_v14 = vpack.c.bf16 %v3120_v45, %v3119_v24  ;;  %v3107_v9 = vadd.f32 %v3106_v17, %v7096_v60  ;;  %v3121_v42 = vmax.f32 %v3105_v38, 0.0  ;;  %v2591_v38 = vsel %vm2587_vm3, %v2584_v40, %v2586_v11 }
 0x4d7   : > { %v3110_v51 = vpop.f32.mrf.mxu0  ;;  %1670 = vrot.lane.b32.xlu0 %v1668_v63, %s6106_s22 }
 0x4d8   : > { %3151 = vst [vmem:[#allocation4 + $0x4] sm:$0xff] %v5651_v14  ;;  %v3122_v54 = vmax.f32 %v3107_v9, 0.0  ;;  %v3111_v12 = vadd.f32 %v3110_v51, %v7047_v1  ;;  %1674 = vrot.lane.b32.xlu1 %v1669_v37, %s6106_s22  ;;  %v7244_v28 = vmul.bf16 %v5651_v14, %v6684_v33  ;;  %v7247_v50 = vmul.bf16 %v5651_v14, %v6695_v20 }
 0x4d9   : > { %v3112_v46 = vpop.f32.mrf.mxu0  ;;  %v7256_v52 = vpack.c.bf16 %v3121_v42, %v3119_v24  ;;  %v7265_v48 = vmul.bf16 %v5651_v14, %v6677_v61  ;;  %v3212_v24 = vmul.bf16 %v7228_v59, %v6655_v32  ;;  %v7297_v14 = vpop.permute.xlu1 %1338 }
 0x4da   : > { %v5652_v13 = vpack.c.bf16 %v3122_v54, %v3121_v42  ;;  %v3113_v60 = vadd.f32 %v3112_v46, %v7047_v1  ;;  %v3123_v0 = vmax.f32 %v3111_v12, 0.0  ;;  %v7254_v49 = vpack.c.bf16 %v3122_v54, %v3120_v45  ;;  %v1887_v54 = vpop.permute.xlu0 %1886 }
 0x4db   : > { %v3114_v62 = vpop.f32.mrf.mxu0  ;;  %3521 = vrot.lane.b32.xlu0 %v5513_v26, %s8720_s30  ;;  %v3214_v45 = vmul.bf16 %v7230_v35, %v6655_v32 }
 0x4dc   : > { %3152 = vst [vmem:[#allocation4 + $0x14] sm:$0xff] %v5652_v13  ;;  %v3124_v1 = vmax.f32 %v3113_v60, 0.0  ;;  %v3115_v44 = vadd.f32 %v3114_v62, %v7049_v43  ;;  %5793 = vrot.lane.b32.xlu1 %v8749_v10, %s8712_s29  ;;  %v7259_v31 = vmul.bf16 %v5652_v13, %v6684_v33  ;;  %v7262_v22 = vmul.bf16 %v5652_v13, %v6695_v20 }
 0x4dd   : > { %v3116_v2 = vpop.f32.mrf.mxu0  ;;  %v7268_v3 = vmul.bf16 %v5652_v13, %v6677_v61  ;;  %v5507_v9 = vcombine.low %v3212_v24, %v3214_v45 }
 0x4de   : > { %v5653_v56 = vpack.c.bf16 %v3124_v1, %v3123_v0  ;;  %v3117_v29 = vadd.f32 %v3116_v2, %v7049_v43  ;;  %v3125_v30 = vmax.f32 %v3115_v44, 0.0  ;;  %v7333_v44 = vpop.permute.xlu1 %1888  ;;  %v3210_v2 = vmul.bf16 %v7238_v27, %v6655_v32 }
 0x4df   : > { %2646 = vrot.lane.b32.xlu0 %v2590_v47, %s8750_s1  ;;  %v7299_v51 = vld [vmem:[#allocation4] sm:$0xff]  ;;  %v1936_v47 = vpop.permute.xlu0 %1935 }
 0x4e0   : > { %3153 = vst [vmem:[#allocation4 + $0x24] sm:$0xff] %v5653_v56  ;;  %v3126_v39 = vmax.f32 %v3117_v29, 0.0  ;;  %3515 = vrot.lane.b32.xlu1 %v5510_v16, %s8720_s30  ;;  %v7295_v37 = vpack.c.bf16 %v3125_v30, %v3123_v0  ;;  %v7310_v12 = vmul.bf16 %v7299_v51, %v6784_v7  ;;  %v7313_v46 = vmul.bf16 %v5653_v56, %v6684_v33 }
 0x4e1   : > { %v7336_v10 = vmul.bf16 %v5653_v56, %v6677_v61 }
 0x4e2   : > { %v5654_v63 = vpack.c.bf16 %v3126_v39, %v3125_v30  ;;  %v7301_v26 = vpack.c.bf16 %v3126_v39, %v3124_v1  ;;  %v1938_v39 = vpop.permute.xlu1 %1937  ;;  %v3208_v1 = vmul.bf16 %v7236_v4, %v6655_v32 }
 0x4e3   : > { %2644 = vrot.lane.b32.xlu0 %v2582_v18, %s8750_s1  ;;  %v7293_v17 = vld [vmem:[#allocation4 + $0x10] sm:$0xff]  ;;  %v7329_v18 = vmul.bf16 %v5653_v56, %v6695_v20  ;;  %8754 = vst [vmem:[#allocation34_spill] sm:$0xff] %v7336_v10  ;;  %v1885_v11 = vpop.permute.xlu0 %1884 }
 0x4e4   : > { %3154 = vst [vmem:[#allocation4 + $0x34] sm:$0xff] %v5654_v63  ;;  %2648 = vrot.lane.b32.xlu1 %v2591_v38, %s8750_s1  ;;  %v7305_v42 = vmul.bf16 %v7293_v17, %v6784_v7  ;;  %v7316_v13 = vmul.bf16 %v5654_v63, %v6684_v33  ;;  %v7319_v60 = vmul.bf16 %v5654_v63, %v6695_v20 }
 0x4e5   : > { %v7322_v0 = vmul.bf16 %v5654_v63, %v6677_v61  ;;  %8753 = vst [vmem:[#allocation33_spill] sm:$0xff] %v7329_v18  ;;  %v5504_v62 = vcombine.low %v3208_v1, %v3210_v2  ;;  %v5474_v58 = vcombine.low %v7299_v51, %v7293_v17 }
 0x4e6   : > { %8751 = vst [vmem:[#allocation31_spill] sm:$0xff] %v7319_v60  ;;  %v1934_v63 = vpop.permute.xlu1 %1933 }
 0x4e7   : > { %8752 = vst [vmem:[#allocation32_spill] sm:$0xff] %v7322_v0  ;;  %v1946_v24 = vpop.permute.xlu0 %1945  ;;  %v1939_v19 = vsel %vm8761_vm7, %v1934_v63, %v1936_v47 }
 0x4e8   : > { %3479 = vrot.lane.b32.xlu1 %v5507_v9, %s8733_s26 }
 0x4ea   : > { %v1948_v56 = vpop.permute.xlu1 %1947 }
 0x4eb   : > { %v2576_v45 = vpop.permute.xlu0 %2575 }
 0x501   : > { %v2580_v38 = vpop.permute.xlu0 %2579 }
 0x502   : > { %v2578_v9 = vpop.permute.xlu1 %2577 }
 0x503   : > { %v2589_v29 = vsel %vm2587_vm3, %v2578_v9, %v2580_v38  ;;  %v2588_v40 = vsel %vm2587_vm3, %v2576_v45, %v2578_v9  ;;  %vm8756_vm3 = vcmask 1040384   ;;  %v7372_v9 = vsel %vm8760_vm12, %v1885_v11, %v1887_v54  ;;  %vm7388_vm12 = vmand %vm2151_vm0, %vm2198_vm6 }
 0x504   : > { %2642 = vrot.lane.b32.xlu1 %v2589_v29, %s8750_s1  ;;  %2640 = vrot.lane.b32.xlu0 %v2588_v40, %s8750_s1  ;;  %v7362_v40 = vsel %vm8755_vm8, %v1887_v54, %v7333_v44  ;;  %vm7365_vm1 = vmand %vm8756_vm3, %vm2162_vm9  ;;  %v1949_v29 = vsel %vm8654_vm15, %v1946_v24, %v1948_v56  ;;  %vm8762_vm8 = vsmask.f32 3328  ;;  %vm8765_vm3 = vcmask 760832  }
 0x505   : > { %v1994_v30 = vpop.permute.xlu0 %1993  ;;  %vm7377_vm9 = vmand %vm1183_vm10, %vm8762_vm8  ;;  %vm8766_vm15 = vcmask 1041408   ;;  %v2164_v63 = vsel %vm7365_vm1, %v7372_v9, %v1939_v19  ;;  %vm8770_vm8 = vcmask 1044480  }
 0x506   : > { %v1992_v16 = vpop.permute.xlu1 %1991  ;;  %vm8769_vm7 = vmmov %vm8765_vm3  ;;  %v2170_v19 = vsel %vm8766_vm15, %v2164_v63, %v1946_v24 }
 0x507   : > { %v1998_v33 = vsel %vm8765_vm3, %v1992_v16, %v1994_v30  ;;  %vm8771_vm6 = vmmov %vm8766_vm15  ;;  %vm8774_vm3 = vcmask 908288  }
 0x508   : > { %3473 = vrot.lane.b32.xlu1 %v5504_v62, %s8733_s26  ;;  %2638 = vrot.lane.b32.xlu0 %v2576_v45, %s8750_s1  ;;  %v1940_v62 = vsel %vm8759_vm2, %v1936_v47, %v1938_v39  ;;  %vm2079_vm2 = vcmask 654336  }
 0x509   : > { %v2024_v36 = vpop.permute.xlu0 %2023  ;;  %v2165_v61 = vsel %vm7365_vm1, %v7362_v40, %v1940_v62 }
 0x50a   : > { %v1996_v43 = vpop.permute.xlu1 %1995  ;;  %v2174_v54 = vsel %vm8766_vm15, %v2165_v61, %v1949_v29  ;;  %v2166_v29 = vsel %vm7365_vm1, %v7333_v44, %v1938_v39  ;;  %vm8773_vm1 = vmmov %vm8770_vm8  ;;  %v3206_v39 = vmul.bf16 %v7230_v35, %v6657_v57  ;;  %vm1858_vm15 = vcmask 883712  }
 0x50b   : > { %v2183_v7 = vsel %vm7377_vm9, %v2174_v54, %v1998_v33  ;;  %v1999_v62 = vsel %vm8769_vm7, %v1994_v30, %v1996_v43  ;;  %v2178_v33 = vsel %vm8771_vm6, %v2166_v29, %v1948_v56  ;;  %v2182_v43 = vsel %vm7377_vm9, %v2170_v19, %v1992_v16 }
 0x50c   : > { %vm8777_vm7 = vcmask 1040384   ;;  %vm8779_vm6 = vcmask 1045504  }
 0x50d   : > { %v2028_v41 = vpop.permute.xlu0 %2027 }
 0x50e   : > { %v2026_v53 = vpop.permute.xlu1 %2025 }
 0x50f   : > { %v2030_v32 = vsel %vm2029_vm14, %v2024_v36, %v2026_v53  ;;  %v2031_v60 = vsel %vm2029_vm14, %v2026_v53, %v2028_v41  ;;  %v3204_v53 = vmul.bf16 %v7228_v59, %v6657_v57  ;;  %vm8772_vm14 = vmmov %vm8770_vm8 }
 0x510   : > { %v2191_v61 = vsel %vm8770_vm8, %v2183_v7, %v2030_v32  ;;  %v2184_v7 = vsel %vm7377_vm9, %v2178_v33, %v1999_v62  ;;  %v2187_v41 = vsel %vm8772_vm14, %v2182_v43, %v2024_v36  ;;  %vm2146_vm9 = vsmask.f32 5376 }
 0x511   : > { %v7356_v5 = vpop.permute.xlu0 %1727  ;;  %v2195_v30 = vsel %vm8773_vm1, %v2184_v7, %v2031_v60  ;;  %v5501_v36 = vcombine.low %v3204_v53, %v3206_v39  ;;  %vm8778_vm8 = vcmask 891904   ;;  %vm7438_vm14 = vmand %vm8779_vm6, %vm2146_vm9  ;;  %vm8790_vm6 = vcmask 1022976  }
 0x512   : > { %v7358_v38 = vpop.permute.xlu1 %1725  ;;  %vm8782_vm1 = vmmov %vm8777_vm7 }
 0x513   : > { %vm8785_vm9 = vmmov %vm8778_vm8 }
 0x515   : > { %v1761_v2 = vpop.permute.xlu0 %1760 }
 0x516   : > { %v1759_v45 = vpop.permute.xlu1 %1758  ;;  %v2128_v19 = vsel %vm8777_vm7, %v7356_v5, %v1761_v2  ;;  %vm8786_vm7 = vmmov %vm8782_vm1 }
 0x519   : > { %v2076_v11 = vpop.permute.xlu0 %2075 }
 0x51a   : > { %v2074_v0 = vpop.permute.xlu1 %2073 }
 0x51b   : > { %v2080_v10 = vsel %vm2079_vm2, %v2074_v0, %v2076_v11 }
 0x51c   : > { %v2201_v18 = vsel %vm7388_vm12, %v2191_v61, %v2080_v10  ;;  %v3200_v61 = vmul.bf16 %v7236_v4, %v6657_v57 }
 0x51d   : > { %v1724_v54 = vpop.permute.xlu0 %1723  ;;  %2634 = vrot.lane.b32.xlu0 %v2201_v18, %s8750_s1  ;;  %v2200_v18 = vsel %vm7388_vm12, %v2187_v41, %v2074_v0  ;;  %v1763_v0 = vsel %vm8774_vm3, %v1759_v45, %v1761_v2 }
 0x51e   : > { %v2078_v32 = vpop.permute.xlu1 %2077 }
 0x51f   : > { %v2081_v10 = vsel %vm2079_vm2, %v2076_v11, %v2078_v32  ;;  %vm8775_vm2 = vcmask 900096  }
 0x520   : > { %v2202_v20 = vsel %vm7388_vm12, %v2195_v30, %v2081_v10  ;;  %vm8776_vm12 = vcmask 916480   ;;  %v3202_v10 = vmul.bf16 %v7238_v27, %v6657_v57 }
 0x521   : > { %v1776_v16 = vpop.permute.xlu0 %1775  ;;  %2632 = vrot.lane.b32.xlu0 %v2200_v18, %s8750_s1  ;;  %2636 = vrot.lane.b32.xlu1 %v2202_v20, %s8750_s1  ;;  %v1732_v29 = vsel %vm8776_vm12, %v7358_v38, %v7356_v5 }
 0x522   : > { %v1757_v24 = vpop.permute.xlu1 %1756  ;;  %v2124_v7 = vsel %vm8782_vm1, %v1732_v29, %v1763_v0  ;;  %vm8792_vm1 = vcmask 1042432  }
 0x523   : > { %v1762_v32 = vsel %vm8774_vm3, %v1757_v24, %v1759_v45  ;;  %vm8793_vm3 = vmmov %vm8792_vm1 }
 0x525   : > { %v1774_v56 = vpop.permute.xlu0 %1773  ;;  %3437 = vrot.lane.b32.xlu1 %v5501_v36, %s8671_s23 }
 0x526   : > { %v1778_v60 = vpop.permute.xlu1 %1777 }
 0x527   : > { %v1780_v47 = vsel %vm8775_vm2, %v1776_v16, %v1778_v60  ;;  %v2132_v53 = vsel %vm6533_vm13, %v2128_v19, %v1778_v60  ;;  %vm8783_vm2 = vmmov %vm8776_vm12  ;;  %vm8784_vm12 = vcmask 900096   ;;  %v1340_v19 = vrot.slane %v7297_v14, 6 }
 0x528   : > { %v1731_v5 = vsel %vm8783_vm2, %v1724_v54, %v7358_v38  ;;  %v1779_v2 = vsel %vm8784_vm12, %v1774_v56, %v1776_v16  ;;  %v2131_v30 = vsel %vm6533_vm13, %v2124_v7, %v1780_v47  ;;  %v5498_v47 = vcombine.low %v3200_v61, %v3202_v10 }
 0x529   : > { %v1807_v1 = vpop.permute.xlu0 %1806  ;;  %v2120_v60 = vsel %vm8786_vm7, %v1731_v5, %v1762_v32  ;;  %vm8795_vm12 = vcmask 1045504   ;;  %vm8797_vm7 = vcmask 916480  }
 0x52a   : > { %v1805_v11 = vpop.permute.xlu1 %1804  ;;  %v2143_v39 = vsel %vm1183_vm10, %v2132_v53, %v1807_v1  ;;  %v2130_v16 = vsel %vm6533_vm13, %v2120_v60, %v1779_v2  ;;  %vm8787_vm13 = vcmask 769024   ;;  %v5844_v53 = vld [vmem:[#allocation2] sm:$0x3f] }
 0x52b   : > { %v1810_v33 = vsel %vm8778_vm8, %v1805_v11, %v1807_v1  ;;  %v1341_v7 = vsel %vm8787_vm13, %v1340_v19, %v7297_v14  ;;  %vm1676_vm8 = vcmask 1014784   ;;  %v5791_v14 = vunpack.i.h.bf16 %v7112_v34  ;;  %vm8798_vm13 = vmmov %vm8795_vm12 }
 0x52c   : > { %v2139_v45 = vsel %vm1183_vm10, %v2131_v30, %v1810_v33  ;;  %v1343_v61 = vmul.bf16 %v5844_v53, %v1341_v7 }
 0x52d   : > { %v1855_v63 = vpop.permute.xlu0 %1854 }
 0x52e   : > { %v1803_v62 = vpop.permute.xlu1 %1802  ;;  %v1507_v2 = vrot.slane %v1343_v61, %v6358_v21 }
 0x52f   : > { %v1809_v20 = vsel %vm8785_vm9, %v1803_v62, %v1805_v11  ;;  %vm8796_vm9 = vmmov %vm8790_vm6 }
 0x530   : > { %v2135_v11 = vsel %vm1183_vm10, %v2130_v16, %v1809_v20  ;;  %v1515_v20 = vcombine.high %v1507_v2, %v1507_v2 }
 0x531   : > { %v1563_v41 = vpop.permute.xlu0 %1562 }
 0x532   : > { %v1857_v18 = vpop.permute.xlu1 %1856 }
 0x533   : > { %v1860_v24 = vsel %vm1858_vm15, %v1855_v63, %v1857_v18  ;;  %v2150_v36 = vsel %vm7438_vm14, %v2143_v39, %v1857_v18 }
 0x534   : > { %v2160_v38 = vsel %vm2151_vm0, %v2150_v36, %v7333_v44  ;;  %v2149_v54 = vsel %vm7438_vm14, %v2139_v45, %v1860_v24 }
 0x535   : > { %v1853_v56 = vpop.permute.xlu0 %1852  ;;  %2630 = vrot.lane.b32.xlu1 %v2160_v38, %s8750_s1  ;;  %v2157_v1 = vsel %vm2151_vm0, %v2149_v54, %v7362_v40  ;;  %v3220_v54 = vmul.bf16 %v7228_v59, %v6647_v8 }
 0x536   : > { %v1859_v0 = vsel %vm1858_vm15, %v1853_v56, %v1855_v63  ;;  %2628 = vrot.lane.b32.xlu0 %v2157_v1, %s8750_s1  ;;  %v1565_v62 = vpop.permute.xlu1 %1564  ;;  %vm8789_vm15 = vcmask 1031168  }
 0x537   : > { %v2148_v44 = vsel %vm7438_vm14, %v2135_v11, %v1859_v0  ;;  %vm8794_vm2 = vmmov %vm8789_vm15 }
 0x538   : > { %v2154_v23 = vsel %vm2151_vm0, %v2148_v44, %v7372_v9  ;;  %v1500_v9 = vcombine.high %v1343_v61, %v1343_v61  ;;  %vm8788_vm0 = vcmask 1039360  }
 0x539   : > { %v1594_v29 = vpop.permute.xlu0 %1593  ;;  %3431 = vrot.lane.b32.xlu1 %v5498_v47, %s8671_s23  ;;  %v1567_v45 = vsel %vm8788_vm0, %v1563_v41, %v1565_v62  ;;  %vm8791_vm14 = vmmov %vm8788_vm0 }
 0x53a   : > { %2626 = vrot.lane.b32.xlu0 %v2154_v23, %s8750_s1  ;;  %v1561_v40 = vpop.permute.xlu1 %1560  ;;  %v1514_v18 = vrot.slane %v1500_v9, %v6358_v21  ;;  %v2086_v21 = vsel %vm6336_vm4, %v1515_v20, %v1567_v45  ;;  %vm8799_vm0 = vmmov %vm8792_vm1  ;;  %v5475_v20 = vcombine.high %v7299_v51, %v7293_v17 }
 0x53b   : > { %v1566_v16 = vsel %vm8791_vm14, %v1561_v40, %v1563_v41  ;;  %v3222_v41 = vmul.bf16 %v7230_v35, %v6647_v8 }
 0x53c   : > { %v2087_v36 = vsel %vm6336_vm4, %v1514_v18, %v1565_v62  ;;  %v7530_v18 = vld [vmem:[#allocation4 + $0x18] sm:$0xf] }
 0x53d   : > { %v1592_v33 = vpop.permute.xlu0 %1591  ;;  %v5519_v6 = vcombine.low %v3220_v54, %v3222_v41  ;;  %v8804_v54 = vld [vmem:[#allocation28_spill] sm:$0xff] }
 0x53e   : > { %v1596_v63 = vpop.permute.xlu1 %1595  ;;  %v1597_v47 = vsel %vm8794_vm2, %v1592_v33, %v1594_v29 }
 0x53f   : > { %v1598_v24 = vsel %vm8789_vm15, %v1594_v29, %v1596_v63  ;;  %v2098_v56 = vsel %vm8792_vm1, %v2087_v36, %v1596_v63  ;;  %v2085_v29 = vsel %vm6336_vm4, %v1507_v2, %v1566_v16  ;;  %vm8800_vm15 = vmmov %vm8797_vm7 }
 0x540   : > { %v2094_v11 = vsel %vm8793_vm3, %v2086_v21, %v1598_v24  ;;  %vm8801_vm4 = vmmov %vm8795_vm12  ;;  %v7537_v24 = vld [vmem:[#allocation4 + $0x8] sm:$0xf]  ;;  %v3181_v21 = vmul.bf16 %v7293_v17, %v8804_v54 }
 0x541   : > { %v1645_v32 = vpop.permute.xlu0 %1644  ;;  %v5476_v36 = vcombine.low %v7537_v24, %v7530_v18 }
 0x542   : > { %v1643_v43 = vpop.permute.xlu1 %1642  ;;  %v2102_v0 = vsel %vm6578_vm5, %v2098_v56, %v1645_v32  ;;  %v8805_v56 = vld [vmem:[#allocation26_spill] sm:$0xff] }
 0x543   : > { %v1648_v60 = vsel %vm8790_vm6, %v1643_v43, %v1645_v32 }
 0x544   : > { %v2101_v59 = vsel %vm6578_vm5, %v2094_v11, %v1648_v60  ;;  %v3180_v60 = vmul.bf16 %v7537_v24, %v6707_v15 }
 0x545   : > { %v1673_v10 = vpop.permute.xlu0 %1672 }
 0x546   : > { %v1641_v5 = vpop.permute.xlu1 %1640 }
 0x547   : > { %v1647_v40 = vsel %vm8796_vm9, %v1641_v5, %v1643_v43  ;;  %v2090_v43 = vsel %vm8799_vm0, %v2085_v29, %v1597_v47  ;;  %v7594_v29 = vld [vmem:[#allocation4 + $0x20] sm:$0xff]  ;;  %vm8836_vm0 = vmmov %vm8800_vm15 }
 0x548   : > { %v2100_v5 = vsel %vm6578_vm5, %v2090_v43, %v1647_v40  ;;  %v8808_v40 = vcombine.high %v7247_v50, %v7262_v22  ;;  %v8811_v43 = vcombine.low %v7244_v28, %v7259_v31 }
 0x549   : > { %v1671_v30 = vpop.permute.xlu0 %1670 }
 0x54a   : > { %v1675_v39 = vpop.permute.xlu1 %1674  ;;  %v1677_v33 = vsel %vm1676_vm8, %v1671_v30, %v1673_v10 }
 0x54b   : > { %v1678_v1 = vsel %vm1676_vm8, %v1673_v10, %v1675_v39  ;;  %v2113_v23 = vsel %vm8795_vm12, %v2102_v0, %v1675_v39  ;;  %v2105_v9 = vsel %vm8801_vm4, %v2100_v5, %v1677_v33  ;;  %vm8802_vm8 = vcmask 277504  }
 0x54c   : > { %v2109_v32 = vsel %vm8798_vm13, %v2101_v59, %v1678_v1  ;;  %vm8803_vm6 = vmmov %vm8802_vm8  ;;  %v3174_v1 = vmul.bf16 %v7530_v18, %v8805_v56  ;;  %v8807_v59 = vcombine.high %v7244_v28, %v7259_v31  ;;  %v8814_v28 = vcombine.low %v7265_v48, %v7268_v3  ;;  %v3160_v31 = vld [vmem:[#allocation4 + $0x28] sm:$0xf] }
 0x54d   : > { %v7489_v38 = vpop.permute.xlu0 %3521  ;;  %vm8810_vm5 = vmmov %vm8803_vm6  ;;  %vm8838_vm4 = vcmask 1031168  }
 0x54e   : > { %v5794_v34 = vpop.permute.xlu1 %5793  ;;  %vm8816_vm14 = vmmov %vm8810_vm5 }
 0x54f   : > { %v5796_v62 = vunpack.i.h.bf16 %v5794_v34  ;;  %v5795_v44 = vunpack.i.l.bf16 %v5794_v34  ;;  %v3179_v34 = vmul.bf16 %v7299_v51, %v8804_v54  ;;  %vm8817_vm1 = vmmov %vm8810_vm5 }
 0x550   : > { %vm8829_vm3 = vmmov %vm8817_vm1 }
 0x551   : > { %v2647_v19 = vpop.permute.xlu0 %2646  ;;  %v2117_v63 = vsel %vm6599_vm11, %v2113_v23, %v5795_v44  ;;  %v1730_v7 = vsel %vm8797_vm7, %v5791_v14, %v5795_v44  ;;  %v1729_v61 = vsel %vm8800_vm15, %v5796_v62, %v5791_v14  ;;  %v5487_v11 = vcombine.high %v3179_v34, %v3181_v21  ;;  %v8806_v44 = vld [vmem:[#allocation27_spill] sm:$0xff]  ;;  %vm8831_vm2 = vmmov %vm8817_vm1 }
 0x552   : > { %v7515_v53 = vpop.permute.xlu1 %3515  ;;  %2624 = vrot.lane.b32.xlu1 %v2117_v63, %s8750_s1  ;;  %v2116_v35 = vsel %vm6599_vm11, %v2109_v32, %v1730_v7  ;;  %v2115_v39 = vsel %vm6599_vm11, %v2105_v9, %v1729_v61  ;;  %v5486_v62 = vcombine.low %v3179_v34, %v3181_v21  ;;  %v3173_v47 = vmul.bf16 %v7293_v17, %v8806_v44  ;;  %vm8812_vm11 = vmmov %vm8810_vm5  ;;  %v3162_v9 = vld [vmem:[#allocation4 + $0x38] sm:$0xf] }
 0x553   : > { %2622 = vrot.lane.b32.xlu0 %v2116_v35, %s8750_s1  ;;  %v8809_v7 = vcombine.high %v7265_v48, %v7268_v3  ;;  %v3186_v48 = vmul.bf16 %v3162_v9, %v6707_v15  ;;  %v5469_v3 = vcombine.high %v7310_v12, %v7305_v42  ;;  %vm8832_vm12 = vmmov %vm8817_vm1  ;;  %vm8834_vm7 = vcmask 1039360  }
 0x554   : > { %vm8833_vm9 = vmmov %vm8817_vm1 }
 0x555   : > { %v2645_v10 = vpop.permute.xlu0 %2644  ;;  %vm8835_vm13 = vmmov %vm8834_vm7 }
 0x556   : > { %v2658_v2 = vsel %vm8802_vm8, %v2645_v10, %v2647_v19  ;;  %v2649_v30 = vpop.permute.xlu1 %2648  ;;  %3563 = vrot.lane.b32.xlu1 %v5519_v6, %s8732_s21  ;;  %v8813_v6 = vcombine.low %v7247_v50, %v7262_v22  ;;  %v5479_v10 = vcombine.low %v3160_v31, %v3162_v9  ;;  %v3183_v50 = vmul.bf16 %v7594_v29, %v8804_v54  ;;  %vm8837_vm15 = vmmov %vm8836_vm0 }
 0x557   : > { %v2659_v45 = vsel %vm8803_vm6, %v2647_v19, %v2649_v30  ;;  %2620 = vrot.lane.b32.xlu0 %v2115_v39, %s8750_s1  ;;  %v2673_v14 = vand.u32 %v2658_v2, %v6639_v55  ;;  %v3184_v30 = vmul.bf16 %v3160_v31, %v6707_v15  ;;  %vm8839_vm8 = vmmov %vm8838_vm4 }
 0x558   : > { %v2676_v25 = vand.u32 %v2659_v45, %v6639_v55  ;;  %v3182_v55 = vmul.bf16 %v7530_v18, %v6707_v15  ;;  %vm8840_vm6 = vmmov %vm8834_vm7 }
 0x55a   : > { %2684 = vmatprep.subr.bf16.mxu1 %v2676_v25  ;;  %3277 = vrot.lane.b32.xlu1 %v5475_v20, %s8669_s18  ;;  %v5488_v16 = vcombine.low %v3180_v60, %v3182_v55  ;;  %v7579_v41 = vpop.permute.xlu1 %3479  ;;  %v5491_v25 = vcombine.low %v3184_v30, %v3186_v48  ;;  %v3218_v20 = vmul.bf16 %v7238_v27, %v6647_v8 }
 0x55b   : > { %2685 = vmatpush1.bf16.msra.mxu1 %v2673_v14  ;;  %3279 = vrot.lane.b32.xlu0 %v5476_v36, %s8669_s18  ;;  %v3175_v55 = vmul.bf16 %v7594_v29, %v8806_v44  ;;  %v3178_v27 = vmul.bf16 %v3162_v9, %v8805_v56 }
 0x55e   : > { %3275 = vrot.lane.b32.xlu1 %v5474_v58, %s8669_s18 }
 0x55f   : > { %3513 = vrot.lane.b32.xlu0 %v7254_v49, %s8720_s30 }
 0x562   : > { %3511 = vrot.lane.b32.xlu1 %v7256_v52, %s8720_s30 }
 0x563   : > { %3391 = vrot.lane.b32.xlu0 %v7256_v52, %s8667_s28  ;;  %v3172_v52 = vmul.bf16 %v7537_v24, %v8805_v56 }
 0x565   : > { %v5482_v0 = vcombine.low %v3172_v52, %v3174_v1  ;;  %v3176_v1 = vmul.bf16 %v3160_v31, %v8805_v56  ;;  %v8818_v52 = vld [vmem:[#allocation29_spill] sm:$0xff] }
 0x566   : > { %3393 = vrot.lane.b32.xlu1 %v7254_v49, %s8667_s28  ;;  %v3171_v49 = vmul.bf16 %v7299_v51, %v8806_v44  ;;  %v7587_v51 = vld [vmem:[#allocation4 + $0x30] sm:$0xff] }
 0x567   : > { %3363 = vrot.lane.b32.xlu0 %v5488_v16, %s8712_s29  ;;  %v5478_v33 = vcombine.high %v7594_v29, %v7587_v51  ;;  %v5477_v5 = vcombine.low %v7594_v29, %v7587_v51  ;;  %v3185_v2 = vmul.bf16 %v7587_v51, %v8804_v54  ;;  %v3177_v36 = vmul.bf16 %v7587_v51, %v8806_v44 }
 0x568   : > { %v5481_v23 = vcombine.high %v3171_v49, %v3173_v47  ;;  %v5480_v17 = vcombine.low %v3171_v49, %v3173_v47  ;;  %v5485_v34 = vcombine.low %v3176_v1, %v3178_v27  ;;  %v8819_v49 = vcombine.high %v7313_v46, %v7316_v13 }
 0x569   : > { %v5490_v22 = vcombine.high %v3183_v50, %v3185_v2  ;;  %v5489_v14 = vcombine.low %v3183_v50, %v3185_v2  ;;  %v5484_v16 = vcombine.high %v3175_v55, %v3177_v36 }
 0x56a   : > { %3361 = vrot.lane.b32.xlu1 %v5487_v11, %s8712_s29  ;;  %v3166_v11 = vmul.bf16 %v7530_v18, %v8818_v52  ;;  %v8820_v18 = vcombine.low %v7313_v46, %v7316_v13  ;;  %v3168_v13 = vmul.bf16 %v3160_v31, %v8818_v52 }
 0x56b   : > { %3321 = vrot.lane.b32.xlu0 %v5482_v0, %s8665_s20  ;;  %v5483_v0 = vcombine.low %v3175_v55, %v3177_v36 }
 0x56e   : > { %3359 = vrot.lane.b32.xlu1 %v5486_v62, %s8712_s29  ;;  %v3164_v62 = vmul.bf16 %v7537_v24, %v8818_v52  ;;  %v8822_v24 = vld [vmem:[#allocation31_spill] sm:$0xff] }
 0x56f   : > { %3471 = vrot.lane.b32.xlu0 %v8807_v59, %s8733_s26 }
 0x570   : > { %v5470_v47 = vcombine.low %v3164_v62, %v3166_v11 }
 0x572   : > { %3319 = vrot.lane.b32.xlu1 %v5481_v23, %s8665_s20  ;;  %v8821_v23 = vld [vmem:[#allocation33_spill] sm:$0xff] }
 0x573   : > { %3429 = vrot.lane.b32.xlu0 %v8808_v40, %s8671_s23  ;;  %v8823_v40 = vcombine.high %v8821_v23, %v8822_v24 }
 0x576   : > { %v2641_v19 = vpop.permute.xlu0 %2640  ;;  %v2643_v63 = vpop.permute.xlu1 %2642  ;;  %3317 = vrot.lane.b32.xlu1 %v5480_v17, %s8665_s20  ;;  %v3170_v17 = vmul.bf16 %v3162_v9, %v8818_v52 }
 0x577   : > { %3555 = vrot.lane.b32.xlu0 %v8809_v7, %s8732_s21  ;;  %v2657_v32 = vsel %vm8810_vm5, %v2641_v19, %v2643_v63  ;;  %v8825_v7 = vld [vmem:[#allocation34_spill] sm:$0xff]  ;;  %vm8841_vm5 = vmmov %vm8840_vm6 }
 0x578   : > { %2686 = vmatprep.subr.bf16.mxu1 %v2657_v32  ;;  %v8826_v32 = vld [vmem:[#allocation32_spill] sm:$0xff] }
 0x579   : > { %v8827_v46 = vcombine.high %v8825_v7, %v8826_v32 }
 0x57a   : > { %v2639_v35 = vpop.permute.xlu0 %2638  ;;  %3469 = vrot.lane.b32.xlu1 %v8811_v43, %s8733_s26  ;;  %v7633_v39 = vpop.permute.xlu1 %3473 }
 0x57b   : > { %v2656_v61 = vsel %vm8812_vm11, %v2639_v35, %v2641_v19  ;;  %3283 = vrot.lane.b32.xlu0 %v5478_v33, %s8669_s18  ;;  %v8824_v19 = vcombine.low %v8821_v23, %v8822_v24  ;;  %v8828_v35 = vld [vmem:[#allocation30_spill] sm:$0xff]  ;;  %vm8842_vm11 = vcmask 777216  }
 0x57c   : > { %2687 = vmatpush1.bf16.msra.mxu1 %v2656_v61  ;;  %v3169_v43 = vmul.bf16 %v7587_v51, %v8828_v35  ;;  %v3167_v9 = vmul.bf16 %v7594_v29, %v8828_v35 }
 0x57e   : > { %3427 = vrot.lane.b32.xlu1 %v8813_v6, %s8671_s23  ;;  %v8830_v6 = vcombine.low %v8825_v7, %v8826_v32  ;;  %v5472_v31 = vcombine.high %v3167_v9, %v3169_v43  ;;  %v5471_v51 = vcombine.low %v3167_v9, %v3169_v43 }
 0x57f   : > { %3281 = vrot.lane.b32.xlu0 %v5477_v5, %s8669_s18  ;;  %v5473_v5 = vcombine.low %v3168_v13, %v3170_v17 }
 0x582   : > { %3553 = vrot.lane.b32.xlu1 %v8814_v28, %s8732_s21 }
 0x583   : > { %3517 = vrot.lane.b32.xlu0 %v7295_v37, %s8720_s30 }
 0x586   : > { %3285 = vrot.lane.b32.xlu1 %v5479_v10, %s8669_s18 }
 0x587   : > { %3397 = vrot.lane.b32.xlu0 %v7301_v26, %s8667_s28 }
 0x58a   : > { %3519 = vrot.lane.b32.xlu1 %v7301_v26, %s8720_s30  ;;  %v3216_v26 = vmul.bf16 %v7236_v4, %v6647_v8 }
 0x58b   : > { %3367 = vrot.lane.b32.xlu0 %v5490_v22, %s8712_s29 }
 0x58c   : > { %v5516_v21 = vcombine.low %v3216_v26, %v3218_v20 }
 0x58e   : > { %3395 = vrot.lane.b32.xlu1 %v7295_v37, %s8667_s28 }
 0x58f   : > { %v2635_v45 = vpop.permute.xlu0 %2634  ;;  %3589 = vrot.lane.b32.xlu0 %v5469_v3, %s8815_s19 }
 0x592   : > { %3369 = vrot.lane.b32.xlu1 %v5491_v25, %s8712_s29 }
 0x593   : > { %v2633_v37 = vpop.permute.xlu0 %2632  ;;  %v2637_v58 = vpop.permute.xlu1 %2636  ;;  %3365 = vrot.lane.b32.xlu0 %v5489_v14, %s8712_s29 }
 0x594   : > { %v2654_v60 = vsel %vm8816_vm14, %v2633_v37, %v2635_v45  ;;  %v2655_v4 = vsel %vm8817_vm1, %v2635_v45, %v2637_v58  ;;  %vm2668_vm14 = vcmask 613376   ;;  %vm8843_vm1 = vmmov %vm8838_vm4 }
 0x595   : > { %2688 = vmatprep.subr.bf16.mxu1 %v2655_v4 }
 0x596   : > { %2689 = vmatpush1.bf16.msra.mxu1 %v2654_v60  ;;  %3557 = vrot.lane.b32.xlu1 %v5516_v21, %s8732_s21 }
 0x597   : > { %3325 = vrot.lane.b32.xlu0 %v5484_v16, %s8665_s20  ;;  %v7667_v59 = vpop.permute.xlu1 %3437 }
 0x59a   : > { %3327 = vrot.lane.b32.xlu1 %v5485_v34, %s8665_s20 }
 0x59b   : > { %3323 = vrot.lane.b32.xlu0 %v5483_v0, %s8665_s20 }
 0x59e   : > { %3591 = vrot.lane.b32.xlu1 %v5470_v47, %s8815_s19 }
 0x59f   : > { %3477 = vrot.lane.b32.xlu0 %v8819_v49, %s8733_s26 }
 0x5a2   : > { %3475 = vrot.lane.b32.xlu1 %v8820_v18, %s8733_s26 }
 0x5a3   : > { %3435 = vrot.lane.b32.xlu0 %v8823_v40, %s8671_s23 }
 0x5a6   : > { %3433 = vrot.lane.b32.xlu1 %v8824_v19, %s8671_s23 }
 0x5a7   : > { %v2631_v63 = vpop.permute.xlu1 %2630  ;;  %3561 = vrot.lane.b32.xlu0 %v8827_v46, %s8732_s21 }
 0x5a8   : > { %v2629_v33 = vpop.permute.xlu0 %2628 }
 0x5a9   : > { %v2653_v61 = vsel %vm8829_vm3, %v2629_v33, %v2631_v63  ;;  %vm8844_vm3 = vmmov %vm8836_vm0 }
 0x5aa   : > { %2690 = vmatprep.subr.bf16.mxu1 %v2653_v61  ;;  %3559 = vrot.lane.b32.xlu1 %v8830_v6, %s8732_s21 }
 0x5ab   : > { %3597 = vrot.lane.b32.xlu0 %v5473_v5, %s8815_s19  ;;  %v7696_v2 = vpop.permute.xlu1 %3431 }
 0x5ac   : > { %v2627_v28 = vpop.permute.xlu0 %2626 }
 0x5ad   : > { %v2652_v10 = vsel %vm8831_vm2, %v2627_v28, %v2629_v33  ;;  %vm8845_vm2 = vmmov %vm8843_vm1 }
 0x5ae   : > { %2691 = vmatpush1.bf16.msra.mxu1 %v2652_v10  ;;  %3595 = vrot.lane.b32.xlu1 %v5472_v31, %s8815_s19 }
 0x5b2   : > { %3593 = vrot.lane.b32.xlu1 %v5471_v51, %s8815_s19  ;;  %v5818_v51 = vld [vmem:[#allocation15] sm:$0x3f]  }
 0x5c4   : > { %v2625_v50 = vpop.permute.xlu1 %2624 }
 0x5c5   : > { %v2623_v22 = vpop.permute.xlu0 %2622 }
 0x5c6   : > { %v2651_v48 = vsel %vm8832_vm12, %v2623_v22, %v2625_v50  ;;  %vm8846_vm12 = vmmov %vm8836_vm0 }
 0x5c7   : > { %2692 = vmatprep.subr.bf16.mxu1 %v2651_v48 }
 0x5c8   : > { %v7699_v29 = vpop.permute.xlu1 %3563 }
 0x5c9   : > { %v2621_v3 = vpop.permute.xlu0 %2620 }
 0x5ca   : > { %v2650_v30 = vsel %vm8833_vm9, %v2621_v3, %v2623_v22  ;;  %vm8848_vm9 = vmmov %vm8842_vm11 }
 0x5cb   : > { %2693 = vmatpush1.bf16.msra.mxu1 %v2650_v30 }
 0x5cc   : > { %v3278_v45 = vpop.permute.xlu1 %3277 }
 0x5cd   : > { %v3280_v25 = vpop.permute.xlu0 %3279 }
 0x5ce   : > { %3603 = vrot.lane.b32.xlu1 %v3280_v25, %s8815_s19  ;;  %v3288_v26 = vsel %vm8834_vm7, %v3278_v45, %v3280_v25  ;;  %5429 = vmatmul.mubr.msk.bf16.vlgmr.msra.gmra.mxu1 %vm2668_vm14, %v5818_v51  ;;  %vm8849_vm7 = vmmov %vm8848_vm9 }
 0x5cf   : > { %3601 = vrot.lane.b32.xlu0 %v3288_v26, %s8815_s19  ;;  %v8847_v26 = vcombine.low %v7310_v12, %v7305_v42 }
 0x5d0   : > { %v3276_v20 = vpop.permute.xlu1 %3275 }
 0x5d1   : > { %v3287_v14 = vsel %vm8835_vm13, %v3276_v20, %v3278_v45  ;;  %v7706_v36 = vpop.permute.xlu0 %3513  ;;  %vm8850_vm13 = vmmov %vm8849_vm7 }
 0x5d2   : > { %v3524_v20 = vsel %vm8848_vm9, %v7706_v36, %v7515_v53 }
 0x5d3   : > { %3599 = vrot.lane.b32.xlu0 %v3287_v14, %s8815_s19 }
 0x5d4   : > { %v7709_v37 = vpop.permute.xlu1 %3511 }
 0x5d5   : > { %v7711_v58 = vpop.permute.xlu0 %3391 }
 0x5d8   : > { %v7713_v55 = vpop.permute.xlu1 %3393 }
 0x5d9   : > { %v3364_v60 = vpop.permute.xlu0 %3363 }
 0x5da   : > { %3627 = vrot.lane.b32.xlu1 %v3364_v60, %s8815_s19 }
 0x5dc   : > { %v3362_v4 = vpop.permute.xlu1 %3361 }
 0x5dd   : > { %v3322_v21 = vpop.permute.xlu0 %3321  ;;  %v3372_v27 = vsel %vm8836_vm0, %v3362_v4, %v3364_v60  ;;  %vm8851_vm0 = vcmask 785408  }
 0x5de   : > { %3625 = vrot.lane.b32.xlu0 %v3372_v27, %s8815_s19  ;;  %3615 = vrot.lane.b32.xlu1 %v3322_v21, %s8815_s19  ;;  %vm8858_vm14 = vmmov %vm8851_vm0 }
 0x5e0   : > { %v3360_v16 = vpop.permute.xlu1 %3359 }
 0x5e1   : > { %v3371_v1 = vsel %vm8837_vm15, %v3360_v16, %v3362_v4  ;;  %v7720_v34 = vpop.permute.xlu0 %3471  ;;  %v3523_v4 = vsel %vm8850_vm13, %v7709_v37, %v7706_v36  ;;  %vm8852_vm15 = vmmov %vm8851_vm0  ;;  %vm8866_vm13 = vcmask 138240  }
 0x5e2   : > { %3623 = vrot.lane.b32.xlu0 %v3371_v1, %s8815_s19  ;;  %v3482_v42 = vsel %vm8851_vm0, %v7720_v34, %v7633_v39 }
 0x5e4   : > { %v3320_v11 = vpop.permute.xlu1 %3319 }
 0x5e5   : > { %v7723_v0 = vpop.permute.xlu0 %3429  ;;  %v3330_v62 = vsel %vm8838_vm4, %v3320_v11, %v3322_v21  ;;  %vm8853_vm4 = vcmask 900096  }
 0x5e6   : > { %3613 = vrot.lane.b32.xlu0 %v3330_v62, %s8815_s19  ;;  %v3440_v53 = vsel %vm8853_vm4, %v7723_v0, %v7696_v2  ;;  %v7820_v62 = vld [vmem:[#allocation9] sm:$0xff] }
 0x5e8   : > { %v3318_v47 = vpop.permute.xlu1 %3317 }
 0x5e9   : > { %v3329_v49 = vsel %vm8839_vm8, %v3318_v47, %v3320_v11  ;;  %v7728_v18 = vpop.permute.xlu0 %3555  ;;  %vm8854_vm8 = vcmask 908288  }
 0x5ea   : > { %3611 = vrot.lane.b32.xlu0 %v3329_v49, %s8815_s19 }
 0x5ec   : > { %v3470_v23 = vpop.permute.xlu1 %3469 }
 0x5ed   : > { %v3284_v24 = vpop.permute.xlu0 %3283 }
 0x5f0   : > { %v7731_v40 = vpop.permute.xlu1 %3427 }
 0x5f1   : > { %v3282_v17 = vpop.permute.xlu0 %3281 }
 0x5f2   : > { %v3289_v33 = vsel %vm8841_vm5, %v3282_v17, %v3284_v24  ;;  %vm8856_vm5 = vmmov %vm8851_vm0 }
 0x5f3   : > { %vm8867_vm0 = vmmov %vm8866_vm13 }
 0x5f4   : > { %v7733_v19 = vpop.permute.xlu1 %3553 }
 0x5f5   : > { %v3518_v63 = vpop.permute.xlu0 %3517 }
 0x5f8   : > { %v3286_v7 = vpop.permute.xlu1 %3285 }
 0x5f9   : > { %3609 = vrot.lane.b32.xlu0 %v3286_v7, %s8815_s19  ;;  %v3398_v32 = vpop.permute.xlu0 %3397  ;;  %v3290_v46 = vsel %vm8840_vm6, %v3284_v24, %v3286_v7  ;;  %vm8855_vm6 = vmmov %vm8853_vm4 }
 0x5fa   : > { %3607 = vrot.lane.b32.xlu1 %v3290_v46, %s8815_s19 }
 0x5fc   : > { %v3520_v13 = vpop.permute.xlu1 %3519 }
 0x5fd   : > { %v3368_v43 = vpop.permute.xlu0 %3367  ;;  %v3525_v31 = vsel %vm8842_vm11, %v3518_v63, %v3520_v13  ;;  %v3526_v14 = vsel %vm8849_vm7, %v3520_v13, %v7489_v38  ;;  %v3481_v38 = vsel %vm8852_vm15, %v3470_v23, %v7720_v34  ;;  %vm8857_vm11 = vmmov %vm8853_vm4 }
 0x5fe   : > { %3605 = vrot.lane.b32.xlu1 %v3289_v33, %s8815_s19  ;;  %vm8868_vm15 = vmmov %vm8867_vm0 }
 0x600   : > { %v3396_v61 = vpop.permute.xlu1 %3395 }
 0x601   : > { %v7740_v5 = vpop.permute.xlu0 %3589  ;;  %v3400_v39 = vsel %vm8854_vm8, %v3396_v61, %v3398_v32 }
 0x604   : > { %v3370_v6 = vpop.permute.xlu1 %3369 }
 0x605   : > { %3633 = vrot.lane.b32.xlu1 %v3370_v6, %s8815_s19  ;;  %v3366_v9 = vpop.permute.xlu0 %3365  ;;  %v3374_v3 = vsel %vm8844_vm3, %v3368_v43, %v3370_v6  ;;  %vm8860_vm3 = vmmov %vm8853_vm4 }
 0x606   : > { %v3373_v45 = vsel %vm8846_vm12, %v3366_v9, %v3368_v43  ;;  %vm8869_vm4 = vmmov %vm8867_vm0 }
 0x608   : > { %v7743_v28 = vpop.permute.xlu1 %3557 }
 0x609   : > { %3679 = vrot.lane.b32.xlu1 %v3525_v31, %s8815_s19  ;;  %v3326_v10 = vpop.permute.xlu0 %3325 }
 0x60c   : > { %v3328_v50 = vpop.permute.xlu1 %3327 }
 0x60d   : > { %3621 = vrot.lane.b32.xlu0 %v3328_v50, %s8815_s19  ;;  %v3332_v22 = vsel %vm8843_vm1, %v3326_v10, %v3328_v50  ;;  %v3324_v48 = vpop.permute.xlu0 %3323  ;;  %vm8859_vm1 = vmmov %vm8854_vm8 }
 0x60e   : > { %3619 = vrot.lane.b32.xlu1 %v3332_v22, %s8815_s19  ;;  %v3331_v30 = vsel %vm8845_vm2, %v3324_v48, %v3326_v10  ;;  %v3399_v1 = vsel %vm8859_vm1, %v7711_v58, %v7713_v55  ;;  %vm8861_vm2 = vcmask 769024   ;;  %vm8870_vm8 = vmmov %vm8867_vm0 }
 0x60f   : > { %vm8862_vm12 = vmmov %vm8861_vm2 }
 0x610   : > { %v7757_v25 = vpop.permute.xlu1 %3591  ;;  %v3566_v47 = vsel %vm8862_vm12, %v7728_v18, %v7743_v28  ;;  %vm8863_vm9 = vmmov %vm8861_vm2 }
 0x611   : > { %3631 = vrot.lane.b32.xlu0 %v3374_v3, %s8815_s19  ;;  %v3478_v36 = vpop.permute.xlu0 %3477  ;;  %vm8865_vm7 = vmmov %vm8861_vm2 }
 0x612   : > { %3617 = vrot.lane.b32.xlu1 %v3331_v30, %s8815_s19  ;;  %v3484_v16 = vsel %vm8858_vm14, %v3478_v36, %v7579_v41  ;;  %vm8874_vm14 = vmmov %vm8867_vm0 }
 0x613   : > { %vm8875_vm1 = vmmov %vm8867_vm0 }
 0x614   : > { %v3476_v60 = vpop.permute.xlu1 %3475  ;;  %vm8878_vm12 = vmmov %vm8867_vm0 }
 0x615   : > { %3629 = vrot.lane.b32.xlu0 %v3373_v45, %s8815_s19  ;;  %v3483_v21 = vsel %vm8856_vm5, %v3476_v60, %v3478_v36  ;;  %v3436_v2 = vpop.permute.xlu0 %3435  ;;  %vm8872_vm5 = vmmov %vm8867_vm0 }
 0x616   : > { %3677 = vrot.lane.b32.xlu1 %v3518_v63, %s8815_s19 }
 0x618   : > { %v3434_v12 = vpop.permute.xlu1 %3433 }
 0x619   : > { %3587 = vrot.lane.b32.xlu0 %v8847_v26, %s8815_s19  ;;  %v3441_v27 = vsel %vm8857_vm11, %v3434_v12, %v3436_v2  ;;  %v3562_v11 = vpop.permute.xlu0 %3561  ;;  %vm8873_vm11 = vmmov %vm8867_vm0 }
 0x61a   : > { %3675 = vrot.lane.b32.xlu1 %v3524_v20, %s8815_s19  ;;  %v3568_v41 = vsel %vm8861_vm2, %v3562_v11, %v7699_v29  ;;  %v7833_v29 = vld [vmem:[#allocation3 + $0xc] sm:$0xf]  ;;  %vm8877_vm2 = vmmov %vm8867_vm0 }
 0x61b   : > { %v3876_v17 = vmul.bf16 %v7833_v29, %v6657_v57  ;;  %v3880_v63 = vmul.bf16 %v7833_v29, %v6647_v8 }
 0x61c   : > { %v3560_v34 = vpop.permute.xlu1 %3559 }
 0x61d   : > { %3681 = vrot.lane.b32.xlu0 %v3526_v14, %s8815_s19  ;;  %v3567_v49 = vsel %vm8863_vm9, %v3560_v34, %v3562_v11  ;;  %v5541_v7 = vcombine.low %v3876_v17, %v3876_v17  ;;  %v5550_v46 = vcombine.low %v3880_v63, %v3880_v63  ;;  %vm8879_vm9 = vmmov %vm8867_vm0 }
 0x61e   : > { %3665 = vrot.lane.b32.xlu1 %v3476_v60, %s8815_s19 }
 0x621   : > { %3673 = vrot.lane.b32.xlu0 %v3523_v4, %s8815_s19 }
 0x622   : > { %3663 = vrot.lane.b32.xlu1 %v3482_v42, %s8815_s19 }
 0x625   : > { %3671 = vrot.lane.b32.xlu0 %v7709_v37, %s8815_s19  ;;  %v3439_v37 = vsel %vm8855_vm6, %v7731_v40, %v7723_v0  ;;  %v3442_v0 = vsel %vm8860_vm3, %v3436_v2, %v7667_v59  ;;  %v3571_v59 = vld [vmem:[%s8571_s8] sm:$0xff]  ;;  %vm8871_vm6 = vmmov %vm8867_vm0 }
 0x626   : > { %3653 = vrot.lane.b32.xlu1 %v3434_v12, %s8815_s19  ;;  %vm8876_vm3 = vmmov %vm8867_vm0 }
 0x629   : > { %3661 = vrot.lane.b32.xlu0 %v3481_v38, %s8815_s19 }
 0x62a   : > { %3651 = vrot.lane.b32.xlu1 %v3440_v53, %s8815_s19 }
 0x62d   : > { %3659 = vrot.lane.b32.xlu0 %v3470_v23, %s8815_s19  ;;  %v8864_v23 = vld [vmem:[#allocation20_spill] sm:$0xff] }
 0x62e   : > { %3643 = vrot.lane.b32.xlu1 %v3400_v39, %s8815_s19  ;;  %v3878_v24 = vmul.bf16 %v7833_v29, %v8864_v23 }
 0x631   : > { %3649 = vrot.lane.b32.xlu0 %v3439_v37, %s8815_s19 }
 0x632   : > { %3667 = vrot.lane.b32.xlu1 %v3483_v21, %s8815_s19 }
 0x635   : > { %3647 = vrot.lane.b32.xlu0 %v7731_v40, %s8815_s19  ;;  %v5544_v40 = vcombine.low %v3878_v24, %v3878_v24 }
 0x636   : > { %3641 = vrot.lane.b32.xlu1 %v3396_v61, %s8815_s19 }
 0x639   : > { %3645 = vrot.lane.b32.xlu0 %v3398_v32, %s8815_s19  ;;  %v7848_v32 = vpop.permute.xlu1 %3595 }
 0x63a   : > { %3655 = vrot.lane.b32.xlu1 %v3441_v27, %s8815_s19 }
 0x63d   : > { %3669 = vrot.lane.b32.xlu0 %v3484_v16, %s8815_s19  ;;  %v3594_v13 = vpop.permute.xlu1 %3593 }
 0x63e   : > { %3637 = vrot.lane.b32.xlu1 %v3399_v1, %s8815_s19  ;;  %v3697_v17 = vsel %vm8879_vm9, %v3594_v13, %v7848_v32  ;;  %vm8893_vm9 = vmmov %vm8867_vm0 }
 0x641   : > { %3689 = vrot.lane.b32.xlu0 %v3560_v34, %s8815_s19  ;;  %v3604_v43 = vpop.permute.xlu1 %3603 }
 0x642   : > { %3635 = vrot.lane.b32.xlu1 %v7711_v58, %s8815_s19  ;;  %v5521_v58 = vcombine.high %v7820_v62, %v7820_v62 }
 0x644   : > { %3803 = vmatprep.mubr.bf16.mxu1 %v5521_v58 }
 0x645   : > { %3657 = vrot.lane.b32.xlu0 %v3442_v0, %s8815_s19 }
 0x646   : > { %3693 = vrot.lane.b32.xlu1 %v3568_v41, %s8815_s19 }
 0x649   : > { %3639 = vrot.lane.b32.xlu0 %v7713_v55, %s8815_s19  ;;  %v3565_v55 = vsel %vm8865_vm7, %v7733_v19, %v7728_v18  ;;  %v3598_v18 = vpop.permute.xlu0 %3597  ;;  %vm8880_vm7 = vmmov %vm8867_vm0 }
 0x64a   : > { %3687 = vrot.lane.b32.xlu1 %v3566_v47, %s8815_s19 }
 0x64c   : > { %v3628_v6 = vpop.permute.xlu1 %3627 }
 0x64d   : > { %3691 = vrot.lane.b32.xlu0 %v3567_v49, %s8815_s19  ;;  %v3602_v33 = vpop.permute.xlu0 %3601 }
 0x64e   : > { %3574 = vperm.xlu1 %5780, %v3571_v59   ;;  %v3700_v58 = vsel %vm8876_vm3, %v3602_v33, %v3604_v43  ;;  %vm8890_vm3 = vmmov %vm8867_vm0 }
 0x650   : > { %v3616_v28 = vpop.permute.xlu1 %3615 }
 0x651   : > { %3685 = vrot.lane.b32.xlu0 %v3565_v55, %s8815_s19  ;;  %v3600_v61 = vpop.permute.xlu0 %3599  ;;  %v3698_v55 = vsel %vm8878_vm12, %v7848_v32, %v3598_v18  ;;  %vm8892_vm12 = vmmov %vm8867_vm0 }
 0x652   : > { %3975 = vrot.lane.b32.xlu1 %v5544_v40, %s8733_s26  ;;  %v3699_v49 = vsel %vm8877_vm2, %v3600_v61, %v3602_v33  ;;  %vm8891_vm2 = vmmov %vm8867_vm0 }
 0x655   : > { %3683 = vrot.lane.b32.xlu0 %v7733_v19, %s8815_s19  ;;  %v3626_v9 = vpop.permute.xlu0 %3625 }
 0x656   : > { %3959 = vrot.lane.b32.xlu1 %v5541_v7, %s8671_s23  ;;  %v3708_v12 = vsel %vm8868_vm15, %v3626_v9, %v3628_v6  ;;  %v3696_v7 = vsel %vm8880_vm7, %v7740_v5, %v7757_v25  ;;  %vm8882_vm15 = vmmov %vm8867_vm0 }
 0x657   : > { %vm8894_vm7 = vmmov %vm8867_vm0 }
 0x659   : > { %4007 = vrot.lane.b32.xlu0 %v5550_v46, %s8732_s21  ;;  %v3624_v31 = vpop.permute.xlu0 %3623 }
 0x65a   : > { %v3707_v53 = vsel %vm8869_vm4, %v3624_v31, %v3626_v9  ;;  %vm8883_vm4 = vmmov %vm8867_vm0 }
 0x65d   : > { %v3614_v51 = vpop.permute.xlu0 %3613 }
 0x65e   : > { %v3704_v27 = vsel %vm8872_vm5, %v3614_v51, %v3616_v28  ;;  %vm8886_vm5 = vmmov %vm8867_vm0 }
 0x661   : > { %v3612_v22 = vpop.permute.xlu0 %3611 }
 0x662   : > { %v3703_v1 = vsel %vm8873_vm11, %v3612_v22, %v3614_v51  ;;  %vm8887_vm11 = vmmov %vm8867_vm0 }
 0x66b   : > { %v3610_v19 = vpop.permute.xlu0 %3609 }
 0x66c   : > { %v3608_v10 = vpop.permute.xlu1 %3607 }
 0x66d   : > { %v3702_v11 = vsel %vm8874_vm14, %v3608_v10, %v3610_v19  ;;  %vm8888_vm14 = vmmov %vm8867_vm0 }
 0x670   : > { %v3606_v50 = vpop.permute.xlu1 %3605 }
 0x671   : > { %v3701_v41 = vsel %vm8875_vm1, %v3606_v50, %v3608_v10  ;;  %vm8889_vm1 = vmmov %vm8867_vm0 }
 0x677   : > { %v3634_v48 = vpop.permute.xlu1 %3633 }
 0x67b   : > { %v3680_v3 = vpop.permute.xlu1 %3679 }
 0x67f   : > { %v3622_v30 = vpop.permute.xlu0 %3621 }
 0x680   : > { %v3620_v45 = vpop.permute.xlu1 %3619 }
 0x681   : > { %v3706_v36 = vsel %vm8870_vm8, %v3620_v45, %v3622_v30  ;;  %vm8884_vm8 = vmmov %vm8867_vm0 }
 0x683   : > { %v3632_v26 = vpop.permute.xlu0 %3631 }
 0x684   : > { %v3618_v20 = vpop.permute.xlu1 %3617  ;;  %v3710_v14 = vsel %vm8866_vm13, %v3632_v26, %v3634_v48  ;;  %vm8881_vm13 = vmmov %vm8867_vm0 }
 0x685   : > { %3771 = vmatprep.subr.bf16.mxu1 %v3710_v14  ;;  %v3705_v21 = vsel %vm8871_vm6, %v3618_v20, %v3620_v45  ;;  %vm8885_vm6 = vmmov %vm8867_vm0 }
 0x687   : > { %v3630_v60 = vpop.permute.xlu0 %3629 }
 0x688   : > { %v3709_v4 = vsel %vm8867_vm0, %v3630_v60, %v3632_v26  ;;  %v3678_v42 = vpop.permute.xlu1 %3677 }
 0x689   : > { %3772 = vmatpush1.bf16.msra.mxu1 %v3709_v4  ;;  %v3725_v6 = vsel %vm8882_vm15, %v3678_v42, %v3680_v3  ;;  %vm8896_vm15 = vmmov %vm8867_vm0 }
 0x68a   : > { %3773 = vmatprep.subr.bf16.mxu1 %v3708_v12 }
 0x68b   : > { %v3588_v38 = vpop.permute.xlu0 %3587 }
 0x68c   : > { %v3676_v39 = vpop.permute.xlu1 %3675  ;;  %v3695_v33 = vsel %vm8881_vm13, %v3588_v38, %v7740_v5  ;;  %vm8895_vm13 = vmmov %vm8867_vm0 }
 0x68d   : > { %3774 = vmatpush1.bf16.msra.mxu1 %v3707_v53 }
 0x68e   : > { %3775 = vmatprep.subr.bf16.mxu1 %v3706_v36 }
 0x68f   : > { %v3682_v37 = vpop.permute.xlu0 %3681 }
 0x690   : > { %v3666_v2 = vpop.permute.xlu1 %3665  ;;  %v3726_v18 = vsel %vm8867_vm0, %v3680_v3, %v3682_v37 }
 0x691   : > { %3776 = vmatpush1.bf16.msra.mxu1 %v3705_v21 }
 0x692   : > { %3777 = vmatprep.subr.bf16.mxu1 %v3704_v27  ;;  %v5520_v27 = vcombine.low %v7820_v62, %v7820_v62  ;;  %v7903_v62 = vpop.f32.mrf.mxu1 }
 0x693   : > { %v3674_v16 = vpop.permute.xlu0 %3673 }
 0x694   : > { %v3664_v34 = vpop.permute.xlu1 %3663  ;;  %v3724_v13 = vsel %vm8883_vm4, %v3674_v16, %v3676_v39  ;;  %vm8897_vm4 = vmmov %vm8867_vm0 }
 0x695   : > { %3778 = vmatpush1.bf16.msra.mxu1 %v3703_v1 }
 0x696   : > { %3779 = vmatprep.subr.bf16.mxu1 %v3702_v11  ;;  %v8900_v11 = vmov 0  }
 0x697   : > { %v3672_v0 = vpop.permute.xlu0 %3671 }
 0x698   : > { %v3654_v47 = vpop.permute.xlu1 %3653  ;;  %v3723_v25 = vsel %vm8884_vm8, %v3672_v0, %v3674_v16  ;;  %vm8898_vm8 = vmmov %vm8867_vm0  ;;  %v5547_v0 = vcombine.low %v7833_v29, %v7833_v29 }
 0x699   : > { %3780 = vmatpush1.bf16.msra.mxu1 %v3701_v41  ;;  %v7905_v41 = vpop.f32.mrf.mxu1 }
 0x69a   : > { %3781 = vmatprep.subr.bf16.mxu1 %v3700_v58  ;;  %3991 = vrot.lane.b32.xlu0 %v5547_v0, %s8720_s30 }
 0x69b   : > { %v3662_v59 = vpop.permute.xlu0 %3661 }
 0x69c   : > { %v3652_v24 = vpop.permute.xlu1 %3651  ;;  %v3720_v50 = vsel %vm8887_vm11, %v3662_v59, %v3664_v34  ;;  %v5821_v34 = vld [vmem:[#allocation9 + $0x8] ss:$0 sps:$4 sm:$0xff]   ;;  %vm8906_vm11 = vcmask 769024  }
 0x69d   : > { %3782 = vmatpush1.bf16.msra.mxu1 %v3699_v49 }
 0x69e   : > { %3783 = vmatprep.subr.bf16.mxu1 %v3698_v55 }
 0x69f   : > { %v3660_v40 = vpop.permute.xlu0 %3659 }
 0x6a0   : > { %v3644_v63 = vpop.permute.xlu1 %3643  ;;  %v3719_v48 = vsel %vm8888_vm14, %v3660_v40, %v3662_v59  ;;  %vm8907_vm14 = vmmov %vm8906_vm11 }
 0x6a1   : > { %3784 = vmatpush1.bf16.msra.mxu1 %v3697_v17 }
 0x6a2   : > { %3785 = vmatprep.subr.bf16.mxu1 %v3696_v7 }
 0x6a3   : > { %v3650_v46 = vpop.permute.xlu0 %3649 }
 0x6a4   : > { %v3668_v43 = vpop.permute.xlu1 %3667  ;;  %v3716_v26 = vsel %vm8891_vm2, %v3650_v46, %v3652_v24 }
 0x6a5   : > { %3786 = vmatpush1.bf16.msra.mxu1 %v3695_v33  ;;  %v3721_v51 = vsel %vm8886_vm5, %v3666_v2, %v3668_v43  ;;  %vm3767_vm5 = vcmask 261120  }
 0x6a6   : > { %3787 = vmatprep.subr.bf16.mxu1 %v3726_v18  ;;  %v8901_v18 = vld [vmem:[#allocation21_spill] sm:$0xff] }
 0x6a7   : > { %v3648_v61 = vpop.permute.xlu0 %3647 }
 0x6a8   : > { %v3642_v32 = vpop.permute.xlu1 %3641  ;;  %v3715_v14 = vsel %vm8892_vm12, %v3648_v61, %v3650_v46  ;;  %vm8911_vm12 = vcmask 900096  }
 0x6a9   : > { %3788 = vmatpush2.bf16.msra.mxu1 %v3725_v6  ;;  %v3713_v53 = vsel %vm8867_vm0, %v3642_v32, %v3644_v63  ;;  %v8902_v6 = vld [vmem:[#allocation22_spill] sm:$0xff] }
 0x6aa   : > { %3789 = vmatprep.subr.bf16.mxu1 %v3724_v13 }
 0x6ab   : > { %v3646_v9 = vpop.permute.xlu0 %3645 }
 0x6ac   : > { %v3656_v28 = vpop.permute.xlu1 %3655  ;;  %v3714_v4 = vsel %vm8893_vm9, %v3644_v63, %v3646_v9 }
 0x6ad   : > { %3790 = vmatpush2.bf16.msra.mxu1 %v3723_v25  ;;  %v3717_v45 = vsel %vm8890_vm3, %v3654_v47, %v3656_v28  ;;  %v7907_v47 = vpop.f32.mrf.mxu1  ;;  %vm8909_vm3 = vcmask 777216  }
 0x6ae   : > { %vm8912_vm9 = vmmov %vm8909_vm3 }
 0x6af   : > { %v3670_v31 = vpop.permute.xlu0 %3669  ;;  %v7909_v58 = vpop.f32.mrf.mxu1 }
 0x6b0   : > { %v3722_v5 = vsel %vm8885_vm6, %v3668_v43, %v3670_v31  ;;  %v3638_v10 = vpop.permute.xlu1 %3637  ;;  %vm8899_vm6 = vmmov %vm8867_vm0  ;;  %v8903_v31 = vld [vmem:[#allocation23_spill] sm:$0xff]  ;;  %vm8915_vm0 = vcmask 1031168  }
 0x6b1   : > { %3791 = vmatprep.subr.bf16.mxu1 %v3722_v5 }
 0x6b2   : > { %3792 = vmatpush2.bf16.msra.mxu1 %v3721_v51 }
 0x6b3   : > { %3793 = vmatprep.subr.bf16.mxu1 %v3720_v50  ;;  %v3690_v22 = vpop.permute.xlu0 %3689 }
 0x6b4   : > { %v3636_v19 = vpop.permute.xlu1 %3635 }
 0x6b5   : > { %v3711_v2 = vsel %vm8898_vm8, %v3636_v19, %v3638_v10  ;;  %vm8918_vm8 = vcmask 1039360  }
 0x6b6   : > { %3794 = vmatpush2.bf16.msra.mxu1 %v3719_v48 }
 0x6b7   : > { %v3658_v3 = vpop.permute.xlu0 %3657 }
 0x6b8   : > { %v3718_v30 = vsel %vm8889_vm1, %v3656_v28, %v3658_v3  ;;  %v3694_v60 = vpop.permute.xlu1 %3693  ;;  %vm8908_vm1 = vcmask 785408  }
 0x6b9   : > { %3795 = vmatprep.subr.bf16.mxu1 %v3718_v30  ;;  %v8905_v30 = vld [vmem:[#allocation25_spill] sm:$0xff]  ;;  %vm8910_vm2 = vmmov %vm8908_vm1 }
 0x6ba   : > { %3796 = vmatpush2.bf16.msra.mxu1 %v3717_v45 }
 0x6bb   : > { %3797 = vmatprep.subr.bf16.mxu1 %v3716_v26  ;;  %v3640_v20 = vpop.permute.xlu0 %3639 }
 0x6bc   : > { %v3712_v39 = vsel %vm8896_vm15, %v3638_v10, %v3640_v20  ;;  %v3688_v36 = vpop.permute.xlu1 %3687  ;;  %vm8916_vm15 = vcmask 916480  }
 0x6be   : > { %3798 = vmatpush2.bf16.msra.mxu1 %v3715_v14 }
 0x6bf   : > { %3799 = vmatprep.subr.bf16.mxu1 %v3714_v4  ;;  %v3692_v42 = vpop.permute.xlu0 %3691 }
 0x6c0   : > { %v3730_v12 = vsel %vm8894_vm7, %v3692_v42, %v3694_v60  ;;  %v3729_v38 = vsel %vm8895_vm13, %v3690_v22, %v3692_v42  ;;  %v8904_v22 = vld [vmem:[#allocation24_spill] sm:$0xff]  ;;  %vm8913_vm7 = vmmov %vm8911_vm12  ;;  %vm8914_vm13 = vcmask 908288  }
 0x6c1   : > { %3824 = vmatprep.subr.bf16.mxu0 %v3730_v12 }
 0x6c2   : > { %3800 = vmatpush2.bf16.msra.mxu1 %v3713_v53  ;;  %3825 = vmatpush1.bf16.msra.mxu0 %v3729_v38 }
 0x6c3   : > { %3801 = vmatprep.subr.bf16.mxu1 %v3712_v39  ;;  %v3686_v37 = vpop.permute.xlu0 %3685 }
 0x6c4   : > { %v3728_v21 = vsel %vm8897_vm4, %v3686_v37, %v3688_v36  ;;  %vm8917_vm4 = vmmov %vm8916_vm15 }
 0x6c5   : > { %3826 = vmatprep.subr.bf16.mxu0 %v3728_v21 }
 0x6c6   : > { %3802 = vmatpush2.bf16.msra.mxu1 %v3711_v2 }
 0x6c7   : > { %v3684_v16 = vpop.permute.xlu0 %3683 }
 0x6c8   : > { %v3727_v1 = vsel %vm8899_vm6, %v3684_v16, %v3686_v37  ;;  %vm8919_vm6 = vmmov %vm8915_vm0 }
 0x6c9   : > { %3804 = vmatmul.mubr.bf16.vlgmr.msra.gmra.mxu1 %v5520_v27  ;;  %3827 = vmatpush1.bf16.msra.mxu0 %v3727_v1  ;;  %v3575_v59 = vpop.permute.xlu1 %3574 }
 0x6ca   : > { %4934 = vmatprep.mubr.bf16.mxu1 %v8900_v11 }
 0x6cb   : > { %v4008_v1 = vpop.permute.xlu0 %4007 }
 0x6cc   : > { %5523 = vmatmul.mubr.msk.bf16.vlgmr.msra.gmra.mxu0 %vm3767_vm5, %v5821_v34 }
 0x6cd   : > { %4189 = vmatprep.mubr.bf16.mxu0 %v8900_v11  ;;  %v3976_v34 = vpop.permute.xlu1 %3975 }
 0x70c   : > { %v3992_v0 = vpop.permute.xlu0 %3991 }
 0x789   : > { %v3805_v49 = vpop.f32.mrf.mxu1 }
 0x78a   : > { %v3806_v24 = vadd.f32 %v3805_v49, %v3575_v59 }
 0x78b   : > { %v3807_v55 = vpop.f32.mrf.mxu1 }
 0x78c   : > { %v3808_v40 = vadd.f32 %v3807_v55, %v3575_v59  ;;  %v3846_v17 = vpop.f32.mrf.mxu0  ;;  %v3960_v59 = vpop.permute.xlu1 %3959 }
 0x78d   : > { %v3847_v63 = vadd.f32 %v3846_v17, %v3806_v24  ;;  %v3809_v7 = vpop.f32.mrf.mxu1 }
 0x78e   : > { %v3848_v46 = vpop.f32.mrf.mxu0 }
 0x78f   : > { %v3849_v29 = vadd.f32 %v3848_v46, %v3808_v40  ;;  %v3810_v33 = vpop.f32.mrf.mxu1  ;;  %v7912_v61 = vadd.f32 %v3847_v63, %v8901_v18 }
 0x790   : > { %v3850_v43 = vpop.f32.mrf.mxu0 }
 0x791   : > { %v7915_v32 = vadd.f32 %v3849_v29, %v8902_v6  ;;  %v5852_v28 = vpack.c.bf16 %v7912_v61, %v7912_v61 }
 0x792   : > { %v3851_v13 = vpop.f32.mrf.mxu0 }
 0x793   : > { %v5655_v9 = vpack.c.bf16 %v7915_v32, %v7912_v61  ;;  %v5851_v25 = vpack.c.bf16 %v7915_v32, %v7915_v32  ;;  %3987 = vrot.lane.b32.xlu0 %v5852_v28, %s8720_s30 }
 0x795   : > { %3863 = vst [vmem:[#allocation3 + $0x4] sm:$0xff] %v5655_v9  ;;  %3989 = vrot.lane.b32.xlu1 %v5851_v25, %s8720_s30  ;;  %v3879_v5 = vmul.bf16 %v5655_v9, %v8903_v31  ;;  %v3877_v48 = vmul.bf16 %v5655_v9, %v8904_v22  ;;  %v3875_v45 = vmul.bf16 %v5655_v9, %v8905_v30 }
 0x797   : > { %3944 = vrot.lane.b32.xlu0 %v5851_v25, %s8667_s28  ;;  %v5549_v51 = vcombine.high %v3879_v5, %v3879_v5  ;;  %v5542_v19 = vcombine.low %v3877_v48, %v3877_v48  ;;  %v5548_v3 = vcombine.low %v3879_v5, %v3879_v5  ;;  %v5539_v20 = vcombine.low %v3875_v45, %v3875_v45 }
 0x798   : > { %v5543_v14 = vcombine.high %v3877_v48, %v3877_v48  ;;  %v5540_v42 = vcombine.high %v3875_v45, %v3875_v45 }
 0x799   : > { %3942 = vrot.lane.b32.xlu1 %v5852_v28, %s8667_s28  ;;  %s8934_s28 = smov 127  }
 0x79c   : > { %v7928_v10 = vld [vmem:[#allocation3] sm:$0xff]  ;;  %v7936_v26 = vld [vmem:[#allocation3 + $0x8] sm:$0xf] }
 0x79d   : > { %v5529_v50 = vcombine.high %v7928_v10, %v7928_v10  ;;  %4005 = vrot.lane.b32.xlu1 %v5549_v51, %s8732_s21  ;;  %v3869_v60 = vmul.bf16 %v7936_v26, %v8805_v56  ;;  %v3871_v12 = vmul.bf16 %v7936_v26, %v6707_v15  ;;  %v3868_v38 = vmul.bf16 %v7928_v10, %v8806_v44 }
 0x79e   : > { %v3870_v36 = vmul.bf16 %v7928_v10, %v8804_v54  ;;  %v5530_v2 = vcombine.low %v7936_v26, %v7936_v26  ;;  %v5528_v16 = vcombine.low %v7928_v10, %v7928_v10 }
 0x79f   : > { %3899 = vrot.lane.b32.xlu0 %v5529_v50, %s8669_s18  ;;  %v5533_v4 = vcombine.low %v3869_v60, %v3869_v60  ;;  %v5536_v53 = vcombine.low %v3871_v12, %v3871_v12  ;;  %v5532_v39 = vcombine.high %v3868_v38, %v3868_v38  ;;  %v5531_v27 = vcombine.low %v3868_v38, %v3868_v38 }
 0x7a0   : > { %v5534_v37 = vcombine.low %v3870_v36, %v3870_v36  ;;  %v5535_v21 = vcombine.high %v3870_v36, %v3870_v36 }
 0x7a1   : > { %3971 = vrot.lane.b32.xlu1 %v5542_v19, %s8733_s26 }
 0x7a3   : > { %4003 = vrot.lane.b32.xlu0 %v5548_v3, %s8732_s21 }
 0x7a5   : > { %3955 = vrot.lane.b32.xlu1 %v5539_v20, %s8671_s23 }
 0x7a7   : > { %3973 = vrot.lane.b32.xlu0 %v5543_v14, %s8733_s26 }
 0x7a9   : > { %3917 = vrot.lane.b32.xlu1 %v5533_v4, %s8665_s20 }
 0x7ab   : > { %3957 = vrot.lane.b32.xlu0 %v5540_v42, %s8671_s23  ;;  %s8936_s23 = smov 126  }
 0x7ad   : > { %3933 = vrot.lane.b32.xlu1 %v5536_v53, %s8712_s29 }
 0x7af   : > { %3915 = vrot.lane.b32.xlu0 %v5532_v39, %s8665_s20 }
 0x7b1   : > { %3929 = vrot.lane.b32.xlu1 %v5534_v37, %s8712_s29  ;;  %v3866_v37 = vmul.bf16 %v7928_v10, %v8828_v35 }
 0x7b3   : > { %3931 = vrot.lane.b32.xlu0 %v5535_v21, %s8712_s29  ;;  %v5526_v10 = vcombine.high %v3866_v37, %v3866_v37 }
 0x7b5   : > { %3901 = vrot.lane.b32.xlu1 %v5530_v2, %s8669_s18 }
 0x7b7   : > { %3913 = vrot.lane.b32.xlu0 %v5531_v27, %s8665_s20  ;;  %s8935_s20 = smov 111  }
 0x7bb   : > { %3897 = vrot.lane.b32.xlu0 %v5528_v16, %s8669_s18  ;;  %v3867_v16 = vmul.bf16 %v7936_v26, %v8818_v52  ;;  %s8921_s18 = smov 110  }
 0x805   : > { %v3988_v24 = vpop.permute.xlu0 %3987 }
 0x807   : > { %v3990_v49 = vpop.permute.xlu1 %3989 }
 0x808   : > { %v3993_v9 = vsel %vm8909_vm3, %v3988_v24, %v3990_v49  ;;  %v3994_v19 = vsel %vm8912_vm9, %v3990_v49, %v3992_v0 }
 0x809   : > { %v3945_v40 = vpop.permute.xlu0 %3944 }
 0x80b   : > { %v3943_v55 = vpop.permute.xlu1 %3942 }
 0x80c   : > { %v3946_v4 = vsel %vm8914_vm13, %v3943_v55, %v3945_v40 }
 0x80f   : > { %v4006_v17 = vpop.permute.xlu1 %4005 }
 0x810   : > { %v4010_v18 = vsel %vm8907_vm14, %v4006_v17, %v4008_v1  ;;  %vm8922_vm14 = vcmask 138240  }
 0x811   : > { %v3900_v63 = vpop.permute.xlu0 %3899 }
 0x813   : > { %v3972_v7 = vpop.permute.xlu1 %3971 }
 0x814   : > { %v4040_v6 = vsel %vm1183_vm10, %v3972_v7, %v3988_v24 }
 0x815   : > { %v4004_v46 = vpop.permute.xlu0 %4003 }
 0x816   : > { %4121 = vrot.lane.b32.xlu1 %v4004_v46, %s8815_s19  ;;  %v4009_v29 = vsel %vm8906_vm11, %v4004_v46, %v4006_v17  ;;  %vm8920_vm11 = vmmov %vm8918_vm8  ;;  %v5525_v17 = vcombine.low %v3866_v37, %v3866_v37  ;;  %v4053_v46 = vld [vmem:[%s8573_s10 + $0x10] sm:$0xff] }
 0x817   : > { %4123 = vrot.lane.b32.xlu0 %v4009_v29, %s8815_s19  ;;  %v3956_v33 = vpop.permute.xlu1 %3955  ;;  %v4054_v29 = vld [vmem:[%s8573_s10 + $0x18] sm:$0xff] }
 0x818   : > { %v4031_v5 = vsel %vm1183_vm10, %v3943_v55, %v3956_v33  ;;  %v5527_v55 = vcombine.low %v3867_v16, %v3867_v16 }
 0x819   : > { %v3974_v43 = vpop.permute.xlu0 %3973 }
 0x81a   : > { %4125 = vrot.lane.b32.xlu1 %v4010_v18, %s8815_s19  ;;  %v3977_v13 = vsel %vm8908_vm1, %v3972_v7, %v3974_v43  ;;  %v3978_v51 = vsel %vm8910_vm2, %v3974_v43, %v3976_v34  ;;  %v4287_v43 = vld [vmem:[#allocation4 + $0x2c] sm:$0xf]  ;;  %v4289_v18 = vld [vmem:[#allocation4 + $0x3c] sm:$0xf]  ;;  %vm8923_vm1 = vmmov %vm8922_vm14 }
 0x81b   : > { %4115 = vrot.lane.b32.xlu0 %v4040_v6, %s8815_s19  ;;  %v3918_v25 = vpop.permute.xlu1 %3917  ;;  %v4043_v50 = vsel %vm1183_vm10, %v3977_v13, %v3993_v9  ;;  %v4046_v20 = vsel %vm1183_vm10, %v3978_v51, %v3994_v19  ;;  %v5605_v6 = vcombine.low %v4287_v43, %v4289_v18  ;;  %v4283_v13 = vld [vmem:[#allocation4 + $0xc] sm:$0xf]  ;;  %v4285_v9 = vld [vmem:[#allocation4 + $0x1c] sm:$0xf]  ;;  %v4295_v19 = vmul.bf16 %v4287_v43, %v6657_v57  ;;  %vm8924_vm3 = vmmov %vm8923_vm1 }
 0x81c   : > { %v4299_v51 = vmul.bf16 %v4283_v13, %v8864_v23  ;;  %vm8925_vm2 = vmmov %vm8923_vm1 }
 0x81d   : > { %v3958_v28 = vpop.permute.xlu0 %3957  ;;  %vm8927_vm9 = vmmov %vm8923_vm1 }
 0x81e   : > { %4109 = vrot.lane.b32.xlu1 %v4031_v5, %s8815_s19  ;;  %v3962_v48 = vsel %vm8911_vm12, %v3958_v28, %v3960_v59  ;;  %v3961_v14 = vsel %vm8913_vm7, %v3956_v33, %v3958_v28  ;;  %v4052_v33 = vld [vmem:[%s8573_s10 + $0x8] sm:$0xff]  ;;  %v4303_v28 = vmul.bf16 %v4287_v43, %v8864_v23  ;;  %v4305_v5 = vmul.bf16 %v4289_v18, %v8864_v23  ;;  %vm8926_vm12 = vmmov %vm8923_vm1 }
 0x81f   : > { %4117 = vrot.lane.b32.xlu0 %v4043_v50, %s8815_s19  ;;  %v3934_v3 = vpop.permute.xlu1 %3933  ;;  %v4037_v60 = vsel %vm1183_vm10, %v3945_v40, %v3962_v48  ;;  %v4034_v38 = vsel %vm1183_vm10, %v3946_v4, %v3961_v14  ;;  %v4301_v50 = vmul.bf16 %v4285_v9, %v8864_v23  ;;  %v4293_v14 = vmul.bf16 %v4285_v9, %v6657_v57  ;;  %vm8928_vm7 = vmmov %vm8923_vm1 }
 0x820   : > { %v4028_v27 = vsel %vm1183_vm10, %v3918_v25, %v3934_v3  ;;  %v5599_v48 = vcombine.low %v4303_v28, %v4305_v5  ;;  %v4311_v4 = vmul.bf16 %v4287_v43, %v6647_v8  ;;  %vm8929_vm13 = vmmov %vm8923_vm1  ;;  %v5828_v28 = vld [vmem:[#allocation10 + $0x8] sm:$0xff]  }
 0x821   : > { %v3916_v45 = vpop.permute.xlu0 %3915 }
 0x822   : > { %4119 = vrot.lane.b32.xlu1 %v4046_v20, %s8815_s19  ;;  %v3920_v53 = vsel %vm8915_vm0, %v3916_v45, %v3918_v25  ;;  %v5602_v25 = vcombine.low %v4283_v13, %v4285_v9  ;;  %v4291_v20 = vmul.bf16 %v4283_v13, %v6657_v57  ;;  %vm8930_vm0 = vmmov %vm8923_vm1 }
 0x823   : > { %4113 = vrot.lane.b32.xlu0 %v4037_v60, %s8815_s19  ;;  %v3930_v42 = vpop.permute.xlu1 %3929 }
 0x825   : > { %v3932_v12 = vpop.permute.xlu0 %3931 }
 0x826   : > { %v3936_v39 = vsel %vm8916_vm15, %v3932_v12, %v3934_v3  ;;  %4111 = vrot.lane.b32.xlu1 %v4034_v38, %s8815_s19  ;;  %v3935_v1 = vsel %vm8917_vm4, %v3930_v42, %v3932_v12  ;;  %v4297_v3 = vmul.bf16 %v4289_v18, %v6657_v57  ;;  %v4313_v42 = vmul.bf16 %v4289_v18, %v6647_v8  ;;  %vm8931_vm15 = vmmov %vm8930_vm0 }
 0x827   : > { %v4025_v36 = vsel %vm1183_vm10, %v3920_v53, %v3936_v39  ;;  %v3902_v21 = vpop.permute.xlu1 %3901  ;;  %v5590_v12 = vcombine.low %v4291_v20, %v4293_v14  ;;  %v4307_v53 = vmul.bf16 %v4283_v13, %v6647_v8  ;;  %v4309_v39 = vmul.bf16 %v4285_v9, %v6647_v8 }
 0x828   : > { %4105 = vrot.lane.b32.xlu0 %v4025_v36, %s8815_s19  ;;  %v3904_v34 = vsel %vm8918_vm8, %v3900_v63, %v3902_v21  ;;  %v4019_v26 = vsel %vm1183_vm10, %v5527_v55, %v3902_v21  ;;  %v5593_v60 = vcombine.low %v4295_v19, %v4297_v3  ;;  %v5611_v38 = vcombine.low %v4311_v4, %v4313_v42 }
 0x829   : > { %v3914_v2 = vpop.permute.xlu0 %3913  ;;  %v4016_v24 = vsel %vm1183_vm10, %v5526_v10, %v3904_v34  ;;  %v5608_v36 = vcombine.low %v4307_v53, %v4309_v39  ;;  %vm8932_vm4 = vcmask 588800  }
 0x82a   : > { %v3919_v0 = vsel %vm8919_vm6, %v3914_v2, %v3916_v45  ;;  %4107 = vrot.lane.b32.xlu1 %v4028_v27, %s8815_s19  ;;  %v5596_v45 = vcombine.low %v4299_v51, %v4301_v50  ;;  %vm8933_vm8 = vmmov %vm8932_vm4 }
 0x82b   : > { %v4022_v59 = vsel %vm1183_vm10, %v3919_v0, %v3935_v1  ;;  %vm8937_vm6 = vmmov %vm8920_vm11 }
 0x82c   : > { %4103 = vrot.lane.b32.xlu0 %v4022_v59, %s8815_s19 }
 0x82d   : > { %v3898_v49 = vpop.permute.xlu0 %3897 }
 0x82e   : > { %v3903_v40 = vsel %vm8920_vm11, %v3898_v49, %v3900_v63  ;;  %4099 = vrot.lane.b32.xlu1 %v4016_v24, %s8815_s19  ;;  %v4051_v63 = vld [vmem:[%s8573_s10] sm:$0xff]  ;;  %vm8938_vm11 = vmmov %vm8937_vm6 }
 0x82f   : > { %v4013_v7 = vsel %vm1183_vm10, %v5525_v17, %v3903_v40 }
 0x830   : > { %4101 = vrot.lane.b32.xlu0 %v4019_v26, %s8815_s19 }
 0x832   : > { %4097 = vrot.lane.b32.xlu1 %v4013_v7, %s8815_s19 }
 0x834   : > { %4067 = vperm.xlu0 %5781, %v4053_v46  }
 0x836   : > { %4072 = vperm.xlu1 %5780, %v4054_v29  }
 0x838   : > { %4057 = vperm.xlu0 %5781, %v4051_v63  }
 0x83a   : > { %4062 = vperm.xlu1 %5780, %v4052_v33  }
 0x83c   : > { %4612 = vrot.lane.b32.xlu0 %v5605_v6, %s8720_s30 }
 0x83e   : > { %4606 = vrot.lane.b32.xlu1 %v5602_v25, %s8720_s30  ;;  %v5827_v25 = vld [vmem:[#allocation10] sm:$0xff]  }
 0x840   : > { %4570 = vrot.lane.b32.xlu0 %v5599_v48, %s8733_s26 }
 0x842   : > { %4564 = vrot.lane.b32.xlu1 %v5596_v45, %s8733_s26 }
 0x844   : > { %4528 = vrot.lane.b32.xlu0 %v5593_v60, %s8921_s18 }
 0x846   : > { %4522 = vrot.lane.b32.xlu1 %v5590_v12, %s8921_s18 }
 0x848   : > { %4654 = vrot.lane.b32.xlu0 %v5611_v38, %s8732_s21 }
 0x84c   : > { %4648 = vrot.lane.b32.xlu0 %v5608_v36, %s8732_s21 }
 0x888   : > { %v4122_v37 = vpop.permute.xlu1 %4121 }
 0x889   : > { %v4124_v21 = vpop.permute.xlu0 %4123 }
 0x88a   : > { %v4135_v2 = vsel %vm8922_vm14, %v4122_v37, %v4124_v21  ;;  %vm8939_vm14 = vcmask 916480  }
 0x88b   : > { %v4152_v34 = vsel %vm1183_vm10, %v4135_v2, 0 }
 0x88c   : > { %v4126_v27 = vpop.permute.xlu1 %4125 }
 0x88d   : > { %v4136_v16 = vsel %vm8923_vm1, %v4124_v21, %v4126_v27  ;;  %v4116_v1 = vpop.permute.xlu0 %4115  ;;  %vm8940_vm1 = vmmov %vm8939_vm14 }
 0x88e   : > { %5553 = vmatprep.subr.msk.bf16.mxu0 %vm1183_vm10, %v4136_v16 }
 0x88f   : > { %4164 = vmatpush1.bf16.msra.mxu0 %v4152_v34 }
 0x890   : > { %v4110_v0 = vpop.permute.xlu1 %4109 }
 0x891   : > { %v4118_v59 = vpop.permute.xlu0 %4117 }
 0x892   : > { %v4133_v55 = vsel %vm8925_vm2, %v4116_v1, %v4118_v59 }
 0x894   : > { %v4120_v10 = vpop.permute.xlu1 %4119 }
 0x895   : > { %v4114_v49 = vpop.permute.xlu0 %4113  ;;  %v4134_v24 = vsel %vm8924_vm3, %v4118_v59, %v4120_v10  ;;  %vm8941_vm3 = vcmask 1031168  }
 0x896   : > { %4165 = vmatprep.subr.bf16.mxu0 %v4134_v24  ;;  %vm8942_vm2 = vmmov %vm8941_vm3 }
 0x897   : > { %4166 = vmatpush1.bf16.msra.mxu0 %v4133_v55 }
 0x898   : > { %v4112_v40 = vpop.permute.xlu1 %4111 }
 0x899   : > { %v4132_v26 = vsel %vm8926_vm12, %v4112_v40, %v4114_v49  ;;  %v4131_v17 = vsel %vm8927_vm9, %v4110_v0, %v4112_v40  ;;  %vm8943_vm12 = vmmov %vm8937_vm6 }
 0x89a   : > { %4167 = vmatprep.subr.bf16.mxu0 %v4132_v26  ;;  %v4106_v7 = vpop.permute.xlu0 %4105  ;;  %vm8944_vm9 = vmmov %vm8937_vm6 }
 0x89b   : > { %4168 = vmatpush1.bf16.msra.mxu0 %v4131_v17 }
 0x89c   : > { %v4108_v46 = vpop.permute.xlu1 %4107 }
 0x89d   : > { %v4130_v29 = vsel %vm8928_vm7, %v4106_v7, %v4108_v46  ;;  %vm8945_vm7 = vcmask 777216  }
 0x89e   : > { %4169 = vmatprep.subr.bf16.mxu0 %v4130_v29  ;;  %v4104_v63 = vpop.permute.xlu0 %4103 }
 0x89f   : > { %v4129_v33 = vsel %vm8929_vm13, %v4104_v63, %v4106_v7  ;;  %vm8946_vm13 = vmmov %vm8940_vm1 }
 0x8a0   : > { %v4100_v43 = vpop.permute.xlu1 %4099  ;;  %4170 = vmatpush1.bf16.msra.mxu0 %v4129_v33 }
 0x8a2   : > { %v4102_v18 = vpop.permute.xlu0 %4101 }
 0x8a3   : > { %v4128_v6 = vsel %vm8930_vm0, %v4100_v43, %v4102_v18  ;;  %vm8947_vm0 = vmmov %vm8942_vm2 }
 0x8a4   : > { %v4098_v13 = vpop.permute.xlu1 %4097  ;;  %4171 = vmatprep.subr.bf16.mxu0 %v4128_v6 }
 0x8a5   : > { %v4127_v9 = vsel %vm8931_vm15, %v4098_v13, %v4100_v43  ;;  %vm8948_vm15 = vmmov %vm8940_vm1 }
 0x8a6   : > { %4172 = vmatpush1.bf16.msra.mxu0 %v4127_v9 }
 0x8a9   : > { %5554 = vmatmul.mubr.msk.bf16.vlgmr.msra.gmra.mxu0 %vm8932_vm4, %v5827_v25  ;;  %vm8949_vm4 = vmmov %vm8947_vm0 }
 0x8aa   : > { %4199 = vmatprep.mubr.bf16.mxu0 %v8900_v11 }
 0x8af   : > { %v4068_v5 = vpop.permute.xlu0 %4067 }
 0x8b1   : > { %5555 = vmatmul.mubr.msk.bf16.gmra.mxu0 %vm8933_vm8, %v5828_v28  ;;  %v4073_v51 = vpop.permute.xlu1 %4072  ;;  %vm8950_vm8 = vmmov %vm8945_vm7 }
 0x8b3   : > { %v4058_v50 = vpop.permute.xlu0 %4057 }
 0x8b5   : > { %v4063_v20 = vpop.permute.xlu1 %4062 }
 0x969   : > { %v4191_v48 = vpop.f32.mrf.mxu0 }
 0x96a   : > { %v4192_v19 = vadd.f32 %v4191_v48, %v4058_v50 }
 0x96b   : > { %v4193_v3 = vpop.f32.mrf.mxu0 }
 0x96c   : > { %v4194_v45 = vadd.f32 %v4193_v3, %v4058_v50  ;;  %v4210_v60 = vmax.f32 %v4192_v19, 0.0 }
 0x96d   : > { %v4195_v14 = vpop.f32.mrf.mxu0 }
 0x96e   : > { %v4211_v4 = vmax.f32 %v4194_v45, 0.0  ;;  %v4196_v42 = vadd.f32 %v4195_v14, %v4063_v20 }
 0x96f   : > { %v4197_v12 = vpop.f32.mrf.mxu0 }
 0x970   : > { %v8056_v38 = vpack.c.bf16 %v4211_v4, %v4210_v60  ;;  %v4198_v53 = vadd.f32 %v4197_v12, %v4063_v20  ;;  %v4212_v36 = vmax.f32 %v4196_v42, 0.0 }
 0x971   : > { %v4201_v39 = vpop.f32.mrf.mxu0 }
 0x972   : > { %4242 = vst [vmem:[#allocation4 + $0x4] sm:$0xff] %v8056_v38  ;;  %v4213_v37 = vmax.f32 %v4198_v53, 0.0  ;;  %v8059_v21 = vadd.f32 %v4201_v39, %v4068_v5 }
 0x973   : > { %v4203_v2 = vpop.f32.mrf.mxu0 }
 0x974   : > { %v8061_v27 = vpack.c.bf16 %v4213_v37, %v4212_v36  ;;  %v8063_v16 = vadd.f32 %v4203_v2, %v4068_v5  ;;  %v4214_v34 = vmax.f32 %v8059_v21, 0.0  ;;  %v5853_v18 = vpack.c.bf16 %v4213_v37, %v4211_v4 }
 0x975   : > { %v4205_v1 = vpop.f32.mrf.mxu0 }
 0x976   : > { %4243 = vst [vmem:[#allocation4 + $0x14] sm:$0xff] %v8061_v27  ;;  %v4215_v0 = vmax.f32 %v8063_v16, 0.0  ;;  %v8068_v59 = vadd.f32 %v4205_v1, %v4073_v51 }
 0x977   : > { %v4207_v10 = vpop.f32.mrf.mxu0 }
 0x978   : > { %v5658_v49 = vpack.c.bf16 %v4215_v0, %v4214_v34  ;;  %v8074_v24 = vadd.f32 %v4207_v10, %v4073_v51  ;;  %v4216_v55 = vmax.f32 %v8068_v59, 0.0  ;;  %v5854_v51 = vpack.c.bf16 %v4212_v36, %v4210_v60 }
 0x979   : > { %v8082_v17 = vld [vmem:[#allocation4 + $0x8] sm:$0xf]  ;;  %v4246_v46 = vld [vmem:[#allocation4] sm:$0xff] }
 0x97a   : > { %4244 = vst [vmem:[#allocation4 + $0x24] sm:$0xff] %v5658_v49  ;;  %v4217_v40 = vmax.f32 %v8074_v24, 0.0  ;;  %v8094_v13 = vmul.bf16 %v4246_v46, %v8828_v35  ;;  %v8104_v28 = vmul.bf16 %v5658_v49, %v8904_v22  ;;  %v4271_v19 = vmul.bf16 %v8082_v17, %v6707_v15 }
 0x97b   : > { %v8123_v20 = vmul.bf16 %v5658_v49, %v8905_v30  ;;  %v8126_v14 = vmul.bf16 %v5658_v49, %v8903_v31  ;;  %v4263_v37 = vmul.bf16 %v8082_v17, %v8805_v56  ;;  %v4270_v2 = vmul.bf16 %v4246_v46, %v8804_v54 }
 0x97c   : > { %v5659_v26 = vpack.c.bf16 %v4217_v40, %v4216_v55  ;;  %v4300_v49 = vmul.bf16 %v8061_v27, %v8904_v22 }
 0x97d   : > { %v8084_v7 = vld [vmem:[#allocation4 + $0x18] sm:$0xf]  ;;  %v4248_v29 = vld [vmem:[#allocation4 + $0x10] sm:$0xff] }
 0x97e   : > { %4245 = vst [vmem:[#allocation4 + $0x34] sm:$0xff] %v5659_v26  ;;  %v5568_v63 = vcombine.low %v8082_v17, %v8084_v7  ;;  %v5567_v33 = vcombine.high %v4246_v46, %v4248_v29  ;;  %v8091_v43 = vmul.bf16 %v4248_v29, %v8828_v35  ;;  %v5566_v6 = vcombine.low %v4246_v46, %v4248_v29 }
 0x97f   : > { %v8099_v9 = vmul.bf16 %v5659_v26, %v8904_v22  ;;  %v4273_v25 = vmul.bf16 %v8084_v7, %v6707_v15  ;;  %v8109_v50 = vmul.bf16 %v5659_v26, %v8905_v30  ;;  %v8112_v48 = vmul.bf16 %v5659_v26, %v8903_v31 }
 0x980   : > { %4370 = vrot.lane.b32.xlu0 %v5568_v63, %s8934_s28  ;;  %4368 = vrot.lane.b32.xlu1 %v5567_v33, %s8934_s28  ;;  %v5560_v5 = vcombine.low %v8094_v13, %v8091_v43  ;;  %v4265_v4 = vmul.bf16 %v8084_v7, %v8805_v56  ;;  %v4272_v42 = vmul.bf16 %v4248_v29, %v8804_v54 }
 0x981   : > { %v5597_v3 = vcombine.low %v8104_v28, %v8099_v9  ;;  %v5598_v45 = vcombine.high %v8104_v28, %v8099_v9  ;;  %v5580_v60 = vcombine.low %v4271_v19, %v4273_v25  ;;  %v5591_v12 = vcombine.low %v8123_v20, %v8109_v50 }
 0x982   : > { %v5592_v53 = vcombine.high %v8123_v20, %v8109_v50  ;;  %v5609_v39 = vcombine.low %v8126_v14, %v8112_v48  ;;  %v5610_v36 = vcombine.high %v8126_v14, %v8112_v48  ;;  %v5574_v1 = vcombine.low %v4263_v37, %v4265_v4  ;;  %v8237_v20 = vpop.permute.xlu0 %4612 }
 0x983   : > { %v5579_v10 = vcombine.high %v4270_v2, %v4272_v42  ;;  %v4298_v26 = vmul.bf16 %v8056_v38, %v8904_v22  ;;  %v5578_v33 = vcombine.low %v4270_v2, %v4272_v42  ;;  %v4290_v25 = vmul.bf16 %v8056_v38, %v8905_v30 }
 0x984   : > { %4604 = vrot.lane.b32.xlu0 %v5853_v18, %s8720_s30  ;;  %4366 = vrot.lane.b32.xlu1 %v5566_v6, %s8934_s28  ;;  %v4264_v6 = vmul.bf16 %v4248_v29, %v8806_v44  ;;  %v4308_v4 = vmul.bf16 %v8061_v27, %v8903_v31  ;;  %v4306_v29 = vmul.bf16 %v8056_v38, %v8903_v31  ;;  %v4250_v38 = vld [vmem:[#allocation4 + $0x20] sm:$0xff] }
 0x985   : > { %v5595_v63 = vcombine.high %v4298_v26, %v4300_v49  ;;  %v4257_v2 = vmul.bf16 %v8084_v7, %v8818_v52  ;;  %v4274_v21 = vmul.bf16 %v4250_v38, %v8804_v54  ;;  %v4258_v9 = vmul.bf16 %v4250_v38, %v8828_v35 }
 0x986   : > { %v5606_v42 = vcombine.low %v4306_v29, %v4308_v4 }
 0x988   : > { %4484 = vrot.lane.b32.xlu0 %v5853_v18, %s8935_s20  ;;  %4602 = vrot.lane.b32.xlu1 %v5854_v51, %s8720_s30  ;;  %v4292_v18 = vmul.bf16 %v8061_v27, %v8905_v30 }
 0x98a   : > { %v5589_v19 = vcombine.high %v4290_v25, %v4292_v18 }
 0x98c   : > { %4454 = vrot.lane.b32.xlu0 %v5580_v60, %s8712_s29  ;;  %4482 = vrot.lane.b32.xlu1 %v5854_v51, %s8935_s20  ;;  %v4262_v51 = vmul.bf16 %v4246_v46, %v8806_v44  ;;  %v4255_v46 = vmul.bf16 %v8082_v17, %v8818_v52  ;;  %v5855_v17 = vpack.c.bf16 %v4216_v55, %v4214_v34 }
 0x98d   : > { %v5856_v34 = vpack.c.bf16 %v4217_v40, %v4215_v0 }
 0x98e   : > { %v5573_v60 = vcombine.high %v4262_v51, %v4264_v6  ;;  %v5572_v37 = vcombine.low %v4262_v51, %v4264_v6  ;;  %v5562_v27 = vcombine.low %v4255_v46, %v4257_v2  ;;  %v5607_v6 = vcombine.high %v4306_v29, %v4308_v4 }
 0x98f   : > { %v4266_v4 = vmul.bf16 %v4250_v38, %v8806_v44 }
 0x990   : > { %4412 = vrot.lane.b32.xlu0 %v5574_v1, %s8936_s23  ;;  %4452 = vrot.lane.b32.xlu1 %v5579_v10, %s8712_s29  ;;  %v5594_v1 = vcombine.low %v4298_v26, %v4300_v49  ;;  %v4252_v10 = vld [vmem:[#allocation4 + $0x30] sm:$0xff]  ;;  %v5561_v49 = vcombine.high %v8094_v13, %v8091_v43  ;;  %v4253_v26 = vld [vmem:[#allocation4 + $0x38] sm:$0xf] }
 0x991   : > { %v5569_v7 = vcombine.low %v4250_v38, %v4252_v10  ;;  %v4276_v51 = vmul.bf16 %v4252_v10, %v8804_v54  ;;  %v4269_v0 = vmul.bf16 %v4253_v26, %v8805_v56  ;;  %v4260_v2 = vmul.bf16 %v4252_v10, %v8828_v35 }
 0x992   : > { %v4261_v46 = vmul.bf16 %v4253_v26, %v8818_v52 }
 0x993   : > { %v5582_v59 = vcombine.high %v4274_v21, %v4276_v51  ;;  %v5581_v55 = vcombine.low %v4274_v21, %v4276_v51  ;;  %v5564_v50 = vcombine.high %v4258_v9, %v4260_v2 }
 0x994   : > { %4562 = vrot.lane.b32.xlu0 %v5595_v63, %s8733_s26  ;;  %4450 = vrot.lane.b32.xlu1 %v5578_v33, %s8712_s29  ;;  %v5570_v63 = vcombine.high %v4250_v38, %v4252_v10  ;;  %v5588_v33 = vcombine.low %v4290_v25, %v4292_v18  ;;  %v4251_v18 = vld [vmem:[#allocation4 + $0x28] sm:$0xf] }
 0x995   : > { %v5571_v25 = vcombine.low %v4251_v18, %v4253_v26  ;;  %v4275_v16 = vmul.bf16 %v4251_v18, %v6707_v15  ;;  %v4267_v40 = vmul.bf16 %v4251_v18, %v8805_v56  ;;  %v4259_v28 = vmul.bf16 %v4251_v18, %v8818_v52 }
 0x998   : > { %4520 = vrot.lane.b32.xlu0 %v5589_v19, %s8921_s18  ;;  %4410 = vrot.lane.b32.xlu1 %v5573_v60, %s8936_s23  ;;  %v4268_v19 = vmul.bf16 %v4252_v10, %v8806_v44  ;;  %v4277_v60 = vmul.bf16 %v4253_v26, %v6707_v15 }
 0x99a   : > { %v5576_v29 = vcombine.high %v4266_v4, %v4268_v19  ;;  %v5583_v24 = vcombine.low %v4275_v16, %v4277_v60 }
 0x99c   : > { %4644 = vrot.lane.b32.xlu0 %v5606_v42, %s8732_s21  ;;  %4408 = vrot.lane.b32.xlu1 %v5572_v37, %s8936_s23  ;;  %v5575_v42 = vcombine.low %v4266_v4, %v4268_v19  ;;  %v5577_v37 = vcombine.low %v4267_v40, %v4269_v0 }
 0x9a0   : > { %4682 = vrot.lane.b32.xlu0 %v5562_v27, %s8815_s19  ;;  %4560 = vrot.lane.b32.xlu1 %v5594_v1, %s8733_s26 }
 0x9a4   : > { %4374 = vrot.lane.b32.xlu0 %v5570_v63, %s8934_s28  ;;  %4518 = vrot.lane.b32.xlu1 %v5588_v33, %s8921_s18 }
 0x9a8   : > { %4372 = vrot.lane.b32.xlu0 %v5569_v7, %s8934_s28  ;;  %4646 = vrot.lane.b32.xlu1 %v5607_v6, %s8732_s21 }
 0x9ac   : > { %4608 = vrot.lane.b32.xlu0 %v5855_v17, %s8720_s30  ;;  %4680 = vrot.lane.b32.xlu1 %v5561_v49, %s8815_s19 }
 0x9b0   : > { %4486 = vrot.lane.b32.xlu0 %v5855_v17, %s8935_s20  ;;  %4376 = vrot.lane.b32.xlu1 %v5571_v25, %s8934_s28 }
 0x9b4   : > { %4458 = vrot.lane.b32.xlu0 %v5582_v59, %s8712_s29  ;;  %4610 = vrot.lane.b32.xlu1 %v5856_v34, %s8720_s30 }
 0x9b8   : > { %4456 = vrot.lane.b32.xlu0 %v5581_v55, %s8712_s29  ;;  %4488 = vrot.lane.b32.xlu1 %v5856_v34, %s8935_s20 }
 0x9bc   : > { %4416 = vrot.lane.b32.xlu0 %v5576_v29, %s8936_s23  ;;  %4460 = vrot.lane.b32.xlu1 %v5583_v24, %s8712_s29 }
 0x9c0   : > { %4414 = vrot.lane.b32.xlu0 %v5575_v42, %s8936_s23  ;;  %4418 = vrot.lane.b32.xlu1 %v5577_v37, %s8936_s23 }
 0x9c4   : > { %4566 = vrot.lane.b32.xlu0 %v5597_v3, %s8733_s26  ;;  %4568 = vrot.lane.b32.xlu1 %v5598_v45, %s8733_s26  ;;  %v5565_v3 = vcombine.low %v4259_v28, %v4261_v46  ;;  %v5563_v45 = vcombine.low %v4258_v9, %v4260_v2 }
 0x9c8   : > { %4524 = vrot.lane.b32.xlu0 %v5591_v12, %s8921_s18  ;;  %4526 = vrot.lane.b32.xlu1 %v5592_v53, %s8921_s18  ;;  %v8239_v12 = vpop.permute.xlu0 %4570  ;;  %v8241_v53 = vpop.permute.xlu1 %4606 }
 0x9cc   : > { %4650 = vrot.lane.b32.xlu0 %v5609_v39, %s8732_s21  ;;  %4652 = vrot.lane.b32.xlu1 %v5610_v36, %s8732_s21  ;;  %v8243_v48 = vpop.permute.xlu0 %4528  ;;  %v8245_v14 = vpop.permute.xlu1 %4564 }
 0x9d0   : > { %4686 = vrot.lane.b32.xlu0 %v5564_v50, %s8815_s19  ;;  %4688 = vrot.lane.b32.xlu1 %v5565_v3, %s8815_s19  ;;  %v8247_v39 = vpop.permute.xlu0 %4654  ;;  %v8249_v36 = vpop.permute.xlu1 %4522 }
 0x9d4   : > { %4684 = vrot.lane.b32.xlu0 %v5563_v45, %s8815_s19  ;;  %v8251_v27 = vpop.permute.xlu0 %4648 }
 0x9f2   : > { %v4369_v1 = vpop.permute.xlu1 %4368  ;;  %v4371_v10 = vpop.permute.xlu0 %4370 }
 0x9f3   : > { %4694 = vrot.lane.b32.xlu0 %v4371_v10, %s8815_s19  ;;  %v4379_v38 = vsel %vm8937_vm6, %v4369_v1, %v4371_v10  ;;  %vm8951_vm6 = vmmov %vm8945_vm7 }
 0x9f4   : > { %4692 = vrot.lane.b32.xlu1 %v4379_v38, %s8815_s19 }
 0x9f6   : > { %v4367_v63 = vpop.permute.xlu1 %4366  ;;  %v8256_v33 = vpop.permute.xlu0 %4604 }
 0x9f7   : > { %v4378_v7 = vsel %vm8938_vm11, %v4367_v63, %v4369_v1  ;;  %vm8952_vm11 = vmmov %vm8951_vm6 }
 0x9f8   : > { %4690 = vrot.lane.b32.xlu1 %v4378_v7, %s8815_s19 }
 0x9fa   : > { %v8260_v6 = vpop.permute.xlu1 %4602  ;;  %v8262_v17 = vpop.permute.xlu0 %4484 }
 0x9fe   : > { %v8264_v49 = vpop.permute.xlu1 %4482  ;;  %v4455_v26 = vpop.permute.xlu0 %4454 }
 0x9ff   : > { %4718 = vrot.lane.b32.xlu0 %v4455_v26, %s8815_s19 }
 0xa02   : > { %v4453_v18 = vpop.permute.xlu1 %4452  ;;  %v4413_v25 = vpop.permute.xlu0 %4412 }
 0xa03   : > { %4706 = vrot.lane.b32.xlu0 %v4413_v25, %s8815_s19  ;;  %v4463_v51 = vsel %vm8939_vm14, %v4453_v18, %v4455_v26  ;;  %vm8953_vm14 = vcmask 785408  }
 0xa04   : > { %4716 = vrot.lane.b32.xlu1 %v4463_v51, %s8815_s19 }
 0xa06   : > { %v4451_v21 = vpop.permute.xlu1 %4450  ;;  %v4563_v59 = vpop.permute.xlu0 %4562 }
 0xa07   : > { %v4462_v34 = vsel %vm8940_vm1, %v4451_v21, %v4453_v18  ;;  %v4573_v43 = vsel %vm8953_vm14, %v4563_v59, %v8245_v14  ;;  %vm8954_vm1 = vmmov %vm8953_vm14  ;;  %vm8967_vm14 = vcmask 138240  }
 0xa08   : > { %4714 = vrot.lane.b32.xlu1 %v4462_v34, %s8815_s19 }
 0xa0a   : > { %v4411_v55 = vpop.permute.xlu1 %4410  ;;  %v8272_v19 = vpop.permute.xlu0 %4520 }
 0xa0b   : > { %v4421_v60 = vsel %vm8941_vm3, %v4411_v55, %v4413_v25  ;;  %vm8955_vm3 = vcmask 900096  }
 0xa0c   : > { %4704 = vrot.lane.b32.xlu1 %v4421_v60, %s8815_s19 }
 0xa0e   : > { %v4409_v4 = vpop.permute.xlu1 %4408  ;;  %v8276_v16 = vpop.permute.xlu0 %4644 }
 0xa0f   : > { %v4420_v29 = vsel %vm8942_vm2, %v4409_v4, %v4411_v55  ;;  %vm8956_vm2 = vmmov %vm8955_vm3 }
 0xa10   : > { %4702 = vrot.lane.b32.xlu1 %v4420_v29, %s8815_s19  ;;  %v4615_v29 = vsel %vm8951_vm6, %v8256_v33, %v8241_v53 }
 0xa12   : > { %v4561_v24 = vpop.permute.xlu1 %4560  ;;  %v8280_v0 = vpop.permute.xlu0 %4682 }
 0xa16   : > { %v4519_v40 = vpop.permute.xlu1 %4518  ;;  %v4375_v42 = vpop.permute.xlu0 %4374 }
 0xa17   : > { %v4530_v53 = vsel %vm8956_vm2, %v4519_v40, %v8272_v19 }
 0xa1a   : > { %v8282_v37 = vpop.permute.xlu1 %4646  ;;  %v4373_v2 = vpop.permute.xlu0 %4372 }
 0xa1b   : > { %v4380_v10 = vsel %vm8944_vm9, %v4373_v2, %v4375_v42  ;;  %v4614_v2 = vsel %vm8952_vm11, %v8260_v6, %v8256_v33  ;;  %vm8958_vm9 = vmmov %vm8954_vm1 }
 0xa1e   : > { %v8284_v46 = vpop.permute.xlu1 %4680  ;;  %v4609_v9 = vpop.permute.xlu0 %4608 }
 0xa22   : > { %v4377_v28 = vpop.permute.xlu1 %4376  ;;  %v4487_v50 = vpop.permute.xlu0 %4486 }
 0xa23   : > { %4700 = vrot.lane.b32.xlu1 %v4377_v28, %s8815_s19  ;;  %v4381_v3 = vsel %vm8943_vm12, %v4375_v42, %v4377_v28  ;;  %vm8957_vm12 = vcmask 908288  }
 0xa24   : > { %4698 = vrot.lane.b32.xlu0 %v4381_v3, %s8815_s19 }
 0xa26   : > { %v4611_v45 = vpop.permute.xlu1 %4610  ;;  %v4459_v1 = vpop.permute.xlu0 %4458 }
 0xa27   : > { %v4616_v25 = vsel %vm8945_vm7, %v4609_v9, %v4611_v45  ;;  %v4617_v4 = vsel %vm8950_vm8, %v4611_v45, %v8237_v20  ;;  %v4531_v20 = vsel %vm8955_vm3, %v8272_v19, %v8249_v36  ;;  %vm8959_vm7 = vmmov %vm8956_vm2  ;;  %v8376_v45 = vld [vmem:[#allocation3 + $0xc] sm:$0xf] }
 0xa28   : > { %4696 = vrot.lane.b32.xlu0 %v4380_v10, %s8815_s19  ;;  %v4966_v10 = vmul.bf16 %v8376_v45, %v6657_v57 }
 0xa2a   : > { %v4489_v38 = vpop.permute.xlu1 %4488  ;;  %v4457_v63 = vpop.permute.xlu0 %4456 }
 0xa2b   : > { %v4464_v55 = vsel %vm8948_vm15, %v4457_v63, %v4459_v1  ;;  %v4491_v14 = vsel %vm8957_vm12, %v4487_v50, %v4489_v38  ;;  %vm8962_vm15 = vmmov %vm8956_vm2  ;;  %v5633_v63 = vcombine.low %v4966_v10, %v4966_v10 }
 0xa2e   : > { %v4461_v7 = vpop.permute.xlu1 %4460  ;;  %v4417_v26 = vpop.permute.xlu0 %4416 }
 0xa2f   : > { %4724 = vrot.lane.b32.xlu0 %v4461_v7, %s8815_s19  ;;  %v4465_v51 = vsel %vm8946_vm13, %v4459_v1, %v4461_v7  ;;  %vm8960_vm13 = vmmov %vm8954_vm1 }
 0xa32   : > { %v4419_v18 = vpop.permute.xlu1 %4418  ;;  %v4415_v34 = vpop.permute.xlu0 %4414 }
 0xa33   : > { %4712 = vrot.lane.b32.xlu1 %v4419_v18, %s8815_s19  ;;  %4770 = vrot.lane.b32.xlu0 %v4616_v25, %s8815_s19  ;;  %v4423_v21 = vsel %vm8947_vm0, %v4417_v26, %v4419_v18  ;;  %v4422_v60 = vsel %vm8949_vm4, %v4415_v34, %v4417_v26  ;;  %vm8961_vm0 = vmmov %vm8957_vm12  ;;  %vm8963_vm4 = vcmask 769024  }
 0xa34   : > { %vm8964_vm8 = vmmov %vm8963_vm4 }
 0xa35   : > { %vm8965_vm6 = vmmov %vm8963_vm4 }
 0xa36   : > { %v4567_v42 = vpop.permute.xlu0 %4566  ;;  %v4569_v33 = vpop.permute.xlu1 %4568  ;;  %vm8966_vm11 = vmmov %vm8963_vm4 }
 0xa37   : > { %4722 = vrot.lane.b32.xlu1 %v4465_v51, %s8815_s19  ;;  %4710 = vrot.lane.b32.xlu0 %v4423_v21, %s8815_s19  ;;  %v4575_v19 = vsel %vm8960_vm13, %v4569_v33, %v8239_v12  ;;  %v4656_v1 = vsel %vm8966_vm11, %v8276_v16, %v8282_v37 }
 0xa3a   : > { %v4525_v13 = vpop.permute.xlu0 %4524  ;;  %v4527_v36 = vpop.permute.xlu1 %4526 }
 0xa3b   : > { %4720 = vrot.lane.b32.xlu1 %v4464_v55, %s8815_s19  ;;  %4708 = vrot.lane.b32.xlu0 %v4422_v60, %s8815_s19 }
 0xa3e   : > { %v4653_v28 = vpop.permute.xlu1 %4652 }
 0xa3f   : > { %4678 = vrot.lane.b32.xlu1 %v5560_v5, %s8815_s19  ;;  %4768 = vrot.lane.b32.xlu0 %v4609_v9, %s8815_s19  ;;  %v4572_v5 = vsel %vm8954_vm1, %v4561_v24, %v4563_v59  ;;  %v4532_v59 = vsel %vm8959_vm7, %v4525_v13, %v4527_v36  ;;  %v4533_v9 = vsel %vm8962_vm15, %v4527_v36, %v8243_v48  ;;  %vm8968_vm1 = vmmov %vm8967_vm14 }
 0xa40   : > { %v4659_v12 = vsel %vm8963_vm4, %v4653_v28, %v8247_v39  ;;  %v4662_v39 = vld [vmem:[%s8575_s12] sm:$0xff]  ;;  %vm8969_vm3 = vmmov %vm8968_vm1 }
 0xa41   : > { %vm8970_vm2 = vmmov %vm8968_vm1 }
 0xa42   : > { %vm8971_vm12 = vmmov %vm8968_vm1 }
 0xa43   : > { %4772 = vrot.lane.b32.xlu1 %v4617_v4, %s8815_s19  ;;  %4766 = vrot.lane.b32.xlu0 %v4615_v29, %s8815_s19  ;;  %vm8973_vm7 = vmmov %vm8968_vm1 }
 0xa44   : > { %vm8974_vm13 = vmmov %vm8968_vm1 }
 0xa47   : > { %4764 = vrot.lane.b32.xlu1 %v4614_v2, %s8815_s19  ;;  %4756 = vrot.lane.b32.xlu0 %v4567_v42, %s8815_s19 }
 0xa4b   : > { %4762 = vrot.lane.b32.xlu1 %v8260_v6, %s8815_s19  ;;  %4754 = vrot.lane.b32.xlu0 %v4573_v43, %s8815_s19  ;;  %v4574_v6 = vsel %vm8958_vm9, %v4567_v42, %v4569_v33  ;;  %vm8972_vm9 = vmmov %vm8968_vm1 }
 0xa4f   : > { %4752 = vrot.lane.b32.xlu1 %v4572_v5, %s8815_s19  ;;  %4744 = vrot.lane.b32.xlu0 %v4525_v13, %s8815_s19 }
 0xa53   : > { %4750 = vrot.lane.b32.xlu1 %v4561_v24, %s8815_s19  ;;  %4742 = vrot.lane.b32.xlu0 %v4531_v20, %s8815_s19  ;;  %v4651_v24 = vpop.permute.xlu0 %4650 }
 0xa54   : > { %v4658_v48 = vsel %vm8964_vm8, %v4651_v24, %v4653_v28 }
 0xa57   : > { %4740 = vrot.lane.b32.xlu1 %v4530_v53, %s8815_s19  ;;  %4734 = vrot.lane.b32.xlu0 %v4491_v14, %s8815_s19  ;;  %v4687_v26 = vpop.permute.xlu0 %4686 }
 0xa5b   : > { %4738 = vrot.lane.b32.xlu1 %v4519_v40, %s8815_s19  ;;  %4758 = vrot.lane.b32.xlu0 %v4574_v6, %s8815_s19  ;;  %v4490_v40 = vsel %vm8961_vm0, %v8264_v49, %v8262_v17  ;;  %v4685_v18 = vpop.permute.xlu0 %4684  ;;  %vm8975_vm0 = vmmov %vm8968_vm1 }
 0xa5c   : > { %vm8976_vm15 = vmmov %vm8975_vm0 }
 0xa5d   : > { %vm8977_vm4 = vmmov %vm8975_vm0 }
 0xa5e   : > { %vm8978_vm8 = vmmov %vm8975_vm0 }
 0xa5f   : > { %4736 = vrot.lane.b32.xlu1 %v4489_v38, %s8815_s19  ;;  %4732 = vrot.lane.b32.xlu0 %v4487_v50, %s8815_s19  ;;  %v8360_v50 = vld [vmem:[#allocation12] sm:$0xff]  ;;  %v4970_v38 = vmul.bf16 %v8376_v45, %v6647_v8  ;;  %vm8980_vm11 = vmmov %vm8975_vm0 }
 0xa60   : > { %v5613_v3 = vcombine.high %v8360_v50, %v8360_v50 }
 0xa61   : > { %v5642_v7 = vcombine.low %v4970_v38, %v4970_v38 }
 0xa62   : > { %4893 = vmatprep.mubr.bf16.mxu0 %v5613_v3 }
 0xa63   : > { %4760 = vrot.lane.b32.xlu1 %v4575_v19, %s8815_s19  ;;  %4746 = vrot.lane.b32.xlu0 %v4532_v59, %s8815_s19 }
 0xa65   : > { %v4695_v57 = vpop.permute.xlu0 %4694 }
 0xa67   : > { %4728 = vrot.lane.b32.xlu0 %v4490_v40, %s8815_s19  ;;  %4780 = vrot.lane.b32.xlu1 %v4651_v24, %s8815_s19 }
 0xa6b   : > { %4726 = vrot.lane.b32.xlu0 %v8264_v49, %s8815_s19  ;;  %4748 = vrot.lane.b32.xlu1 %v4533_v9, %s8815_s19  ;;  %v4657_v49 = vsel %vm8965_vm6, %v8282_v37, %v8251_v27  ;;  %vm8979_vm6 = vmmov %vm8975_vm0 }
 0xa6f   : > { %4784 = vrot.lane.b32.xlu0 %v4659_v12, %s8815_s19  ;;  %4730 = vrot.lane.b32.xlu1 %v8262_v17, %s8815_s19  ;;  %v4968_v17 = vmul.bf16 %v8376_v45, %v8864_v23  ;;  %v4689_v23 = vpop.permute.xlu1 %4688 }
 0xa71   : > { %v5636_v27 = vcombine.low %v4968_v17, %v4968_v17  ;;  %v4719_v21 = vpop.permute.xlu0 %4718 }
 0xa73   : > { %4778 = vrot.lane.b32.xlu0 %v4657_v49, %s8815_s19  ;;  %4782 = vrot.lane.b32.xlu1 %v4658_v48, %s8815_s19  ;;  %v4693_v37 = vpop.permute.xlu1 %4692 }
 0xa74   : > { %v4791_v10 = vsel %vm8977_vm4, %v4693_v37, %v4695_v57  ;;  %vm8990_vm4 = vmmov %vm8975_vm0 }
 0xa75   : > { %v4707_v34 = vpop.permute.xlu0 %4706 }
 0xa77   : > { %4665 = vperm.xlu0 %5781, %v4662_v39   ;;  %4776 = vrot.lane.b32.xlu1 %v4656_v1, %s8815_s19  ;;  %v4691_v25 = vpop.permute.xlu1 %4690 }
 0xa7b   : > { %5065 = vrot.lane.b32.xlu0 %v5636_v27, %s8733_s26  ;;  %4774 = vrot.lane.b32.xlu1 %v8276_v16, %s8815_s19  ;;  %v4717_v51 = vpop.permute.xlu1 %4716 }
 0xa7c   : > { %v4799_v6 = vsel %vm8969_vm3, %v4717_v51, %v4719_v21  ;;  %vm8983_vm3 = vmmov %vm8975_vm0 }
 0xa7f   : > { %5049 = vrot.lane.b32.xlu0 %v5633_v63, %s8921_s18  ;;  %5097 = vrot.lane.b32.xlu1 %v5642_v7, %s8732_s21  ;;  %v4715_v8 = vpop.permute.xlu1 %4714  ;;  %v4790_v7 = vsel %vm8978_vm8, %v4691_v25, %v4693_v37  ;;  %vm8991_vm8 = vmmov %vm8975_vm0 }
 0xa80   : > { %v4798_v19 = vsel %vm8970_vm2, %v4715_v8, %v4717_v51  ;;  %v4789_v51 = vsel %vm8979_vm6, %v4687_v26, %v4689_v23  ;;  %vm8984_vm2 = vmmov %vm8975_vm0 }
 0xa81   : > { %vm8992_vm6 = vmmov %vm8975_vm0 }
 0xa83   : > { %v4705_v55 = vpop.permute.xlu1 %4704 }
 0xa84   : > { %v4795_v12 = vsel %vm8973_vm7, %v4705_v55, %v4707_v34  ;;  %v4788_v34 = vsel %vm8980_vm11, %v4685_v18, %v4687_v26  ;;  %vm8987_vm7 = vmmov %vm8975_vm0 }
 0xa85   : > { %vm8993_vm11 = vmmov %vm8975_vm0 }
 0xa87   : > { %v4703_v4 = vpop.permute.xlu1 %4702 }
 0xa88   : > { %v4794_v49 = vsel %vm8974_vm13, %v4703_v4, %v4705_v55  ;;  %vm8988_vm13 = vmmov %vm8975_vm0 }
 0xa95   : > { %v4701_v29 = vpop.permute.xlu1 %4700 }
 0xa96   : > { %v4699_v60 = vpop.permute.xlu0 %4698 }
 0xa97   : > { %v4793_v39 = vsel %vm8975_vm0, %v4699_v60, %v4701_v29 }
 0xa9a   : > { %v4697_v16 = vpop.permute.xlu0 %4696 }
 0xa9b   : > { %v4792_v27 = vsel %vm8976_vm15, %v4697_v16, %v4699_v60  ;;  %vm8989_vm15 = vmmov %vm8975_vm0 }
 0xaa1   : > { %v4725_v42 = vpop.permute.xlu0 %4724 }
 0xaa5   : > { %v4713_v2 = vpop.permute.xlu1 %4712  ;;  %v4771_v43 = vpop.permute.xlu0 %4770 }
 0xaa9   : > { %v4723_v13 = vpop.permute.xlu1 %4722  ;;  %v4711_v5 = vpop.permute.xlu0 %4710 }
 0xaaa   : > { %v4801_v20 = vsel %vm8967_vm14, %v4723_v13, %v4725_v42  ;;  %v4797_v24 = vsel %vm8971_vm12, %v4711_v5, %v4713_v2  ;;  %vm8981_vm14 = vmmov %vm8975_vm0 }
 0xaab   : > { %4861 = vmatprep.subr.bf16.mxu0 %v4801_v20  ;;  %v4787_v55 = vsel %vm8981_vm14, %v8284_v46, %v8280_v0  ;;  %vm8985_vm12 = vmmov %vm8975_vm0 }
 0xaac   : > { %vm8994_vm14 = vmmov %vm8975_vm0 }
 0xaad   : > { %v4721_v53 = vpop.permute.xlu1 %4720  ;;  %v4709_v14 = vpop.permute.xlu0 %4708 }
 0xaae   : > { %v4800_v33 = vsel %vm8968_vm1, %v4721_v53, %v4723_v13  ;;  %v4796_v28 = vsel %vm8972_vm9, %v4709_v14, %v4711_v5  ;;  %vm8982_vm1 = vmmov %vm8975_vm0 }
 0xaaf   : > { %4862 = vmatpush1.bf16.msra.mxu0 %v4800_v33  ;;  %vm8986_vm9 = vmmov %vm8975_vm0 }
 0xab0   : > { %4863 = vmatprep.subr.bf16.mxu0 %v4799_v6 }
 0xab1   : > { %v4679_v36 = vpop.permute.xlu1 %4678  ;;  %v4769_v59 = vpop.permute.xlu0 %4768 }
 0xab2   : > { %v4786_v4 = vsel %vm8982_vm1, %v4679_v36, %v8284_v46  ;;  %v4816_v16 = vsel %vm8984_vm2, %v4769_v59, %v4771_v43  ;;  %vm8995_vm1 = vmmov %vm8975_vm0 }
 0xab3   : > { %4864 = vmatpush1.bf16.msra.mxu0 %v4798_v19  ;;  %vm8997_vm2 = vmmov %vm8975_vm0 }
 0xab4   : > { %4865 = vmatprep.subr.bf16.mxu0 %v4797_v24 }
 0xab5   : > { %v4773_v40 = vpop.permute.xlu1 %4772  ;;  %v4767_v9 = vpop.permute.xlu0 %4766 }
 0xab6   : > { %v4817_v37 = vsel %vm8983_vm3, %v4771_v43, %v4773_v40  ;;  %vm8996_vm3 = vmmov %vm8975_vm0 }
 0xab7   : > { %4866 = vmatpush1.bf16.msra.mxu0 %v4796_v28 }
 0xab8   : > { %4867 = vmatprep.subr.bf16.mxu0 %v4795_v12 }
 0xab9   : > { %v4765_v3 = vpop.permute.xlu1 %4764  ;;  %v4757_v48 = vpop.permute.xlu0 %4756 }
 0xaba   : > { %v4815_v26 = vsel %vm8985_vm12, %v4765_v3, %v4767_v9  ;;  %vm8998_vm12 = vmmov %vm8975_vm0 }
 0xabb   : > { %4868 = vmatpush1.bf16.msra.mxu0 %v4794_v49 }
 0xabc   : > { %4869 = vmatprep.subr.bf16.mxu0 %v4793_v39 }
 0xabd   : > { %v4763_v17 = vpop.permute.xlu1 %4762  ;;  %v4755_v1 = vpop.permute.xlu0 %4754 }
 0xabe   : > { %v4814_v29 = vsel %vm8986_vm9, %v4763_v17, %v4765_v3  ;;  %vm8999_vm9 = vmmov %vm8975_vm0 }
 0xabf   : > { %4870 = vmatpush1.bf16.msra.mxu0 %v4792_v27 }
 0xac0   : > { %4871 = vmatprep.subr.bf16.mxu0 %v4791_v10  ;;  %v5612_v10 = vcombine.low %v8360_v50, %v8360_v50 }
 0xac1   : > { %v4753_v38 = vpop.permute.xlu1 %4752  ;;  %v4745_v63 = vpop.permute.xlu0 %4744 }
 0xac2   : > { %v4811_v5 = vsel %vm8975_vm0, %v4753_v38, %v4755_v1 }
 0xac3   : > { %4872 = vmatpush1.bf16.msra.mxu0 %v4790_v7  ;;  %v5837_v7 = vld [vmem:[#allocation12 + $0x8] ss:$0 sps:$4 sm:$0xff]  }
 0xac4   : > { %4873 = vmatprep.subr.bf16.mxu0 %v4789_v51  ;;  %v5639_v51 = vcombine.low %v8376_v45, %v8376_v45 }
 0xac5   : > { %v4751_v21 = vpop.permute.xlu1 %4750  ;;  %v4743_v8 = vpop.permute.xlu0 %4742 }
 0xac6   : > { %v4810_v53 = vsel %vm8989_vm15, %v4751_v21, %v4753_v38  ;;  %5081 = vrot.lane.b32.xlu1 %v5639_v51, %s8720_s30  ;;  %vm9004_vm15 = vcmask 785408  }
 0xac7   : > { %4874 = vmatpush1.bf16.msra.mxu0 %v4788_v34 }
 0xac8   : > { %4875 = vmatprep.subr.bf16.mxu0 %v4787_v55 }
 0xac9   : > { %v4741_v57 = vpop.permute.xlu1 %4740  ;;  %v4735_v60 = vpop.permute.xlu0 %4734 }
 0xaca   : > { %v4807_v59 = vsel %vm8992_vm6, %v4741_v57, %v4743_v8  ;;  %vm9007_vm6 = vcmask 900096  }
 0xacb   : > { %4876 = vmatpush1.bf16.msra.mxu0 %v4786_v4 }
 0xacc   : > { %4877 = vmatprep.subr.bf16.mxu0 %v4817_v37 }
 0xacd   : > { %v4739_v23 = vpop.permute.xlu1 %4738  ;;  %v4759_v25 = vpop.permute.xlu0 %4758 }
 0xace   : > { %v4812_v13 = vsel %vm8988_vm13, %v4757_v48, %v4759_v25  ;;  %v4806_v24 = vsel %vm8993_vm11, %v4739_v23, %v4741_v57  ;;  %vm9001_vm13 = vmmov %vm8975_vm0 }
 0xacf   : > { %4878 = vmatpush2.bf16.msra.mxu0 %v4816_v16 }
 0xad0   : > { %4879 = vmatprep.subr.bf16.mxu0 %v4815_v26 }
 0xad1   : > { %v4737_v18 = vpop.permute.xlu1 %4736  ;;  %v4733_v0 = vpop.permute.xlu0 %4732 }
 0xad2   : > { %v4805_v9 = vsel %vm8994_vm14, %v4735_v60, %v4737_v18  ;;  %v4804_v48 = vsel %vm8997_vm2, %v4733_v0, %v4735_v60  ;;  %vm9009_vm14 = vmmov %vm9007_vm6  ;;  %vm9012_vm2 = vcmask 916480  }
 0xad3   : > { %4880 = vmatpush2.bf16.msra.mxu0 %v4814_v29 }
 0xad5   : > { %v4761_v42 = vpop.permute.xlu1 %4760  ;;  %v4747_v2 = vpop.permute.xlu0 %4746 }
 0xad6   : > { %v4813_v46 = vsel %vm8987_vm7, %v4759_v25, %v4761_v42  ;;  %v4808_v36 = vsel %vm8991_vm8, %v4745_v63, %v4747_v2  ;;  %vm9000_vm7 = vmmov %vm8975_vm0 }
 0xad7   : > { %4881 = vmatprep.subr.bf16.mxu0 %v4813_v46  ;;  %vm9006_vm8 = vmmov %vm9004_vm15 }
 0xad8   : > { %4882 = vmatpush2.bf16.msra.mxu0 %v4812_v13 }
 0xad9   : > { %v4781_v43 = vpop.permute.xlu1 %4780  ;;  %4883 = vmatprep.subr.bf16.mxu0 %v4811_v5  ;;  %v4729_v20 = vpop.permute.xlu0 %4728 }
 0xadc   : > { %4884 = vmatpush2.bf16.msra.mxu0 %v4810_v53 }
 0xadd   : > { %v4749_v14 = vpop.permute.xlu1 %4748  ;;  %v4727_v33 = vpop.permute.xlu0 %4726 }
 0xade   : > { %v4809_v6 = vsel %vm8990_vm4, %v4747_v2, %v4749_v14  ;;  %v4802_v27 = vsel %vm9000_vm7, %v4727_v33, %v4729_v20  ;;  %vm9005_vm4 = vcmask 777216   ;;  %vm9015_vm7 = vcmask 1039360  }
 0xadf   : > { %4885 = vmatprep.subr.bf16.mxu0 %v4809_v6  ;;  %vm9008_vm11 = vmmov %vm9005_vm4 }
 0xae0   : > { %4886 = vmatpush2.bf16.msra.mxu0 %v4808_v36 }
 0xae1   : > { %v4731_v19 = vpop.permute.xlu1 %4730  ;;  %4887 = vmatprep.subr.bf16.mxu0 %v4807_v59  ;;  %v4785_v40 = vpop.permute.xlu0 %4784 }
 0xae2   : > { %v4803_v49 = vsel %vm8998_vm12, %v4729_v20, %v4731_v19  ;;  %vm9013_vm12 = vmmov %vm9012_vm2 }
 0xae4   : > { %4888 = vmatpush2.bf16.msra.mxu0 %v4806_v24 }
 0xae5   : > { %v4783_v28 = vpop.permute.xlu1 %4782  ;;  %4889 = vmatprep.subr.bf16.mxu0 %v4805_v9  ;;  %v4779_v39 = vpop.permute.xlu0 %4778 }
 0xae6   : > { %v4820_v12 = vsel %vm8995_vm1, %v4781_v43, %v4783_v28  ;;  %v4821_v3 = vsel %vm8996_vm3, %v4783_v28, %v4785_v40  ;;  %vm9010_vm1 = vcmask 908288   ;;  %vm9011_vm3 = vcmask 1031168  }
 0xae7   : > { %4914 = vmatprep.subr.bf16.mxu1 %v4821_v3 }
 0xae8   : > { %4890 = vmatpush2.bf16.msra.mxu0 %v4804_v48  ;;  %4915 = vmatpush1.bf16.msra.mxu1 %v4820_v12 }
 0xae9   : > { %v4777_v17 = vpop.permute.xlu1 %4776  ;;  %4891 = vmatprep.subr.bf16.mxu0 %v4803_v49 }
 0xaea   : > { %v4819_v1 = vsel %vm8999_vm9, %v4777_v17, %v4779_v39  ;;  %vm9014_vm9 = vmmov %vm9011_vm3 }
 0xaeb   : > { %4916 = vmatprep.subr.bf16.mxu1 %v4819_v1 }
 0xaec   : > { %4892 = vmatpush2.bf16.msra.mxu0 %v4802_v27 }
 0xaed   : > { %v4775_v38 = vpop.permute.xlu1 %4774 }
 0xaee   : > { %v4818_v63 = vsel %vm9001_vm13, %v4775_v38, %v4777_v17  ;;  %vm9016_vm13 = vmmov %vm9015_vm7 }
 0xaef   : > { %4894 = vmatmul.mubr.bf16.vlgmr.msra.gmra.mxu0 %v5612_v10  ;;  %4917 = vmatpush1.bf16.msra.mxu1 %v4818_v63 }
 0xaf1   : > { %v5098_v40 = vpop.permute.xlu1 %5097 }
 0xaf2   : > { %5615 = vmatmul.mubr.msk.bf16.vlgmr.msra.gmra.mxu1 %vm3767_vm5, %v5837_v7  ;;  %v4666_v21 = vpop.permute.xlu0 %4665  ;;  %vm9002_vm5 = vcmask 769024  }
 0xaf3   : > { %5257 = vmatprep.mubr.bf16.mxu1 %v8900_v11  ;;  %vm9003_vm0 = vmmov %vm9002_vm5 }
 0xaf6   : > { %v5066_v9 = vpop.permute.xlu0 %5065 }
 0xafa   : > { %v5050_v12 = vpop.permute.xlu0 %5049 }
 0xb38   : > { %v5082_v28 = vpop.permute.xlu1 %5081 }
 0xbaf   : > { %v4895_v8 = vpop.f32.mrf.mxu0 }
 0xbb0   : > { %v4896_v34 = vadd.f32 %v4895_v8, %v4666_v21 }
 0xbb1   : > { %v4897_v50 = vpop.f32.mrf.mxu0 }
 0xbb2   : > { %v4898_v55 = vadd.f32 %v4897_v50, %v4666_v21  ;;  %v4936_v57 = vpop.f32.mrf.mxu1 }
 0xbb3   : > { %v4937_v60 = vadd.f32 %v4936_v57, %v4896_v34  ;;  %v4899_v4 = vpop.f32.mrf.mxu0 }
 0xbb4   : > { %v4938_v37 = vpop.f32.mrf.mxu1 }
 0xbb5   : > { %v4939_v23 = vadd.f32 %v4938_v37, %v4898_v55  ;;  %v4900_v25 = vpop.f32.mrf.mxu0  ;;  %v4943_v26 = vadd.f32 %v4937_v60, %v7912_v61 }
 0xbb6   : > { %v4940_v16 = vpop.f32.mrf.mxu1 }
 0xbb7   : > { %v4944_v11 = vadd.f32 %v4939_v23, %v7915_v32  ;;  %v5858_v29 = vpack.c.bf16 %v4943_v26, %v4943_v26 }
 0xbb8   : > { %v4941_v18 = vpop.f32.mrf.mxu1 }
 0xbb9   : > { %v5660_v45 = vpack.c.bf16 %v4944_v11, %v4943_v26  ;;  %v5857_v0 = vpack.c.bf16 %v4944_v11, %v4944_v11  ;;  %5077 = vrot.lane.b32.xlu1 %v5858_v29, %s8720_s30 }
 0xbbb   : > { %4953 = vst [vmem:[#allocation3 + $0x4] sm:$0xff] %v5660_v45  ;;  %5079 = vrot.lane.b32.xlu0 %v5857_v0, %s8720_s30  ;;  %v4969_v42 = vmul.bf16 %v5660_v45, %v8903_v31  ;;  %v4967_v46 = vmul.bf16 %v5660_v45, %v8904_v22  ;;  %v4965_v31 = vmul.bf16 %v5660_v45, %v8905_v30 }
 0xbbd   : > { %5034 = vrot.lane.b32.xlu1 %v5857_v0, %s8935_s20  ;;  %v5641_v61 = vcombine.high %v4969_v42, %v4969_v42  ;;  %v5634_v13 = vcombine.low %v4967_v46, %v4967_v46  ;;  %v5640_v5 = vcombine.low %v4969_v42, %v4969_v42  ;;  %v5631_v20 = vcombine.low %v4965_v31, %v4965_v31 }
 0xbbe   : > { %v5635_v53 = vcombine.high %v4967_v46, %v4967_v46  ;;  %v5632_v33 = vcombine.high %v4965_v31, %v4965_v31 }
 0xbbf   : > { %5032 = vrot.lane.b32.xlu0 %v5858_v29, %s8935_s20 }
 0xbc2   : > { %v8446_v2 = vld [vmem:[#allocation3] sm:$0xff]  ;;  %v8454_v43 = vld [vmem:[#allocation3 + $0x8] sm:$0xf] }
 0xbc3   : > { %v5621_v32 = vcombine.high %v8446_v2, %v8446_v2  ;;  %5095 = vrot.lane.b32.xlu0 %v5641_v61, %s8732_s21  ;;  %v4959_v14 = vmul.bf16 %v8454_v43, %v8805_v56  ;;  %v4961_v30 = vmul.bf16 %v8454_v43, %v6707_v15  ;;  %v4958_v6 = vmul.bf16 %v8446_v2, %v8806_v44 }
 0xbc4   : > { %v4960_v56 = vmul.bf16 %v8446_v2, %v8804_v54  ;;  %v5622_v15 = vcombine.low %v8454_v43, %v8454_v43  ;;  %v5620_v54 = vcombine.low %v8446_v2, %v8446_v2 }
 0xbc5   : > { %4989 = vrot.lane.b32.xlu1 %v5621_v32, %s8934_s28  ;;  %v5625_v22 = vcombine.low %v4959_v14, %v4959_v14  ;;  %v5628_v36 = vcombine.low %v4961_v30, %v4961_v30  ;;  %v5624_v59 = vcombine.high %v4958_v6, %v4958_v6  ;;  %v5623_v44 = vcombine.low %v4958_v6, %v4958_v6 }
 0xbc6   : > { %v5626_v19 = vcombine.low %v4960_v56, %v4960_v56  ;;  %v5627_v24 = vcombine.high %v4960_v56, %v4960_v56 }
 0xbc7   : > { %5061 = vrot.lane.b32.xlu0 %v5634_v13, %s8733_s26  ;;  %v4956_v13 = vmul.bf16 %v8446_v2, %v8828_v35 }
 0xbc9   : > { %5093 = vrot.lane.b32.xlu1 %v5640_v5, %s8732_s21  ;;  %v5618_v35 = vcombine.high %v4956_v13, %v4956_v13 }
 0xbcb   : > { %5045 = vrot.lane.b32.xlu0 %v5631_v20, %s8921_s18  ;;  %v4957_v20 = vmul.bf16 %v8454_v43, %v8818_v52 }
 0xbcd   : > { %5063 = vrot.lane.b32.xlu1 %v5635_v53, %s8733_s26  ;;  %v5619_v2 = vcombine.low %v4957_v20, %v4957_v20 }
 0xbcf   : > { %5007 = vrot.lane.b32.xlu0 %v5625_v22, %s8936_s23 }
 0xbd1   : > { %5047 = vrot.lane.b32.xlu1 %v5632_v33, %s8921_s18 }
 0xbd3   : > { %5023 = vrot.lane.b32.xlu0 %v5628_v36, %s8712_s29 }
 0xbd5   : > { %5005 = vrot.lane.b32.xlu1 %v5624_v59, %s8936_s23  ;;  %v5617_v59 = vcombine.low %v4956_v13, %v4956_v13 }
 0xbd7   : > { %5019 = vrot.lane.b32.xlu0 %v5626_v19, %s8712_s29  ;;  %v2594_v19 = vld [vmem:[%s8579_s16] sm:$0xff] }
 0xbd9   : > { %5021 = vrot.lane.b32.xlu1 %v5627_v24, %s8712_s29  ;;  %v2595_v24 = vld [vmem:[%s8579_s16 + $0x8] sm:$0xf] }
 0xbdb   : > { %4991 = vrot.lane.b32.xlu0 %v5622_v15, %s8934_s28  ;;  %v5139_v15 = vld [vmem:[%s8577_s14] sm:$0xff] }
 0xbdd   : > { %5003 = vrot.lane.b32.xlu1 %v5623_v44, %s8936_s23  ;;  %v5140_v44 = vld [vmem:[%s8577_s14 + $0x8] sm:$0xf] }
 0xbe1   : > { %4987 = vrot.lane.b32.xlu1 %v5620_v54, %s8934_s28 }
 0xc2b   : > { %v5078_v3 = vpop.permute.xlu1 %5077 }
 0xc2d   : > { %v5080_v48 = vpop.permute.xlu0 %5079 }
 0xc2e   : > { %v5083_v34 = vsel %vm9005_vm4, %v5078_v3, %v5080_v48  ;;  %v5084_v23 = vsel %vm9008_vm11, %v5080_v48, %v5082_v28 }
 0xc2f   : > { %v5035_v49 = vpop.permute.xlu1 %5034 }
 0xc31   : > { %v5033_v39 = vpop.permute.xlu0 %5032 }
 0xc32   : > { %v5036_v45 = vsel %vm9010_vm1, %v5033_v39, %v5035_v49 }
 0xc35   : > { %v5096_v1 = vpop.permute.xlu0 %5095 }
 0xc36   : > { %v5100_v63 = vsel %vm9003_vm0, %v5096_v1, %v5098_v40 }
 0xc37   : > { %v4990_v17 = vpop.permute.xlu1 %4989 }
 0xc39   : > { %v5062_v10 = vpop.permute.xlu0 %5061 }
 0xc3a   : > { %v5130_v21 = vsel %vm1183_vm10, %v5062_v10, %v5078_v3 }
 0xc3b   : > { %v5094_v27 = vpop.permute.xlu1 %5093 }
 0xc3c   : > { %v5099_v38 = vsel %vm9002_vm5, %v5094_v27, %v5096_v1  ;;  %5192 = vrot.lane.b32.xlu0 %v5094_v27, %s8815_s19  ;;  %vm9017_vm5 = vcmask 138240  }
 0xc3d   : > { %5194 = vrot.lane.b32.xlu1 %v5099_v38, %s8815_s19  ;;  %v5046_v51 = vpop.permute.xlu0 %5045  ;;  %vm9018_vm0 = vmmov %vm9017_vm5 }
 0xc3e   : > { %v5121_v50 = vsel %vm1183_vm10, %v5033_v39, %v5046_v51  ;;  %vm9020_vm4 = vmmov %vm9018_vm0 }
 0xc3f   : > { %v5064_v7 = vpop.permute.xlu1 %5063  ;;  %vm9024_vm11 = vmmov %vm9018_vm0 }
 0xc40   : > { %5196 = vrot.lane.b32.xlu0 %v5100_v63, %s8815_s19  ;;  %v5067_v8 = vsel %vm9004_vm15, %v5062_v10, %v5064_v7  ;;  %v5068_v60 = vsel %vm9006_vm8, %v5064_v7, %v5066_v9  ;;  %vm9019_vm15 = vmmov %vm9018_vm0 }
 0xc41   : > { %5186 = vrot.lane.b32.xlu1 %v5130_v21, %s8815_s19  ;;  %v5008_v57 = vpop.permute.xlu0 %5007  ;;  %v5133_v4 = vsel %vm1183_vm10, %v5067_v8, %v5083_v34  ;;  %v5136_v26 = vsel %vm1183_vm10, %v5068_v60, %v5084_v23  ;;  %vm9021_vm8 = vmmov %vm9018_vm0  ;;  %v5841_v23 = vld [vmem:[#allocation13] sm:$0x3f]  }
 0xc42   : > { %vm9026_vm1 = vmmov %vm9018_vm0 }
 0xc43   : > { %v5048_v55 = vpop.permute.xlu1 %5047 }
 0xc44   : > { %5180 = vrot.lane.b32.xlu0 %v5121_v50, %s8815_s19  ;;  %v5052_v37 = vsel %vm9007_vm6, %v5048_v55, %v5050_v12  ;;  %v5051_v11 = vsel %vm9009_vm14, %v5046_v51, %v5048_v55  ;;  %vm9022_vm6 = vmmov %vm9018_vm0 }
 0xc45   : > { %5188 = vrot.lane.b32.xlu1 %v5133_v4, %s8815_s19  ;;  %v5024_v16 = vpop.permute.xlu0 %5023  ;;  %v5127_v18 = vsel %vm1183_vm10, %v5035_v49, %v5052_v37  ;;  %v5124_v42 = vsel %vm1183_vm10, %v5036_v45, %v5051_v11  ;;  %vm9025_vm14 = vmmov %vm9018_vm0 }
 0xc46   : > { %v5118_v5 = vsel %vm1183_vm10, %v5008_v57, %v5024_v16 }
 0xc47   : > { %v5006_v25 = vpop.permute.xlu1 %5005 }
 0xc48   : > { %5190 = vrot.lane.b32.xlu0 %v5136_v26, %s8815_s19  ;;  %v5010_v61 = vsel %vm9011_vm3, %v5006_v25, %v5008_v57  ;;  %vm9027_vm3 = vcmask 588800  }
 0xc49   : > { %5184 = vrot.lane.b32.xlu1 %v5127_v18, %s8815_s19  ;;  %v5020_v29 = vpop.permute.xlu0 %5019 }
 0xc4b   : > { %v5022_v0 = vpop.permute.xlu1 %5021 }
 0xc4c   : > { %v5026_v32 = vsel %vm9012_vm2, %v5022_v0, %v5024_v16  ;;  %5182 = vrot.lane.b32.xlu0 %v5124_v42, %s8815_s19  ;;  %v5025_v14 = vsel %vm9013_vm12, %v5020_v29, %v5022_v0 }
 0xc4d   : > { %v5115_v46 = vsel %vm1183_vm10, %v5010_v61, %v5026_v32  ;;  %v4992_v53 = vpop.permute.xlu0 %4991 }
 0xc4e   : > { %5176 = vrot.lane.b32.xlu1 %v5115_v46, %s8815_s19  ;;  %v4994_v33 = vsel %vm9015_vm7, %v4990_v17, %v4992_v53  ;;  %v5109_v43 = vsel %vm1183_vm10, %v5619_v2, %v4992_v53 }
 0xc4f   : > { %v5004_v31 = vpop.permute.xlu1 %5003  ;;  %v5106_v36 = vsel %vm1183_vm10, %v5618_v35, %v4994_v33 }
 0xc50   : > { %v5009_v22 = vsel %vm9014_vm9, %v5004_v31, %v5006_v25  ;;  %5178 = vrot.lane.b32.xlu0 %v5118_v5, %s8815_s19 }
 0xc51   : > { %v5112_v30 = vsel %vm1183_vm10, %v5009_v22, %v5025_v14 }
 0xc52   : > { %5174 = vrot.lane.b32.xlu1 %v5112_v30, %s8815_s19 }
 0xc53   : > { %v4988_v6 = vpop.permute.xlu1 %4987 }
 0xc54   : > { %v4993_v52 = vsel %vm9016_vm13, %v4988_v6, %v4990_v17  ;;  %5170 = vrot.lane.b32.xlu0 %v5106_v36, %s8815_s19 }
 0xc55   : > { %v5103_v56 = vsel %vm1183_vm10, %v5617_v59, %v4993_v52 }
 0xc56   : > { %5172 = vrot.lane.b32.xlu1 %v5109_v43, %s8815_s19 }
 0xc58   : > { %5168 = vrot.lane.b32.xlu0 %v5103_v56, %s8815_s19  ;;  %s5649_s19 = sshll.u32 %s9029_s27, 5 }
 0xc59   : > { %s644_s22 = scalar_lea.vmem %s8580_s17, %s5649_s19 }
 0xc5a   : > { %2598 = vperm.xlu1 %5780, %v2594_v19  }
 0xc5c   : > { %2603 = vperm.xlu0 %5781, %v2595_v24  }
 0xc5e   : > { %5143 = vperm.xlu1 %5780, %v5139_v15  }
 0xc60   : > { %5148 = vperm.xlu0 %5781, %v5140_v44  }
 0xcae   : > { %v5193_v54 = vpop.permute.xlu0 %5192 }
 0xcaf   : > { %v5195_v40 = vpop.permute.xlu1 %5194 }
 0xcb0   : > { %v5206_v9 = vsel %vm9017_vm5, %v5193_v54, %v5195_v40 }
 0xcb1   : > { %v5220_v48 = vsel %vm1183_vm10, %v5206_v9, 0 }
 0xcb2   : > { %v5197_v28 = vpop.permute.xlu0 %5196 }
 0xcb3   : > { %v5207_v12 = vsel %vm9018_vm0, %v5195_v40, %v5197_v28  ;;  %v5187_v3 = vpop.permute.xlu1 %5186 }
 0xcb4   : > { %5644 = vmatprep.subr.msk.bf16.mxu1 %vm1183_vm10, %v5207_v12  ;;  %vm9023_vm10 = vmmov %vm9018_vm0 }
 0xcb5   : > { %5232 = vmatpush1.bf16.msra.mxu1 %v5220_v48 }
 0xcb6   : > { %v5181_v49 = vpop.permute.xlu0 %5180 }
 0xcb7   : > { %v5189_v39 = vpop.permute.xlu1 %5188 }
 0xcb8   : > { %v5204_v10 = vsel %vm9020_vm4, %v5187_v3, %v5189_v39 }
 0xcba   : > { %v5191_v17 = vpop.permute.xlu0 %5190 }
 0xcbb   : > { %v5185_v1 = vpop.permute.xlu1 %5184  ;;  %v5205_v27 = vsel %vm9019_vm15, %v5189_v39, %v5191_v17 }
 0xcbc   : > { %5233 = vmatprep.subr.bf16.mxu1 %v5205_v27 }
 0xcbd   : > { %5234 = vmatpush1.bf16.msra.mxu1 %v5204_v10 }
 0xcbe   : > { %v5183_v38 = vpop.permute.xlu0 %5182 }
 0xcbf   : > { %v5202_v63 = vsel %vm9021_vm8, %v5181_v49, %v5183_v38  ;;  %v5203_v7 = vsel %vm9022_vm6, %v5183_v38, %v5185_v1 }
 0xcc0   : > { %v5177_v51 = vpop.permute.xlu1 %5176  ;;  %5235 = vmatprep.subr.bf16.mxu1 %v5203_v7 }
 0xcc1   : > { %5236 = vmatpush1.bf16.msra.mxu1 %v5202_v63 }
 0xcc2   : > { %v5179_v21 = vpop.permute.xlu0 %5178 }
 0xcc3   : > { %v5201_v8 = vsel %vm9023_vm10, %v5177_v51, %v5179_v21 }
 0xcc4   : > { %v5175_v34 = vpop.permute.xlu1 %5174  ;;  %5237 = vmatprep.subr.bf16.mxu1 %v5201_v8 }
 0xcc5   : > { %v5200_v50 = vsel %vm9024_vm11, %v5175_v34, %v5177_v51 }
 0xcc6   : > { %5238 = vmatpush1.bf16.msra.mxu1 %v5200_v50  ;;  %v5171_v55 = vpop.permute.xlu0 %5170 }
 0xcc8   : > { %v5173_v57 = vpop.permute.xlu1 %5172 }
 0xcc9   : > { %v5199_v60 = vsel %vm9025_vm14, %v5171_v55, %v5173_v57 }
 0xcca   : > { %5239 = vmatprep.subr.bf16.mxu1 %v5199_v60  ;;  %v5169_v4 = vpop.permute.xlu0 %5168 }
 0xccb   : > { %v5198_v37 = vsel %vm9026_vm1, %v5169_v4, %v5171_v55 }
 0xccc   : > { %5240 = vmatpush1.bf16.msra.mxu1 %v5198_v37 }
 0xccf   : > { %5645 = vmatmul.mubr.msk.bf16.vlgmr.msra.gmra.mxu1 %vm9027_vm3, %v5841_v23 }
 0xcd5   : > { %v2599_v25 = vpop.permute.xlu1 %2598 }
 0xcd6   : > { %v2713_v18 = vadd.f32 %v7903_v62, %v2599_v25  ;;  %v2715_v29 = vadd.f32 %v7905_v41, %v2599_v25 }
 0xcd7   : > { %v2604_v16 = vpop.permute.xlu0 %2603 }
 0xcd8   : > { %v2717_v13 = vadd.f32 %v7907_v47, %v2604_v16  ;;  %v2719_v62 = vadd.f32 %v7909_v58, %v2604_v16 }
 0xcd9   : > { %v5144_v26 = vpop.permute.xlu1 %5143 }
 0xcdb   : > { %v5149_v32 = vpop.permute.xlu0 %5148 }
 0xd8f   : > { %v5259_v11 = vpop.f32.mrf.mxu1 }
 0xd90   : > { %v5260_v45 = vadd.f32 %v5259_v11, %v5144_v26 }
 0xd91   : > { %v5261_v0 = vpop.f32.mrf.mxu1 }
 0xd92   : > { %v5268_v42 = vadd.f32 %v5260_v45, %v2713_v18  ;;  %v5262_v61 = vadd.f32 %v5261_v0, %v5144_v26 }
 0xd93   : > { %v5263_v46 = vpop.f32.mrf.mxu1 }
 0xd94   : > { %5272 = vst [vmem:[%s644_s22] sm:$0xff] %v5268_v42  ;;  %v5269_v5 = vadd.f32 %v5262_v61, %v2715_v29  ;;  %v5264_v31 = vadd.f32 %v5263_v46, %v5149_v32 }
 0xd95   : > { %v5265_v20 = vpop.f32.mrf.mxu1 }
 0xd96   : > { %5273 = vst [vmem:[%s644_s22 + $0x8] sm:$0xff] %v5269_v5  ;;  %v5270_v53 = vadd.f32 %v5264_v31, %v2717_v13  ;;  %v5266_v14 = vadd.f32 %v5265_v20, %v5149_v32 }
 0xd98   : > { %5274 = vst [vmem:[%s644_s22 + $0x10] sm:$0xf] %v5270_v53  ;;  %v5271_v22 = vadd.f32 %v5266_v14, %v2719_v62 }
 0xd9a   : > { %5275 = vst [vmem:[%s644_s22 + $0x18] sm:$0xf] %v5271_v22 }
 0xd9b PF: > { %s31_s24 = sadd.s32 1, %s6063_s24  }
 0xd9c   : > { %p28_p10 = scmp.ge.s32.totalorder %s31_s24, 4  }
 0xd9e   :  { %30 = sbr.rel (!%p28_p10) target bundleno = 7 (0x7), region = 147 }
 0xda3   :  { %5297 = vsyncpa [#allocation6], 1 }
 0xda4   :  { %5299 = vsyncpa [#allocation6 + $0x1], 1 }
 0xda5   :  { %5300 = vsyncpa [#allocation8], 1 }
 0xda6   :  { %5301 = vsyncpa [#allocation11], 1 }
 0xda7   :  { %5302 = vsyncpa [#allocation14], 1 }

</bundles_post_ra>
